<compile_context>
chip_gen: v5e
topology: v5e:2x2
jax: 0.10.0
libtpu: 0.0.40
codegen_flags: <defaults>
</compile_context>

<pallas_src>
import math

import jax
import jax.numpy as jnp
from jax.experimental import pallas as pl
from jax.experimental.pallas import tpu as pltpu


# --------------------------------------------------------------------------------------
# Config (small shapes consistent with the module's forward)
# --------------------------------------------------------------------------------------
BATCH = 2
TGT_LEN = 8
SRC_LEN = 8
EMBED_DIM = 32          # decoder_embed_dim == encoder_embed_dim -> project_in_dim is None
FFN_DIM = 64            # decoder_ffn_embed_dim
NUM_HEADS = 4
HEAD_DIM = EMBED_DIM // NUM_HEADS
NUM_LAYERS = 2
VOCAB = 40
VOCAB_PAD = 128         # pad vocab so the logits store is lane-dense (128 lanes)
PAD_IDX = 1
LN_EPS = 1e-5
EMBED_SCALE = math.sqrt(EMBED_DIM)
ATTN_SCALE = HEAD_DIM ** -0.5
NEG_INF = -1e30         # large finite negative (NaN-safe vs. -inf if masks are extended)

# Row layout of the packed f32 bias / LayerNorm slab (one vector per row, 128 lanes).
R_SA_LN_G, R_SA_LN_B, R_QKV_B, R_SA_OB = 0, 1, 2, 3
R_EA_LN_G, R_EA_LN_B, R_EA_QB, R_EA_KVB, R_EA_OB = 4, 5, 6, 7, 8
R_FFN_LN_G, R_FFN_LN_B, R_FC1_B, R_FC2_B = 9, 10, 11, 12
ROWS_PER_LAYER = 13
R_FINAL_LN_G = NUM_LAYERS * ROWS_PER_LAYER          # 26
R_FINAL_LN_B = R_FINAL_LN_G + 1                     # 27
PV_ROWS = 32                                        # padded to a multiple of 8 sublanes

# Column layout of the packed bf16 weight slab (rows = C = 32).
_C = EMBED_DIM
W_QKV = (0, 3 * _C)            # (C, 3C) fused q|k|v
W_SA_O = (3 * _C, 4 * _C)      # (C, C)  self-attn out proj
W_EA_Q = (4 * _C, 5 * _C)      # (C, C)  cross-attn q proj
W_EA_KV = (5 * _C, 7 * _C)     # (C, 2C) fused cross-attn k|v
W_EA_O = (7 * _C, 8 * _C)      # (C, C)  cross-attn out proj
W_FC1 = (8 * _C, 8 * _C + FFN_DIM)   # (C, F)
W_COLS = 8 * _C + FFN_DIM      # 320


# --------------------------------------------------------------------------------------
# Fully fused kernel: 2 decoder layers + final LN + output projection in one pallas_call
# --------------------------------------------------------------------------------------
def _fused_decoder_kernel(x_ref, enc_ref, w_ref, fc2_ref, outw_ref, pv_ref, o_ref):
    C, F, H, D = EMBED_DIM, FFN_DIM, NUM_HEADS, HEAD_DIM

    x = x_ref[...]            # (B*T, C) f32, rows ordered (b, t)
    enc = enc_ref[...]        # (B*S, C) f32, rows ordered (b, s)
    w_all = w_ref[...]        # (L, C, 10C) bf16
    fc2_all = fc2_ref[...]    # (L, F, C)   bf16

    # Causal additive mask: built in-kernel, broadcast ONCE (hoisted out of all loops).
    r_i = jax.lax.broadcasted_iota(jnp.int32, (TGT_LEN, TGT_LEN), 0)
    c_i = jax.lax.broadcasted_iota(jnp.int32, (TGT_LEN, TGT_LEN), 1)
    causal = jnp.where(c_i > r_i, NEG_INF, 0.0).astype(jnp.float32)
    causal_b = jnp.broadcast_to(causal[None, :, :], (BATCH, TGT_LEN, TGT_LEN))

    def vec(row, width):
        """One packed parameter vector as a (1, width) f32 slab row (static slice)."""
        return pv_ref[row:row + 1, :width]

    def layer_norm(v, g_row):
        """f32 LayerNorm (v5e has no bf16 VPU/EUP); beta sits in the row after gamma."""
        mu = jnp.mean(v, axis=-1, keepdims=True)
        var = jnp.mean((v - mu) * (v - mu), axis=-1, keepdims=True)
        return (v - mu) * jax.lax.rsqrt(var + LN_EPS) * vec(g_row, C) + vec(g_row + 1, C)

    def mm(a, w):
        """bf16 MXU operands, f32 accumulation."""
        return jnp.dot(a.astype(jnp.bfloat16), w.astype(jnp.bfloat16),
                       preferred_element_type=jnp.float32)

    def attention(q2, k2, v2, n_q, n_kv, bias_b, ow, ob_row):
        """Multi-head attention on flat (B*n, C) slabs.  The head merge is folded into
        the output projection: out += attn_h @ W_o[h*D:(h+1)*D, :] (MXU accumulation,
        no cross-lane concat)."""
        out = jnp.broadcast_to(vec(ob_row, C), (BATCH * n_q, C))
        for h in range(H):                               # static, unrolled at trace time
            sl = slice(h * D, (h + 1) * D)
            qh = (q2[:, sl] * ATTN_SCALE).reshape(BATCH, n_q, D).astype(jnp.bfloat16)
            kh = k2[:, sl].reshape(BATCH, n_kv, D).astype(jnp.bfloat16)
            vh = v2[:, sl].reshape(BATCH, n_kv, D).astype(jnp.bfloat16)
            s = jnp.einsum('bqd,bkd->bqk', qh, kh, preferred_element_type=jnp.float32)
            if bias_b is not None:
                s = s + bias_b                           # pre-broadcast, no per-head bcast
            m = jnp.max(s, axis=-1, keepdims=True)
            p = jnp.exp(s - m)                           # f32 softmax math
            p = p * pl.reciprocal(jnp.sum(p, axis=-1, keepdims=True), approx=True)
            oh = jnp.einsum('bqk,bkd->bqd', p.astype(jnp.bfloat16), vh,
                            preferred_element_type=jnp.float32)   # (B, n_q, D)
            out = out + mm(oh.reshape(BATCH * n_q, D), ow[sl, :])
        return out

    for li in range(NUM_LAYERS):                         # static, unrolled at trace time
        wl = w_all[li]                                   # (C, 10C) bf16
        qkv_w = wl[:, W_QKV[0]:W_QKV[1]]
        sa_ow = wl[:, W_SA_O[0]:W_SA_O[1]]
        ea_qw = wl[:, W_EA_Q[0]:W_EA_Q[1]]
        ea_kvw = wl[:, W_EA_KV[0]:W_EA_KV[1]]
        ea_ow = wl[:, W_EA_O[0]:W_EA_O[1]]
        fc1_w = wl[:, W_FC1[0]:W_FC1[1]]
        fc2_w = fc2_all[li]                              # (F, C) bf16
        base = li * ROWS_PER_LAYER

        # --- self attention (pre-norm, fused QKV projection, in-kernel causal mask) ---
        residual = x
        h_sa = layer_norm(x, base + R_SA_LN_G)
        qkv = mm(h_sa, qkv_w) + vec(base + R_QKV_B, 3 * C)           # (B*T, 3C)
        x = residual + attention(qkv[:, 0:C], qkv[:, C:2 * C], qkv[:, 2 * C:3 * C],
                                 TGT_LEN, TGT_LEN, causal_b,
                                 sa_ow, base + R_SA_OB)

        # --- encoder (cross) attention: no mask, fused KV projection of encoder states --
        residual = x
        h_ea = layer_norm(x, base + R_EA_LN_G)
        q = mm(h_ea, ea_qw) + vec(base + R_EA_QB, C)                 # (B*T, C)
        kv = mm(enc, ea_kvw) + vec(base + R_EA_KVB, 2 * C)           # (B*S, 2C)
        x = residual + attention(q, kv[:, 0:C], kv[:, C:2 * C],
                                 TGT_LEN, SRC_LEN, None,
                                 ea_ow, base + R_EA_OB)

        # --- FFN ---
        residual = x
        h_ff = layer_norm(x, base + R_FFN_LN_G)
        h_ff = jnp.maximum(mm(h_ff, fc1_w) + vec(base + R_FC1_B, F), 0.0)   # relu
        x = residual + mm(h_ff, fc2_w) + vec(base + R_FC2_B, C)

    # --- final LayerNorm + output projection (vocab padded to 128 -> lane-dense store) -
    y = layer_norm(x, R_FINAL_LN_G)
    o_ref[...] = mm(y, outw_ref[...]).astype(o_ref.dtype)


# --------------------------------------------------------------------------------------
# Pallas wrapper (single fused call for the whole decoder stack)
# --------------------------------------------------------------------------------------
def _cost_estimate():
    M, Me = BATCH * TGT_LEN, BATCH * SRC_LEN
    C, F, D = EMBED_DIM, FFN_DIM, HEAD_DIM
    per_head_sa = 2 * BATCH * TGT_LEN * TGT_LEN * D * 2 + 2 * M * D * C
    per_head_ea = 2 * BATCH * TGT_LEN * SRC_LEN * D * 2 + 2 * M * D * C
    per_layer = (2 * M * C * 3 * C + NUM_HEADS * per_head_sa
                 + 2 * M * C * C + 2 * Me * C * 2 * C + NUM_HEADS * per_head_ea
                 + 2 * M * C * F + 2 * M * F * C)
    flops = NUM_LAYERS * per_layer + 2 * M * C * VOCAB_PAD
    transcendentals = (NUM_LAYERS * 2 * BATCH * NUM_HEADS * TGT_LEN * SRC_LEN
                       + (3 * NUM_LAYERS + 1) * M)
    bytes_accessed = (M * C * 4 + Me * C * 4
                      + NUM_LAYERS * C * W_COLS * 2 + NUM_LAYERS * F * C * 2
                      + C * VOCAB_PAD * 2 + PV_ROWS * 128 * 4 + M * VOCAB_PAD * 4)
    return pl.CostEstimate(flops=flops, transcendentals=transcendentals,
                           bytes_accessed=bytes_accessed)


def fused_decoder(x2d, enc2d, params):
    """x2d: (B*T, C) f32, enc2d: (B*S, C) f32 -> padded logits (B*T, VOCAB_PAD) f32."""
    args = (x2d, enc2d, params["w_slab"], params["fc2_slab"],
            params["out_proj_w"], params["pv_slab"])
    vmem = pl.BlockSpec(memory_space=pltpu.MemorySpace.VMEM)
    return pl.pallas_call(
        _fused_decoder_kernel,
        out_shape=jax.ShapeDtypeStruct((x2d.shape[0], VOCAB_PAD), jnp.float32),
        in_specs=[vmem] * len(args),
        out_specs=vmem,
        cost_estimate=_cost_estimate(),
    )(*args)


# --------------------------------------------------------------------------------------
# Model glue (plain JAX): embeddings, positions, layout; exactly ONE pallas_call
# --------------------------------------------------------------------------------------
def sinusoidal_table(num_embeddings, embedding_dim, padding_idx):
    half_dim = embedding_dim // 2
    emb = math.log(10000) / (half_dim - 1)
    emb = jnp.exp(jnp.arange(half_dim, dtype=jnp.float32) * -emb)
    emb = jnp.arange(num_embeddings, dtype=jnp.float32)[:, None] * emb[None, :]
    emb = jnp.concatenate([jnp.sin(emb), jnp.cos(emb)], axis=1)
    if embedding_dim % 2 == 1:
        emb = jnp.concatenate([emb, jnp.zeros((num_embeddings, 1), jnp.float32)], axis=1)
    emb = emb.at[padding_idx].set(0.0)
    return emb


def transformer_decoder_forward(tokens, encoder_out, params):
    """tokens: (B, T) int32; encoder_out: (S, B, C) f32 (T x B x C convention)
    -> logits (B, T, V)."""
    B, T = tokens.shape
    C = EMBED_DIM

    # sinusoidal positional embedding (fairseq make_positions) — gather stays in JAX
    nonpad = (tokens != PAD_IDX).astype(jnp.int32)
    positions = jnp.cumsum(nonpad, axis=1) * nonpad + PAD_IDX              # (B, T)
    x = EMBED_SCALE * params["embed_table"][tokens] + params["pos_table"][positions]

    x2d = x.reshape(B * T, C)                                              # rows (b, t)
    enc2d = jnp.transpose(encoder_out, (1, 0, 2)).reshape(B * SRC_LEN, C)  # rows (b, s)

    logits = fused_decoder(x2d, enc2d, params)                             # (B*T, 128)
    return logits.reshape(B, T, VOCAB_PAD)[:, :, :VOCAB]


# --------------------------------------------------------------------------------------
# Deterministic parameter init — directly in packed, kernel-ready layout
# --------------------------------------------------------------------------------------
def init_params(key):
    def normal(k, shape, std):
        return std * jax.random.normal(k, shape, dtype=jnp.float32)

    keys = jax.random.split(key, 2 + NUM_LAYERS)
    params = {
        "embed_table": normal(keys[0], (VOCAB, EMBED_DIM), EMBED_DIM ** -0.5),
        "pos_table": sinusoidal_table(PAD_IDX + 1 + TGT_LEN + 1, EMBED_DIM, PAD_IDX),
    }

    # Output projection (no bias), zero-padded to VOCAB_PAD columns (lane-dense store).
    w_out = normal(keys[1], (EMBED_DIM, VOCAB), EMBED_DIM ** -0.5)
    params["out_proj_w"] = jnp.pad(
        w_out, ((0, 0), (0, VOCAB_PAD - VOCAB))).astype(jnp.bfloat16)

    ones_c = jnp.ones((EMBED_DIM,), jnp.float32)
    pv = jnp.zeros((PV_ROWS, 128), jnp.float32)          # all biases / LN betas are zero

    def put(slab, r, v):
        return slab.at[r, :v.shape[0]].set(v)

    w_layers, fc2_layers = [], []
    for li in range(NUM_LAYERS):
        lk = jax.random.split(keys[2 + li], 10)
        q_w = normal(lk[0], (EMBED_DIM, EMBED_DIM), 0.02)
        k_w = normal(lk[1], (EMBED_DIM, EMBED_DIM), 0.02)
        v_w = normal(lk[2], (EMBED_DIM, EMBED_DIM), 0.02)
        o_w = normal(lk[3], (EMBED_DIM, EMBED_DIM), 0.02)
        eq_w = normal(lk[4], (EMBED_DIM, EMBED_DIM), 0.02)
        ek_w = normal(lk[5], (EMBED_DIM, EMBED_DIM), 0.02)
        ev_w = normal(lk[6], (EMBED_DIM, EMBED_DIM), 0.02)
        eo_w = normal(lk[7], (EMBED_DIM, EMBED_DIM), 0.02)
        fc1_w = normal(lk[8], (EMBED_DIM, FFN_DIM), 0.02)
        fc2_w = normal(lk[9], (FFN_DIM, EMBED_DIM), 0.02)

        # one (C, 10C) slab per layer: qkv | self-out | x-q | x-kv | x-out | fc1
        w_layers.append(jnp.concatenate(
            [q_w, k_w, v_w, o_w, eq_w, ek_w, ev_w, eo_w, fc1_w], axis=1))
        fc2_layers.append(fc2_w)

        base = li * ROWS_PER_LAYER
        pv = put(pv, base + R_SA_LN_G, ones_c)           # LayerNorm gammas = 1
        pv = put(pv, base + R_EA_LN_G, ones_c)
        pv = put(pv, base + R_FFN_LN_G, ones_c)

    pv = put(pv, R_FINAL_LN_G, ones_c)

    params["w_slab"] = jnp.stack(w_layers, axis=0).astype(jnp.bfloat16)    # (L, C, 10C)
    params["fc2_slab"] = jnp.stack(fc2_layers, axis=0).astype(jnp.bfloat16)  # (L, F, C)
    params["pv_slab"] = pv                                                 # (32, 128) f32
    return params


# --------------------------------------------------------------------------------------
# Main
# --------------------------------------------------------------------------------------
if __name__ == "__main__":
    root = jax.random.PRNGKey(0)
    k_tok, k_enc, k_par = jax.random.split(root, 3)

    # prev_output_tokens (B, T): avoid the pad id so self_attn_padding_mask stays None,
    # matching the reference's `if prev_output_tokens.eq(pad).any()` branch.
    tokens = jax.random.randint(k_tok, (BATCH, TGT_LEN), 2, VOCAB, dtype=jnp.int32)
    # encoder_out: (S, B, C) as the module expects (T x B x C)
    enc = jax.random.normal(k_enc, (SRC_LEN, BATCH, EMBED_DIM), dtype=jnp.float32)

    params = init_params(k_par)

    fwd = jax.jit(transformer_decoder_forward)
    logits = fwd(tokens, enc, params)
    logits = jax.block_until_ready(logits)

    assert logits.shape == (BATCH, TGT_LEN, VOCAB), logits.shape
    assert bool(jnp.all(jnp.isfinite(logits)))
    print("KERNEL_OK")
</pallas_src>

<mosaic_0001>
module attributes {stable_mosaic.version = 11 : i64} {
  func.func @_fused_decoder_kernel(%arg0: memref<16x32xf32, #tpu.memory_space<vmem>>, %arg1: memref<16x32xf32, #tpu.memory_space<vmem>>, %arg2: memref<2x32x320xbf16, #tpu.memory_space<vmem>>, %arg3: memref<2x64x32xbf16, #tpu.memory_space<vmem>>, %arg4: memref<32x128xbf16, #tpu.memory_space<vmem>>, %arg5: memref<32x128xf32, #tpu.memory_space<vmem>>, %arg6: memref<16x128xf32, #tpu.memory_space<vmem>>) attributes {dimension_semantics = [], scalar_prefetch = 0 : i64, scratch_operands = 0 : i64, tpu.core_type = #tpu.core_type<tc>} {
    %c0 = arith.constant 0 : index
    %c0_0 = arith.constant 0 : index
    %0 = vector.load %arg0[%c0, %c0_0] : memref<16x32xf32, #tpu.memory_space<vmem>>, vector<16x32xf32>
    %c0_1 = arith.constant 0 : index
    %c0_2 = arith.constant 0 : index
    %1 = vector.load %arg1[%c0_1, %c0_2] : memref<16x32xf32, #tpu.memory_space<vmem>>, vector<16x32xf32>
    %c0_3 = arith.constant 0 : index
    %c0_4 = arith.constant 0 : index
    %c0_5 = arith.constant 0 : index
    %2 = vector.load %arg2[%c0_3, %c0_4, %c0_5] : memref<2x32x320xbf16, #tpu.memory_space<vmem>>, vector<2x32x320xbf16>
    %c0_6 = arith.constant 0 : index
    %c0_7 = arith.constant 0 : index
    %c0_8 = arith.constant 0 : index
    %3 = vector.load %arg3[%c0_6, %c0_7, %c0_8] : memref<2x64x32xbf16, #tpu.memory_space<vmem>>, vector<2x64x32xbf16>
    %4 = tpu.iota {dimensions = array<i32: 0>} : vector<8x8xi32>
    %5 = tpu.iota {dimensions = array<i32: 1>} : vector<8x8xi32>
    %6 = arith.cmpi sgt, %5, %4 : vector<8x8xi32>
    %cst = arith.constant -1.000000e+30 : f32
    %cst_9 = arith.constant 0.000000e+00 : f32
    %7 = vector.broadcast %cst : f32 to vector<8x8xf32>
    %8 = vector.broadcast %cst_9 : f32 to vector<8x8xf32>
    %9 = arith.select %6, %7, %8 : vector<8x8xi1>, vector<8x8xf32>
    %10 = vector.shape_cast %9 : vector<8x8xf32> to vector<1x8x8xf32>
    %11 = vector.shape_cast %10 : vector<1x8x8xf32> to vector<1x8x8xf32>
    %12 = vector.broadcast %11 : vector<1x8x8xf32> to vector<2x8x8xf32>
    %13 = vector.extract_strided_slice %2 {offsets = [0, 0, 0], sizes = [1, 32, 320], strides = [1, 1, 1]} : vector<2x32x320xbf16> to vector<1x32x320xbf16>
    %14 = vector.shape_cast %13 : vector<1x32x320xbf16> to vector<32x320xbf16>
    %15 = vector.extract_strided_slice %14 {offsets = [0, 0], sizes = [32, 96], strides = [1, 1]} : vector<32x320xbf16> to vector<32x96xbf16>
    %16 = vector.extract_strided_slice %14 {offsets = [0, 96], sizes = [32, 32], strides = [1, 1]} : vector<32x320xbf16> to vector<32x32xbf16>
    %17 = vector.extract_strided_slice %14 {offsets = [0, 128], sizes = [32, 32], strides = [1, 1]} : vector<32x320xbf16> to vector<32x32xbf16>
    %18 = vector.extract_strided_slice %14 {offsets = [0, 160], sizes = [32, 64], strides = [1, 1]} : vector<32x320xbf16> to vector<32x64xbf16>
    %19 = vector.extract_strided_slice %14 {offsets = [0, 224], sizes = [32, 32], strides = [1, 1]} : vector<32x320xbf16> to vector<32x32xbf16>
    %20 = vector.extract_strided_slice %14 {offsets = [0, 256], sizes = [32, 64], strides = [1, 1]} : vector<32x320xbf16> to vector<32x64xbf16>
    %21 = vector.extract_strided_slice %3 {offsets = [0, 0, 0], sizes = [1, 64, 32], strides = [1, 1, 1]} : vector<2x64x32xbf16> to vector<1x64x32xbf16>
    %22 = vector.shape_cast %21 : vector<1x64x32xbf16> to vector<64x32xbf16>
    %cst_10 = arith.constant dense<0.000000e+00> : vector<16xf32>
    %23 = vector.multi_reduction <add>, %0, %cst_10 [1] : vector<16x32xf32> to vector<16xf32>
    %24 = vector.shape_cast %23 : vector<16xf32> to vector<16x1xf32>
    %cst_11 = arith.constant 3.200000e+01 : f32
    %25 = vector.broadcast %cst_11 : f32 to vector<16x1xf32>
    %26 = arith.divf %24, %25 : vector<16x1xf32>
    %27 = vector.broadcast %26 : vector<16x1xf32> to vector<16x32xf32>
    %28 = arith.subf %0, %27 : vector<16x32xf32>
    %29 = vector.broadcast %26 : vector<16x1xf32> to vector<16x32xf32>
    %30 = arith.subf %0, %29 : vector<16x32xf32>
    %31 = arith.mulf %28, %30 : vector<16x32xf32>
    %cst_12 = arith.constant dense<0.000000e+00> : vector<16xf32>
    %32 = vector.multi_reduction <add>, %31, %cst_12 [1] : vector<16x32xf32> to vector<16xf32>
    %33 = vector.shape_cast %32 : vector<16xf32> to vector<16x1xf32>
    %cst_13 = arith.constant 3.200000e+01 : f32
    %34 = vector.broadcast %cst_13 : f32 to vector<16x1xf32>
    %35 = arith.divf %33, %34 : vector<16x1xf32>
    %36 = vector.broadcast %26 : vector<16x1xf32> to vector<16x32xf32>
    %37 = arith.subf %0, %36 : vector<16x32xf32>
    %cst_14 = arith.constant 9.99999974E-6 : f32
    %38 = vector.broadcast %cst_14 : f32 to vector<16x1xf32>
    %39 = arith.addf %35, %38 : vector<16x1xf32>
    %40 = math.rsqrt %39 : vector<16x1xf32>
    %41 = vector.broadcast %40 : vector<16x1xf32> to vector<16x32xf32>
    %42 = arith.mulf %37, %41 : vector<16x32xf32>
    %c0_15 = arith.constant 0 : index
    %c0_16 = arith.constant 0 : index
    %43 = vector.load %arg5[%c0_15, %c0_16] : memref<32x128xf32, #tpu.memory_space<vmem>>, vector<1x32xf32>
    %44 = vector.broadcast %43 : vector<1x32xf32> to vector<16x32xf32>
    %45 = arith.mulf %42, %44 : vector<16x32xf32>
    %c1 = arith.constant 1 : index
    %c0_17 = arith.constant 0 : index
    %46 = vector.load %arg5[%c1, %c0_17] : memref<32x128xf32, #tpu.memory_space<vmem>>, vector<1x32xf32>
    %47 = vector.broadcast %46 : vector<1x32xf32> to vector<16x32xf32>
    %48 = arith.addf %45, %47 : vector<16x32xf32>
    %49 = arith.truncf %48 : vector<16x32xf32> to vector<16x32xbf16>
    %cst_18 = arith.constant dense<0.000000e+00> : vector<16x96xf32>
    %50 = tpu.matmul %49, %15, %cst_18 {dimension_numbers = #tpu.dot_dimension_numbers<[1], [0], [0], [1], [0, 0, 1, 1], [], []>} : vector<16x32xbf16>, vector<32x96xbf16>, vector<16x96xf32> -> vector<16x96xf32>
    %c2 = arith.constant 2 : index
    %c0_19 = arith.constant 0 : index
    %51 = vector.load %arg5[%c2, %c0_19] : memref<32x128xf32, #tpu.memory_space<vmem>>, vector<1x96xf32>
    %52 = vector.broadcast %51 : vector<1x96xf32> to vector<16x96xf32>
    %53 = arith.addf %50, %52 : vector<16x96xf32>
    %54 = vector.extract_strided_slice %53 {offsets = [0, 0], sizes = [16, 32], strides = [1, 1]} : vector<16x96xf32> to vector<16x32xf32>
    %55 = vector.extract_strided_slice %53 {offsets = [0, 32], sizes = [16, 32], strides = [1, 1]} : vector<16x96xf32> to vector<16x32xf32>
    %56 = vector.extract_strided_slice %53 {offsets = [0, 64], sizes = [16, 32], strides = [1, 1]} : vector<16x96xf32> to vector<16x32xf32>
    %c3 = arith.constant 3 : index
    %c0_20 = arith.constant 0 : index
    %57 = vector.load %arg5[%c3, %c0_20] : memref<32x128xf32, #tpu.memory_space<vmem>>, vector<1x32xf32>
    %58 = vector.shape_cast %57 : vector<1x32xf32> to vector<1x32xf32>
    %59 = vector.broadcast %58 : vector<1x32xf32> to vector<16x32xf32>
    %60 = vector.extract_strided_slice %54 {offsets = [0, 0], sizes = [16, 8], strides = [1, 1]} : vector<16x32xf32> to vector<16x8xf32>
    %cst_21 = arith.constant 0.353553385 : f32
    %61 = vector.broadcast %cst_21 : f32 to vector<16x8xf32>
    %62 = arith.mulf %60, %61 : vector<16x8xf32>
    %63 = vector.shape_cast %62 : vector<16x8xf32> to vector<2x8x8xf32>
    %64 = arith.truncf %63 : vector<2x8x8xf32> to vector<2x8x8xbf16>
    %65 = vector.extract_strided_slice %55 {offsets = [0, 0], sizes = [16, 8], strides = [1, 1]} : vector<16x32xf32> to vector<16x8xf32>
    %66 = vector.shape_cast %65 : vector<16x8xf32> to vector<2x8x8xf32>
    %67 = arith.truncf %66 : vector<2x8x8xf32> to vector<2x8x8xbf16>
    %68 = vector.extract_strided_slice %56 {offsets = [0, 0], sizes = [16, 8], strides = [1, 1]} : vector<16x32xf32> to vector<16x8xf32>
    %69 = vector.shape_cast %68 : vector<16x8xf32> to vector<2x8x8xf32>
    %70 = arith.truncf %69 : vector<2x8x8xf32> to vector<2x8x8xbf16>
    "tpu.trace_start"() <{level = 10 : i32, message = "bqd,bkd->bqk"}> : () -> ()
    %cst_22 = arith.constant dense<0.000000e+00> : vector<2x8x8xf32>
    %71 = tpu.matmul %64, %67, %cst_22 {dimension_numbers = #tpu.dot_dimension_numbers<[2], [2], [1], [1], [0, 0, 0, 1, 1, 1], [0], [0]>} : vector<2x8x8xbf16>, vector<2x8x8xbf16>, vector<2x8x8xf32> -> vector<2x8x8xf32>
    "tpu.trace_stop"() : () -> ()
    %72 = arith.addf %71, %12 : vector<2x8x8xf32>
    %cst_23 = arith.constant dense<0xFF800000> : vector<2x8xf32>
    %73 = vector.multi_reduction <maximumf>, %72, %cst_23 [2] : vector<2x8x8xf32> to vector<2x8xf32>
    %74 = vector.shape_cast %73 : vector<2x8xf32> to vector<2x8x1xf32>
    %75 = vector.broadcast %74 : vector<2x8x1xf32> to vector<2x8x8xf32>
    %76 = arith.subf %72, %75 : vector<2x8x8xf32>
    %77 = math.exp %76 : vector<2x8x8xf32>
    %cst_24 = arith.constant dense<0.000000e+00> : vector<2x8xf32>
    %78 = vector.multi_reduction <add>, %77, %cst_24 [2] : vector<2x8x8xf32> to vector<2x8xf32>
    %79 = vector.shape_cast %78 : vector<2x8xf32> to vector<2x8x1xf32>
    %80 = tpu.reciprocal %79 {approx = true} : vector<2x8x1xf32> -> vector<2x8x1xf32>
    %81 = vector.broadcast %80 : vector<2x8x1xf32> to vector<2x8x8xf32>
    %82 = arith.mulf %77, %81 : vector<2x8x8xf32>
    %83 = arith.truncf %82 : vector<2x8x8xf32> to vector<2x8x8xbf16>
    "tpu.trace_start"() <{level = 10 : i32, message = "bqk,bkd->bqd"}> : () -> ()
    %cst_25 = arith.constant dense<0.000000e+00> : vector<2x8x8xf32>
    %84 = tpu.matmul %83, %70, %cst_25 {dimension_numbers = #tpu.dot_dimension_numbers<[2], [1], [1], [2], [0, 0, 0, 1, 1, 2], [0], [0]>} : vector<2x8x8xbf16>, vector<2x8x8xbf16>, vector<2x8x8xf32> -> vector<2x8x8xf32>
    "tpu.trace_stop"() : () -> ()
    %85 = vector.shape_cast %84 : vector<2x8x8xf32> to vector<16x8xf32>
    %86 = vector.extract_strided_slice %16 {offsets = [0, 0], sizes = [8, 32], strides = [1, 1]} : vector<32x32xbf16> to vector<8x32xbf16>
    %87 = arith.truncf %85 : vector<16x8xf32> to vector<16x8xbf16>
    %cst_26 = arith.constant dense<0.000000e+00> : vector<16x32xf32>
    %88 = tpu.matmul %87, %86, %cst_26 {dimension_numbers = #tpu.dot_dimension_numbers<[1], [0], [0], [1], [0, 0, 1, 1], [], []>} : vector<16x8xbf16>, vector<8x32xbf16>, vector<16x32xf32> -> vector<16x32xf32>
    %89 = arith.addf %59, %88 : vector<16x32xf32>
    %90 = vector.extract_strided_slice %54 {offsets = [0, 8], sizes = [16, 8], strides = [1, 1]} : vector<16x32xf32> to vector<16x8xf32>
    %cst_27 = arith.constant 0.353553385 : f32
    %91 = vector.broadcast %cst_27 : f32 to vector<16x8xf32>
    %92 = arith.mulf %90, %91 : vector<16x8xf32>
    %93 = vector.shape_cast %92 : vector<16x8xf32> to vector<2x8x8xf32>
    %94 = arith.truncf %93 : vector<2x8x8xf32> to vector<2x8x8xbf16>
    %95 = vector.extract_strided_slice %55 {offsets = [0, 8], sizes = [16, 8], strides = [1, 1]} : vector<16x32xf32> to vector<16x8xf32>
    %96 = vector.shape_cast %95 : vector<16x8xf32> to vector<2x8x8xf32>
    %97 = arith.truncf %96 : vector<2x8x8xf32> to vector<2x8x8xbf16>
    %98 = vector.extract_strided_slice %56 {offsets = [0, 8], sizes = [16, 8], strides = [1, 1]} : vector<16x32xf32> to vector<16x8xf32>
    %99 = vector.shape_cast %98 : vector<16x8xf32> to vector<2x8x8xf32>
    %100 = arith.truncf %99 : vector<2x8x8xf32> to vector<2x8x8xbf16>
    "tpu.trace_start"() <{level = 10 : i32, message = "bqd,bkd->bqk"}> : () -> ()
    %cst_28 = arith.constant dense<0.000000e+00> : vector<2x8x8xf32>
    %101 = tpu.matmul %94, %97, %cst_28 {dimension_numbers = #tpu.dot_dimension_numbers<[2], [2], [1], [1], [0, 0, 0, 1, 1, 1], [0], [0]>} : vector<2x8x8xbf16>, vector<2x8x8xbf16>, vector<2x8x8xf32> -> vector<2x8x8xf32>
    "tpu.trace_stop"() : () -> ()
    %102 = arith.addf %101, %12 : vector<2x8x8xf32>
    %cst_29 = arith.constant dense<0xFF800000> : vector<2x8xf32>
    %103 = vector.multi_reduction <maximumf>, %102, %cst_29 [2] : vector<2x8x8xf32> to vector<2x8xf32>
    %104 = vector.shape_cast %103 : vector<2x8xf32> to vector<2x8x1xf32>
    %105 = vector.broadcast %104 : vector<2x8x1xf32> to vector<2x8x8xf32>
    %106 = arith.subf %102, %105 : vector<2x8x8xf32>
    %107 = math.exp %106 : vector<2x8x8xf32>
    %cst_30 = arith.constant dense<0.000000e+00> : vector<2x8xf32>
    %108 = vector.multi_reduction <add>, %107, %cst_30 [2] : vector<2x8x8xf32> to vector<2x8xf32>
    %109 = vector.shape_cast %108 : vector<2x8xf32> to vector<2x8x1xf32>
    %110 = tpu.reciprocal %109 {approx = true} : vector<2x8x1xf32> -> vector<2x8x1xf32>
    %111 = vector.broadcast %110 : vector<2x8x1xf32> to vector<2x8x8xf32>
    %112 = arith.mulf %107, %111 : vector<2x8x8xf32>
    %113 = arith.truncf %112 : vector<2x8x8xf32> to vector<2x8x8xbf16>
    "tpu.trace_start"() <{level = 10 : i32, message = "bqk,bkd->bqd"}> : () -> ()
    %cst_31 = arith.constant dense<0.000000e+00> : vector<2x8x8xf32>
    %114 = tpu.matmul %113, %100, %cst_31 {dimension_numbers = #tpu.dot_dimension_numbers<[2], [1], [1], [2], [0, 0, 0, 1, 1, 2], [0], [0]>} : vector<2x8x8xbf16>, vector<2x8x8xbf16>, vector<2x8x8xf32> -> vector<2x8x8xf32>
    "tpu.trace_stop"() : () -> ()
    %115 = vector.shape_cast %114 : vector<2x8x8xf32> to vector<16x8xf32>
    %116 = vector.extract_strided_slice %16 {offsets = [8, 0], sizes = [8, 32], strides = [1, 1]} : vector<32x32xbf16> to vector<8x32xbf16>
    %117 = arith.truncf %115 : vector<16x8xf32> to vector<16x8xbf16>
    %cst_32 = arith.constant dense<0.000000e+00> : vector<16x32xf32>
    %118 = tpu.matmul %117, %116, %cst_32 {dimension_numbers = #tpu.dot_dimension_numbers<[1], [0], [0], [1], [0, 0, 1, 1], [], []>} : vector<16x8xbf16>, vector<8x32xbf16>, vector<16x32xf32> -> vector<16x32xf32>
    %119 = arith.addf %89, %118 : vector<16x32xf32>
    %120 = vector.extract_strided_slice %54 {offsets = [0, 16], sizes = [16, 8], strides = [1, 1]} : vector<16x32xf32> to vector<16x8xf32>
    %cst_33 = arith.constant 0.353553385 : f32
    %121 = vector.broadcast %cst_33 : f32 to vector<16x8xf32>
    %122 = arith.mulf %120, %121 : vector<16x8xf32>
    %123 = vector.shape_cast %122 : vector<16x8xf32> to vector<2x8x8xf32>
    %124 = arith.truncf %123 : vector<2x8x8xf32> to vector<2x8x8xbf16>
    %125 = vector.extract_strided_slice %55 {offsets = [0, 16], sizes = [16, 8], strides = [1, 1]} : vector<16x32xf32> to vector<16x8xf32>
    %126 = vector.shape_cast %125 : vector<16x8xf32> to vector<2x8x8xf32>
    %127 = arith.truncf %126 : vector<2x8x8xf32> to vector<2x8x8xbf16>
    %128 = vector.extract_strided_slice %56 {offsets = [0, 16], sizes = [16, 8], strides = [1, 1]} : vector<16x32xf32> to vector<16x8xf32>
    %129 = vector.shape_cast %128 : vector<16x8xf32> to vector<2x8x8xf32>
    %130 = arith.truncf %129 : vector<2x8x8xf32> to vector<2x8x8xbf16>
    "tpu.trace_start"() <{level = 10 : i32, message = "bqd,bkd->bqk"}> : () -> ()
    %cst_34 = arith.constant dense<0.000000e+00> : vector<2x8x8xf32>
    %131 = tpu.matmul %124, %127, %cst_34 {dimension_numbers = #tpu.dot_dimension_numbers<[2], [2], [1], [1], [0, 0, 0, 1, 1, 1], [0], [0]>} : vector<2x8x8xbf16>, vector<2x8x8xbf16>, vector<2x8x8xf32> -> vector<2x8x8xf32>
    "tpu.trace_stop"() : () -> ()
    %132 = arith.addf %131, %12 : vector<2x8x8xf32>
    %cst_35 = arith.constant dense<0xFF800000> : vector<2x8xf32>
    %133 = vector.multi_reduction <maximumf>, %132, %cst_35 [2] : vector<2x8x8xf32> to vector<2x8xf32>
    %134 = vector.shape_cast %133 : vector<2x8xf32> to vector<2x8x1xf32>
    %135 = vector.broadcast %134 : vector<2x8x1xf32> to vector<2x8x8xf32>
    %136 = arith.subf %132, %135 : vector<2x8x8xf32>
    %137 = math.exp %136 : vector<2x8x8xf32>
    %cst_36 = arith.constant dense<0.000000e+00> : vector<2x8xf32>
    %138 = vector.multi_reduction <add>, %137, %cst_36 [2] : vector<2x8x8xf32> to vector<2x8xf32>
    %139 = vector.shape_cast %138 : vector<2x8xf32> to vector<2x8x1xf32>
    %140 = tpu.reciprocal %139 {approx = true} : vector<2x8x1xf32> -> vector<2x8x1xf32>
    %141 = vector.broadcast %140 : vector<2x8x1xf32> to vector<2x8x8xf32>
    %142 = arith.mulf %137, %141 : vector<2x8x8xf32>
    %143 = arith.truncf %142 : vector<2x8x8xf32> to vector<2x8x8xbf16>
    "tpu.trace_start"() <{level = 10 : i32, message = "bqk,bkd->bqd"}> : () -> ()
    %cst_37 = arith.constant dense<0.000000e+00> : vector<2x8x8xf32>
    %144 = tpu.matmul %143, %130, %cst_37 {dimension_numbers = #tpu.dot_dimension_numbers<[2], [1], [1], [2], [0, 0, 0, 1, 1, 2], [0], [0]>} : vector<2x8x8xbf16>, vector<2x8x8xbf16>, vector<2x8x8xf32> -> vector<2x8x8xf32>
    "tpu.trace_stop"() : () -> ()
    %145 = vector.shape_cast %144 : vector<2x8x8xf32> to vector<16x8xf32>
    %146 = vector.extract_strided_slice %16 {offsets = [16, 0], sizes = [8, 32], strides = [1, 1]} : vector<32x32xbf16> to vector<8x32xbf16>
    %147 = arith.truncf %145 : vector<16x8xf32> to vector<16x8xbf16>
    %cst_38 = arith.constant dense<0.000000e+00> : vector<16x32xf32>
    %148 = tpu.matmul %147, %146, %cst_38 {dimension_numbers = #tpu.dot_dimension_numbers<[1], [0], [0], [1], [0, 0, 1, 1], [], []>} : vector<16x8xbf16>, vector<8x32xbf16>, vector<16x32xf32> -> vector<16x32xf32>
    %149 = arith.addf %119, %148 : vector<16x32xf32>
    %150 = vector.extract_strided_slice %54 {offsets = [0, 24], sizes = [16, 8], strides = [1, 1]} : vector<16x32xf32> to vector<16x8xf32>
    %cst_39 = arith.constant 0.353553385 : f32
    %151 = vector.broadcast %cst_39 : f32 to vector<16x8xf32>
    %152 = arith.mulf %150, %151 : vector<16x8xf32>
    %153 = vector.shape_cast %152 : vector<16x8xf32> to vector<2x8x8xf32>
    %154 = arith.truncf %153 : vector<2x8x8xf32> to vector<2x8x8xbf16>
    %155 = vector.extract_strided_slice %55 {offsets = [0, 24], sizes = [16, 8], strides = [1, 1]} : vector<16x32xf32> to vector<16x8xf32>
    %156 = vector.shape_cast %155 : vector<16x8xf32> to vector<2x8x8xf32>
    %157 = arith.truncf %156 : vector<2x8x8xf32> to vector<2x8x8xbf16>
    %158 = vector.extract_strided_slice %56 {offsets = [0, 24], sizes = [16, 8], strides = [1, 1]} : vector<16x32xf32> to vector<16x8xf32>
    %159 = vector.shape_cast %158 : vector<16x8xf32> to vector<2x8x8xf32>
    %160 = arith.truncf %159 : vector<2x8x8xf32> to vector<2x8x8xbf16>
    "tpu.trace_start"() <{level = 10 : i32, message = "bqd,bkd->bqk"}> : () -> ()
    %cst_40 = arith.constant dense<0.000000e+00> : vector<2x8x8xf32>
    %161 = tpu.matmul %154, %157, %cst_40 {dimension_numbers = #tpu.dot_dimension_numbers<[2], [2], [1], [1], [0, 0, 0, 1, 1, 1], [0], [0]>} : vector<2x8x8xbf16>, vector<2x8x8xbf16>, vector<2x8x8xf32> -> vector<2x8x8xf32>
    "tpu.trace_stop"() : () -> ()
    %162 = arith.addf %161, %12 : vector<2x8x8xf32>
    %cst_41 = arith.constant dense<0xFF800000> : vector<2x8xf32>
    %163 = vector.multi_reduction <maximumf>, %162, %cst_41 [2] : vector<2x8x8xf32> to vector<2x8xf32>
    %164 = vector.shape_cast %163 : vector<2x8xf32> to vector<2x8x1xf32>
    %165 = vector.broadcast %164 : vector<2x8x1xf32> to vector<2x8x8xf32>
    %166 = arith.subf %162, %165 : vector<2x8x8xf32>
    %167 = math.exp %166 : vector<2x8x8xf32>
    %cst_42 = arith.constant dense<0.000000e+00> : vector<2x8xf32>
    %168 = vector.multi_reduction <add>, %167, %cst_42 [2] : vector<2x8x8xf32> to vector<2x8xf32>
    %169 = vector.shape_cast %168 : vector<2x8xf32> to vector<2x8x1xf32>
    %170 = tpu.reciprocal %169 {approx = true} : vector<2x8x1xf32> -> vector<2x8x1xf32>
    %171 = vector.broadcast %170 : vector<2x8x1xf32> to vector<2x8x8xf32>
    %172 = arith.mulf %167, %171 : vector<2x8x8xf32>
    %173 = arith.truncf %172 : vector<2x8x8xf32> to vector<2x8x8xbf16>
    "tpu.trace_start"() <{level = 10 : i32, message = "bqk,bkd->bqd"}> : () -> ()
    %cst_43 = arith.constant dense<0.000000e+00> : vector<2x8x8xf32>
    %174 = tpu.matmul %173, %160, %cst_43 {dimension_numbers = #tpu.dot_dimension_numbers<[2], [1], [1], [2], [0, 0, 0, 1, 1, 2], [0], [0]>} : vector<2x8x8xbf16>, vector<2x8x8xbf16>, vector<2x8x8xf32> -> vector<2x8x8xf32>
    "tpu.trace_stop"() : () -> ()
    %175 = vector.shape_cast %174 : vector<2x8x8xf32> to vector<16x8xf32>
    %176 = vector.extract_strided_slice %16 {offsets = [24, 0], sizes = [8, 32], strides = [1, 1]} : vector<32x32xbf16> to vector<8x32xbf16>
    %177 = arith.truncf %175 : vector<16x8xf32> to vector<16x8xbf16>
    %cst_44 = arith.constant dense<0.000000e+00> : vector<16x32xf32>
    %178 = tpu.matmul %177, %176, %cst_44 {dimension_numbers = #tpu.dot_dimension_numbers<[1], [0], [0], [1], [0, 0, 1, 1], [], []>} : vector<16x8xbf16>, vector<8x32xbf16>, vector<16x32xf32> -> vector<16x32xf32>
    %179 = arith.addf %149, %178 : vector<16x32xf32>
    %180 = arith.addf %0, %179 : vector<16x32xf32>
    %cst_45 = arith.constant dense<0.000000e+00> : vector<16xf32>
    %181 = vector.multi_reduction <add>, %180, %cst_45 [1] : vector<16x32xf32> to vector<16xf32>
    %182 = vector.shape_cast %181 : vector<16xf32> to vector<16x1xf32>
    %cst_46 = arith.constant 3.200000e+01 : f32
    %183 = vector.broadcast %cst_46 : f32 to vector<16x1xf32>
    %184 = arith.divf %182, %183 : vector<16x1xf32>
    %185 = vector.broadcast %184 : vector<16x1xf32> to vector<16x32xf32>
    %186 = arith.subf %180, %185 : vector<16x32xf32>
    %187 = vector.broadcast %184 : vector<16x1xf32> to vector<16x32xf32>
    %188 = arith.subf %180, %187 : vector<16x32xf32>
    %189 = arith.mulf %186, %188 : vector<16x32xf32>
    %cst_47 = arith.constant dense<0.000000e+00> : vector<16xf32>
    %190 = vector.multi_reduction <add>, %189, %cst_47 [1] : vector<16x32xf32> to vector<16xf32>
    %191 = vector.shape_cast %190 : vector<16xf32> to vector<16x1xf32>
    %cst_48 = arith.constant 3.200000e+01 : f32
    %192 = vector.broadcast %cst_48 : f32 to vector<16x1xf32>
    %193 = arith.divf %191, %192 : vector<16x1xf32>
    %194 = vector.broadcast %184 : vector<16x1xf32> to vector<16x32xf32>
    %195 = arith.subf %180, %194 : vector<16x32xf32>
    %cst_49 = arith.constant 9.99999974E-6 : f32
    %196 = vector.broadcast %cst_49 : f32 to vector<16x1xf32>
    %197 = arith.addf %193, %196 : vector<16x1xf32>
    %198 = math.rsqrt %197 : vector<16x1xf32>
    %199 = vector.broadcast %198 : vector<16x1xf32> to vector<16x32xf32>
    %200 = arith.mulf %195, %199 : vector<16x32xf32>
    %c4 = arith.constant 4 : index
    %c0_50 = arith.constant 0 : index
    %201 = vector.load %arg5[%c4, %c0_50] : memref<32x128xf32, #tpu.memory_space<vmem>>, vector<1x32xf32>
    %202 = vector.broadcast %201 : vector<1x32xf32> to vector<16x32xf32>
    %203 = arith.mulf %200, %202 : vector<16x32xf32>
    %c5 = arith.constant 5 : index
    %c0_51 = arith.constant 0 : index
    %204 = vector.load %arg5[%c5, %c0_51] : memref<32x128xf32, #tpu.memory_space<vmem>>, vector<1x32xf32>
    %205 = vector.broadcast %204 : vector<1x32xf32> to vector<16x32xf32>
    %206 = arith.addf %203, %205 : vector<16x32xf32>
    %207 = arith.truncf %206 : vector<16x32xf32> to vector<16x32xbf16>
    %cst_52 = arith.constant dense<0.000000e+00> : vector<16x32xf32>
    %208 = tpu.matmul %207, %17, %cst_52 {dimension_numbers = #tpu.dot_dimension_numbers<[1], [0], [0], [1], [0, 0, 1, 1], [], []>} : vector<16x32xbf16>, vector<32x32xbf16>, vector<16x32xf32> -> vector<16x32xf32>
    %c6 = arith.constant 6 : index
    %c0_53 = arith.constant 0 : index
    %209 = vector.load %arg5[%c6, %c0_53] : memref<32x128xf32, #tpu.memory_space<vmem>>, vector<1x32xf32>
    %210 = vector.broadcast %209 : vector<1x32xf32> to vector<16x32xf32>
    %211 = arith.addf %208, %210 : vector<16x32xf32>
    %212 = arith.truncf %1 : vector<16x32xf32> to vector<16x32xbf16>
    %cst_54 = arith.constant dense<0.000000e+00> : vector<16x64xf32>
    %213 = tpu.matmul %212, %18, %cst_54 {dimension_numbers = #tpu.dot_dimension_numbers<[1], [0], [0], [1], [0, 0, 1, 1], [], []>} : vector<16x32xbf16>, vector<32x64xbf16>, vector<16x64xf32> -> vector<16x64xf32>
    %c7 = arith.constant 7 : index
    %c0_55 = arith.constant 0 : index
    %214 = vector.load %arg5[%c7, %c0_55] : memref<32x128xf32, #tpu.memory_space<vmem>>, vector<1x64xf32>
    %215 = vector.broadcast %214 : vector<1x64xf32> to vector<16x64xf32>
    %216 = arith.addf %213, %215 : vector<16x64xf32>
    %217 = vector.extract_strided_slice %216 {offsets = [0, 0], sizes = [16, 32], strides = [1, 1]} : vector<16x64xf32> to vector<16x32xf32>
    %218 = vector.extract_strided_slice %216 {offsets = [0, 32], sizes = [16, 32], strides = [1, 1]} : vector<16x64xf32> to vector<16x32xf32>
    %c8 = arith.constant 8 : index
    %c0_56 = arith.constant 0 : index
    %219 = vector.load %arg5[%c8, %c0_56] : memref<32x128xf32, #tpu.memory_space<vmem>>, vector<1x32xf32>
    %220 = vector.shape_cast %219 : vector<1x32xf32> to vector<1x32xf32>
    %221 = vector.broadcast %220 : vector<1x32xf32> to vector<16x32xf32>
    %222 = vector.extract_strided_slice %211 {offsets = [0, 0], sizes = [16, 8], strides = [1, 1]} : vector<16x32xf32> to vector<16x8xf32>
    %cst_57 = arith.constant 0.353553385 : f32
    %223 = vector.broadcast %cst_57 : f32 to vector<16x8xf32>
    %224 = arith.mulf %222, %223 : vector<16x8xf32>
    %225 = vector.shape_cast %224 : vector<16x8xf32> to vector<2x8x8xf32>
    %226 = arith.truncf %225 : vector<2x8x8xf32> to vector<2x8x8xbf16>
    %227 = vector.extract_strided_slice %217 {offsets = [0, 0], sizes = [16, 8], strides = [1, 1]} : vector<16x32xf32> to vector<16x8xf32>
    %228 = vector.shape_cast %227 : vector<16x8xf32> to vector<2x8x8xf32>
    %229 = arith.truncf %228 : vector<2x8x8xf32> to vector<2x8x8xbf16>
    %230 = vector.extract_strided_slice %218 {offsets = [0, 0], sizes = [16, 8], strides = [1, 1]} : vector<16x32xf32> to vector<16x8xf32>
    %231 = vector.shape_cast %230 : vector<16x8xf32> to vector<2x8x8xf32>
    %232 = arith.truncf %231 : vector<2x8x8xf32> to vector<2x8x8xbf16>
    "tpu.trace_start"() <{level = 10 : i32, message = "bqd,bkd->bqk"}> : () -> ()
    %cst_58 = arith.constant dense<0.000000e+00> : vector<2x8x8xf32>
    %233 = tpu.matmul %226, %229, %cst_58 {dimension_numbers = #tpu.dot_dimension_numbers<[2], [2], [1], [1], [0, 0, 0, 1, 1, 1], [0], [0]>} : vector<2x8x8xbf16>, vector<2x8x8xbf16>, vector<2x8x8xf32> -> vector<2x8x8xf32>
    "tpu.trace_stop"() : () -> ()
    %cst_59 = arith.constant dense<0xFF800000> : vector<2x8xf32>
    %234 = vector.multi_reduction <maximumf>, %233, %cst_59 [2] : vector<2x8x8xf32> to vector<2x8xf32>
    %235 = vector.shape_cast %234 : vector<2x8xf32> to vector<2x8x1xf32>
    %236 = vector.broadcast %235 : vector<2x8x1xf32> to vector<2x8x8xf32>
    %237 = arith.subf %233, %236 : vector<2x8x8xf32>
    %238 = math.exp %237 : vector<2x8x8xf32>
    %cst_60 = arith.constant dense<0.000000e+00> : vector<2x8xf32>
    %239 = vector.multi_reduction <add>, %238, %cst_60 [2] : vector<2x8x8xf32> to vector<2x8xf32>
    %240 = vector.shape_cast %239 : vector<2x8xf32> to vector<2x8x1xf32>
    %241 = tpu.reciprocal %240 {approx = true} : vector<2x8x1xf32> -> vector<2x8x1xf32>
    %242 = vector.broadcast %241 : vector<2x8x1xf32> to vector<2x8x8xf32>
    %243 = arith.mulf %238, %242 : vector<2x8x8xf32>
    %244 = arith.truncf %243 : vector<2x8x8xf32> to vector<2x8x8xbf16>
    "tpu.trace_start"() <{level = 10 : i32, message = "bqk,bkd->bqd"}> : () -> ()
    %cst_61 = arith.constant dense<0.000000e+00> : vector<2x8x8xf32>
    %245 = tpu.matmul %244, %232, %cst_61 {dimension_numbers = #tpu.dot_dimension_numbers<[2], [1], [1], [2], [0, 0, 0, 1, 1, 2], [0], [0]>} : vector<2x8x8xbf16>, vector<2x8x8xbf16>, vector<2x8x8xf32> -> vector<2x8x8xf32>
    "tpu.trace_stop"() : () -> ()
    %246 = vector.shape_cast %245 : vector<2x8x8xf32> to vector<16x8xf32>
    %247 = vector.extract_strided_slice %19 {offsets = [0, 0], sizes = [8, 32], strides = [1, 1]} : vector<32x32xbf16> to vector<8x32xbf16>
    %248 = arith.truncf %246 : vector<16x8xf32> to vector<16x8xbf16>
    %cst_62 = arith.constant dense<0.000000e+00> : vector<16x32xf32>
    %249 = tpu.matmul %248, %247, %cst_62 {dimension_numbers = #tpu.dot_dimension_numbers<[1], [0], [0], [1], [0, 0, 1, 1], [], []>} : vector<16x8xbf16>, vector<8x32xbf16>, vector<16x32xf32> -> vector<16x32xf32>
    %250 = arith.addf %221, %249 : vector<16x32xf32>
    %251 = vector.extract_strided_slice %211 {offsets = [0, 8], sizes = [16, 8], strides = [1, 1]} : vector<16x32xf32> to vector<16x8xf32>
    %cst_63 = arith.constant 0.353553385 : f32
    %252 = vector.broadcast %cst_63 : f32 to vector<16x8xf32>
    %253 = arith.mulf %251, %252 : vector<16x8xf32>
    %254 = vector.shape_cast %253 : vector<16x8xf32> to vector<2x8x8xf32>
    %255 = arith.truncf %254 : vector<2x8x8xf32> to vector<2x8x8xbf16>
    %256 = vector.extract_strided_slice %217 {offsets = [0, 8], sizes = [16, 8], strides = [1, 1]} : vector<16x32xf32> to vector<16x8xf32>
    %257 = vector.shape_cast %256 : vector<16x8xf32> to vector<2x8x8xf32>
    %258 = arith.truncf %257 : vector<2x8x8xf32> to vector<2x8x8xbf16>
    %259 = vector.extract_strided_slice %218 {offsets = [0, 8], sizes = [16, 8], strides = [1, 1]} : vector<16x32xf32> to vector<16x8xf32>
    %260 = vector.shape_cast %259 : vector<16x8xf32> to vector<2x8x8xf32>
    %261 = arith.truncf %260 : vector<2x8x8xf32> to vector<2x8x8xbf16>
    "tpu.trace_start"() <{level = 10 : i32, message = "bqd,bkd->bqk"}> : () -> ()
    %cst_64 = arith.constant dense<0.000000e+00> : vector<2x8x8xf32>
    %262 = tpu.matmul %255, %258, %cst_64 {dimension_numbers = #tpu.dot_dimension_numbers<[2], [2], [1], [1], [0, 0, 0, 1, 1, 1], [0], [0]>} : vector<2x8x8xbf16>, vector<2x8x8xbf16>, vector<2x8x8xf32> -> vector<2x8x8xf32>
    "tpu.trace_stop"() : () -> ()
    %cst_65 = arith.constant dense<0xFF800000> : vector<2x8xf32>
    %263 = vector.multi_reduction <maximumf>, %262, %cst_65 [2] : vector<2x8x8xf32> to vector<2x8xf32>
    %264 = vector.shape_cast %263 : vector<2x8xf32> to vector<2x8x1xf32>
    %265 = vector.broadcast %264 : vector<2x8x1xf32> to vector<2x8x8xf32>
    %266 = arith.subf %262, %265 : vector<2x8x8xf32>
    %267 = math.exp %266 : vector<2x8x8xf32>
    %cst_66 = arith.constant dense<0.000000e+00> : vector<2x8xf32>
    %268 = vector.multi_reduction <add>, %267, %cst_66 [2] : vector<2x8x8xf32> to vector<2x8xf32>
    %269 = vector.shape_cast %268 : vector<2x8xf32> to vector<2x8x1xf32>
    %270 = tpu.reciprocal %269 {approx = true} : vector<2x8x1xf32> -> vector<2x8x1xf32>
    %271 = vector.broadcast %270 : vector<2x8x1xf32> to vector<2x8x8xf32>
    %272 = arith.mulf %267, %271 : vector<2x8x8xf32>
    %273 = arith.truncf %272 : vector<2x8x8xf32> to vector<2x8x8xbf16>
    "tpu.trace_start"() <{level = 10 : i32, message = "bqk,bkd->bqd"}> : () -> ()
    %cst_67 = arith.constant dense<0.000000e+00> : vector<2x8x8xf32>
    %274 = tpu.matmul %273, %261, %cst_67 {dimension_numbers = #tpu.dot_dimension_numbers<[2], [1], [1], [2], [0, 0, 0, 1, 1, 2], [0], [0]>} : vector<2x8x8xbf16>, vector<2x8x8xbf16>, vector<2x8x8xf32> -> vector<2x8x8xf32>
    "tpu.trace_stop"() : () -> ()
    %275 = vector.shape_cast %274 : vector<2x8x8xf32> to vector<16x8xf32>
    %276 = vector.extract_strided_slice %19 {offsets = [8, 0], sizes = [8, 32], strides = [1, 1]} : vector<32x32xbf16> to vector<8x32xbf16>
    %277 = arith.truncf %275 : vector<16x8xf32> to vector<16x8xbf16>
    %cst_68 = arith.constant dense<0.000000e+00> : vector<16x32xf32>
    %278 = tpu.matmul %277, %276, %cst_68 {dimension_numbers = #tpu.dot_dimension_numbers<[1], [0], [0], [1], [0, 0, 1, 1], [], []>} : vector<16x8xbf16>, vector<8x32xbf16>, vector<16x32xf32> -> vector<16x32xf32>
    %279 = arith.addf %250, %278 : vector<16x32xf32>
    %280 = vector.extract_strided_slice %211 {offsets = [0, 16], sizes = [16, 8], strides = [1, 1]} : vector<16x32xf32> to vector<16x8xf32>
    %cst_69 = arith.constant 0.353553385 : f32
    %281 = vector.broadcast %cst_69 : f32 to vector<16x8xf32>
    %282 = arith.mulf %280, %281 : vector<16x8xf32>
    %283 = vector.shape_cast %282 : vector<16x8xf32> to vector<2x8x8xf32>
    %284 = arith.truncf %283 : vector<2x8x8xf32> to vector<2x8x8xbf16>
    %285 = vector.extract_strided_slice %217 {offsets = [0, 16], sizes = [16, 8], strides = [1, 1]} : vector<16x32xf32> to vector<16x8xf32>
    %286 = vector.shape_cast %285 : vector<16x8xf32> to vector<2x8x8xf32>
    %287 = arith.truncf %286 : vector<2x8x8xf32> to vector<2x8x8xbf16>
    %288 = vector.extract_strided_slice %218 {offsets = [0, 16], sizes = [16, 8], strides = [1, 1]} : vector<16x32xf32> to vector<16x8xf32>
    %289 = vector.shape_cast %288 : vector<16x8xf32> to vector<2x8x8xf32>
    %290 = arith.truncf %289 : vector<2x8x8xf32> to vector<2x8x8xbf16>
    "tpu.trace_start"() <{level = 10 : i32, message = "bqd,bkd->bqk"}> : () -> ()
    %cst_70 = arith.constant dense<0.000000e+00> : vector<2x8x8xf32>
    %291 = tpu.matmul %284, %287, %cst_70 {dimension_numbers = #tpu.dot_dimension_numbers<[2], [2], [1], [1], [0, 0, 0, 1, 1, 1], [0], [0]>} : vector<2x8x8xbf16>, vector<2x8x8xbf16>, vector<2x8x8xf32> -> vector<2x8x8xf32>
    "tpu.trace_stop"() : () -> ()
    %cst_71 = arith.constant dense<0xFF800000> : vector<2x8xf32>
    %292 = vector.multi_reduction <maximumf>, %291, %cst_71 [2] : vector<2x8x8xf32> to vector<2x8xf32>
    %293 = vector.shape_cast %292 : vector<2x8xf32> to vector<2x8x1xf32>
    %294 = vector.broadcast %293 : vector<2x8x1xf32> to vector<2x8x8xf32>
    %295 = arith.subf %291, %294 : vector<2x8x8xf32>
    %296 = math.exp %295 : vector<2x8x8xf32>
    %cst_72 = arith.constant dense<0.000000e+00> : vector<2x8xf32>
    %297 = vector.multi_reduction <add>, %296, %cst_72 [2] : vector<2x8x8xf32> to vector<2x8xf32>
    %298 = vector.shape_cast %297 : vector<2x8xf32> to vector<2x8x1xf32>
    %299 = tpu.reciprocal %298 {approx = true} : vector<2x8x1xf32> -> vector<2x8x1xf32>
    %300 = vector.broadcast %299 : vector<2x8x1xf32> to vector<2x8x8xf32>
    %301 = arith.mulf %296, %300 : vector<2x8x8xf32>
    %302 = arith.truncf %301 : vector<2x8x8xf32> to vector<2x8x8xbf16>
    "tpu.trace_start"() <{level = 10 : i32, message = "bqk,bkd->bqd"}> : () -> ()
    %cst_73 = arith.constant dense<0.000000e+00> : vector<2x8x8xf32>
    %303 = tpu.matmul %302, %290, %cst_73 {dimension_numbers = #tpu.dot_dimension_numbers<[2], [1], [1], [2], [0, 0, 0, 1, 1, 2], [0], [0]>} : vector<2x8x8xbf16>, vector<2x8x8xbf16>, vector<2x8x8xf32> -> vector<2x8x8xf32>
    "tpu.trace_stop"() : () -> ()
    %304 = vector.shape_cast %303 : vector<2x8x8xf32> to vector<16x8xf32>
    %305 = vector.extract_strided_slice %19 {offsets = [16, 0], sizes = [8, 32], strides = [1, 1]} : vector<32x32xbf16> to vector<8x32xbf16>
    %306 = arith.truncf %304 : vector<16x8xf32> to vector<16x8xbf16>
    %cst_74 = arith.constant dense<0.000000e+00> : vector<16x32xf32>
    %307 = tpu.matmul %306, %305, %cst_74 {dimension_numbers = #tpu.dot_dimension_numbers<[1], [0], [0], [1], [0, 0, 1, 1], [], []>} : vector<16x8xbf16>, vector<8x32xbf16>, vector<16x32xf32> -> vector<16x32xf32>
    %308 = arith.addf %279, %307 : vector<16x32xf32>
    %309 = vector.extract_strided_slice %211 {offsets = [0, 24], sizes = [16, 8], strides = [1, 1]} : vector<16x32xf32> to vector<16x8xf32>
    %cst_75 = arith.constant 0.353553385 : f32
    %310 = vector.broadcast %cst_75 : f32 to vector<16x8xf32>
    %311 = arith.mulf %309, %310 : vector<16x8xf32>
    %312 = vector.shape_cast %311 : vector<16x8xf32> to vector<2x8x8xf32>
    %313 = arith.truncf %312 : vector<2x8x8xf32> to vector<2x8x8xbf16>
    %314 = vector.extract_strided_slice %217 {offsets = [0, 24], sizes = [16, 8], strides = [1, 1]} : vector<16x32xf32> to vector<16x8xf32>
    %315 = vector.shape_cast %314 : vector<16x8xf32> to vector<2x8x8xf32>
    %316 = arith.truncf %315 : vector<2x8x8xf32> to vector<2x8x8xbf16>
    %317 = vector.extract_strided_slice %218 {offsets = [0, 24], sizes = [16, 8], strides = [1, 1]} : vector<16x32xf32> to vector<16x8xf32>
    %318 = vector.shape_cast %317 : vector<16x8xf32> to vector<2x8x8xf32>
    %319 = arith.truncf %318 : vector<2x8x8xf32> to vector<2x8x8xbf16>
    "tpu.trace_start"() <{level = 10 : i32, message = "bqd,bkd->bqk"}> : () -> ()
    %cst_76 = arith.constant dense<0.000000e+00> : vector<2x8x8xf32>
    %320 = tpu.matmul %313, %316, %cst_76 {dimension_numbers = #tpu.dot_dimension_numbers<[2], [2], [1], [1], [0, 0, 0, 1, 1, 1], [0], [0]>} : vector<2x8x8xbf16>, vector<2x8x8xbf16>, vector<2x8x8xf32> -> vector<2x8x8xf32>
    "tpu.trace_stop"() : () -> ()
    %cst_77 = arith.constant dense<0xFF800000> : vector<2x8xf32>
    %321 = vector.multi_reduction <maximumf>, %320, %cst_77 [2] : vector<2x8x8xf32> to vector<2x8xf32>
    %322 = vector.shape_cast %321 : vector<2x8xf32> to vector<2x8x1xf32>
    %323 = vector.broadcast %322 : vector<2x8x1xf32> to vector<2x8x8xf32>
    %324 = arith.subf %320, %323 : vector<2x8x8xf32>
    %325 = math.exp %324 : vector<2x8x8xf32>
    %cst_78 = arith.constant dense<0.000000e+00> : vector<2x8xf32>
    %326 = vector.multi_reduction <add>, %325, %cst_78 [2] : vector<2x8x8xf32> to vector<2x8xf32>
    %327 = vector.shape_cast %326 : vector<2x8xf32> to vector<2x8x1xf32>
    %328 = tpu.reciprocal %327 {approx = true} : vector<2x8x1xf32> -> vector<2x8x1xf32>
    %329 = vector.broadcast %328 : vector<2x8x1xf32> to vector<2x8x8xf32>
    %330 = arith.mulf %325, %329 : vector<2x8x8xf32>
    %331 = arith.truncf %330 : vector<2x8x8xf32> to vector<2x8x8xbf16>
    "tpu.trace_start"() <{level = 10 : i32, message = "bqk,bkd->bqd"}> : () -> ()
    %cst_79 = arith.constant dense<0.000000e+00> : vector<2x8x8xf32>
    %332 = tpu.matmul %331, %319, %cst_79 {dimension_numbers = #tpu.dot_dimension_numbers<[2], [1], [1], [2], [0, 0, 0, 1, 1, 2], [0], [0]>} : vector<2x8x8xbf16>, vector<2x8x8xbf16>, vector<2x8x8xf32> -> vector<2x8x8xf32>
    "tpu.trace_stop"() : () -> ()
    %333 = vector.shape_cast %332 : vector<2x8x8xf32> to vector<16x8xf32>
    %334 = vector.extract_strided_slice %19 {offsets = [24, 0], sizes = [8, 32], strides = [1, 1]} : vector<32x32xbf16> to vector<8x32xbf16>
    %335 = arith.truncf %333 : vector<16x8xf32> to vector<16x8xbf16>
    %cst_80 = arith.constant dense<0.000000e+00> : vector<16x32xf32>
    %336 = tpu.matmul %335, %334, %cst_80 {dimension_numbers = #tpu.dot_dimension_numbers<[1], [0], [0], [1], [0, 0, 1, 1], [], []>} : vector<16x8xbf16>, vector<8x32xbf16>, vector<16x32xf32> -> vector<16x32xf32>
    %337 = arith.addf %308, %336 : vector<16x32xf32>
    %338 = arith.addf %180, %337 : vector<16x32xf32>
    %cst_81 = arith.constant dense<0.000000e+00> : vector<16xf32>
    %339 = vector.multi_reduction <add>, %338, %cst_81 [1] : vector<16x32xf32> to vector<16xf32>
    %340 = vector.shape_cast %339 : vector<16xf32> to vector<16x1xf32>
    %cst_82 = arith.constant 3.200000e+01 : f32
    %341 = vector.broadcast %cst_82 : f32 to vector<16x1xf32>
    %342 = arith.divf %340, %341 : vector<16x1xf32>
    %343 = vector.broadcast %342 : vector<16x1xf32> to vector<16x32xf32>
    %344 = arith.subf %338, %343 : vector<16x32xf32>
    %345 = vector.broadcast %342 : vector<16x1xf32> to vector<16x32xf32>
    %346 = arith.subf %338, %345 : vector<16x32xf32>
    %347 = arith.mulf %344, %346 : vector<16x32xf32>
    %cst_83 = arith.constant dense<0.000000e+00> : vector<16xf32>
    %348 = vector.multi_reduction <add>, %347, %cst_83 [1] : vector<16x32xf32> to vector<16xf32>
    %349 = vector.shape_cast %348 : vector<16xf32> to vector<16x1xf32>
    %cst_84 = arith.constant 3.200000e+01 : f32
    %350 = vector.broadcast %cst_84 : f32 to vector<16x1xf32>
    %351 = arith.divf %349, %350 : vector<16x1xf32>
    %352 = vector.broadcast %342 : vector<16x1xf32> to vector<16x32xf32>
    %353 = arith.subf %338, %352 : vector<16x32xf32>
    %cst_85 = arith.constant 9.99999974E-6 : f32
    %354 = vector.broadcast %cst_85 : f32 to vector<16x1xf32>
    %355 = arith.addf %351, %354 : vector<16x1xf32>
    %356 = math.rsqrt %355 : vector<16x1xf32>
    %357 = vector.broadcast %356 : vector<16x1xf32> to vector<16x32xf32>
    %358 = arith.mulf %353, %357 : vector<16x32xf32>
    %c9 = arith.constant 9 : index
    %c0_86 = arith.constant 0 : index
    %359 = vector.load %arg5[%c9, %c0_86] : memref<32x128xf32, #tpu.memory_space<vmem>>, vector<1x32xf32>
    %360 = vector.broadcast %359 : vector<1x32xf32> to vector<16x32xf32>
    %361 = arith.mulf %358, %360 : vector<16x32xf32>
    %c10 = arith.constant 10 : index
    %c0_87 = arith.constant 0 : index
    %362 = vector.load %arg5[%c10, %c0_87] : memref<32x128xf32, #tpu.memory_space<vmem>>, vector<1x32xf32>
    %363 = vector.broadcast %362 : vector<1x32xf32> to vector<16x32xf32>
    %364 = arith.addf %361, %363 : vector<16x32xf32>
    %365 = arith.truncf %364 : vector<16x32xf32> to vector<16x32xbf16>
    %cst_88 = arith.constant dense<0.000000e+00> : vector<16x64xf32>
    %366 = tpu.matmul %365, %20, %cst_88 {dimension_numbers = #tpu.dot_dimension_numbers<[1], [0], [0], [1], [0, 0, 1, 1], [], []>} : vector<16x32xbf16>, vector<32x64xbf16>, vector<16x64xf32> -> vector<16x64xf32>
    %c11 = arith.constant 11 : index
    %c0_89 = arith.constant 0 : index
    %367 = vector.load %arg5[%c11, %c0_89] : memref<32x128xf32, #tpu.memory_space<vmem>>, vector<1x64xf32>
    %368 = vector.broadcast %367 : vector<1x64xf32> to vector<16x64xf32>
    %369 = arith.addf %366, %368 : vector<16x64xf32>
    %cst_90 = arith.constant 0.000000e+00 : f32
    %370 = vector.broadcast %cst_90 : f32 to vector<16x64xf32>
    %371 = arith.maximumf %369, %370 : vector<16x64xf32>
    %372 = arith.truncf %371 : vector<16x64xf32> to vector<16x64xbf16>
    %cst_91 = arith.constant dense<0.000000e+00> : vector<16x32xf32>
    %373 = tpu.matmul %372, %22, %cst_91 {dimension_numbers = #tpu.dot_dimension_numbers<[1], [0], [0], [1], [0, 0, 1, 1], [], []>} : vector<16x64xbf16>, vector<64x32xbf16>, vector<16x32xf32> -> vector<16x32xf32>
    %374 = arith.addf %338, %373 : vector<16x32xf32>
    %c12 = arith.constant 12 : index
    %c0_92 = arith.constant 0 : index
    %375 = vector.load %arg5[%c12, %c0_92] : memref<32x128xf32, #tpu.memory_space<vmem>>, vector<1x32xf32>
    %376 = vector.broadcast %375 : vector<1x32xf32> to vector<16x32xf32>
    %377 = arith.addf %374, %376 : vector<16x32xf32>
    %378 = vector.extract_strided_slice %2 {offsets = [1, 0, 0], sizes = [1, 32, 320], strides = [1, 1, 1]} : vector<2x32x320xbf16> to vector<1x32x320xbf16>
    %379 = vector.shape_cast %378 : vector<1x32x320xbf16> to vector<32x320xbf16>
    %380 = vector.extract_strided_slice %379 {offsets = [0, 0], sizes = [32, 96], strides = [1, 1]} : vector<32x320xbf16> to vector<32x96xbf16>
    %381 = vector.extract_strided_slice %379 {offsets = [0, 96], sizes = [32, 32], strides = [1, 1]} : vector<32x320xbf16> to vector<32x32xbf16>
    %382 = vector.extract_strided_slice %379 {offsets = [0, 128], sizes = [32, 32], strides = [1, 1]} : vector<32x320xbf16> to vector<32x32xbf16>
    %383 = vector.extract_strided_slice %379 {offsets = [0, 160], sizes = [32, 64], strides = [1, 1]} : vector<32x320xbf16> to vector<32x64xbf16>
    %384 = vector.extract_strided_slice %379 {offsets = [0, 224], sizes = [32, 32], strides = [1, 1]} : vector<32x320xbf16> to vector<32x32xbf16>
    %385 = vector.extract_strided_slice %379 {offsets = [0, 256], sizes = [32, 64], strides = [1, 1]} : vector<32x320xbf16> to vector<32x64xbf16>
    %386 = vector.extract_strided_slice %3 {offsets = [1, 0, 0], sizes = [1, 64, 32], strides = [1, 1, 1]} : vector<2x64x32xbf16> to vector<1x64x32xbf16>
    %387 = vector.shape_cast %386 : vector<1x64x32xbf16> to vector<64x32xbf16>
    %cst_93 = arith.constant dense<0.000000e+00> : vector<16xf32>
    %388 = vector.multi_reduction <add>, %377, %cst_93 [1] : vector<16x32xf32> to vector<16xf32>
    %389 = vector.shape_cast %388 : vector<16xf32> to vector<16x1xf32>
    %cst_94 = arith.constant 3.200000e+01 : f32
    %390 = vector.broadcast %cst_94 : f32 to vector<16x1xf32>
    %391 = arith.divf %389, %390 : vector<16x1xf32>
    %392 = vector.broadcast %391 : vector<16x1xf32> to vector<16x32xf32>
    %393 = arith.subf %377, %392 : vector<16x32xf32>
    %394 = vector.broadcast %391 : vector<16x1xf32> to vector<16x32xf32>
    %395 = arith.subf %377, %394 : vector<16x32xf32>
    %396 = arith.mulf %393, %395 : vector<16x32xf32>
    %cst_95 = arith.constant dense<0.000000e+00> : vector<16xf32>
    %397 = vector.multi_reduction <add>, %396, %cst_95 [1] : vector<16x32xf32> to vector<16xf32>
    %398 = vector.shape_cast %397 : vector<16xf32> to vector<16x1xf32>
    %cst_96 = arith.constant 3.200000e+01 : f32
    %399 = vector.broadcast %cst_96 : f32 to vector<16x1xf32>
    %400 = arith.divf %398, %399 : vector<16x1xf32>
    %401 = vector.broadcast %391 : vector<16x1xf32> to vector<16x32xf32>
    %402 = arith.subf %377, %401 : vector<16x32xf32>
    %cst_97 = arith.constant 9.99999974E-6 : f32
    %403 = vector.broadcast %cst_97 : f32 to vector<16x1xf32>
    %404 = arith.addf %400, %403 : vector<16x1xf32>
    %405 = math.rsqrt %404 : vector<16x1xf32>
    %406 = vector.broadcast %405 : vector<16x1xf32> to vector<16x32xf32>
    %407 = arith.mulf %402, %406 : vector<16x32xf32>
    %c13 = arith.constant 13 : index
    %c0_98 = arith.constant 0 : index
    %408 = vector.load %arg5[%c13, %c0_98] : memref<32x128xf32, #tpu.memory_space<vmem>>, vector<1x32xf32>
    %409 = vector.broadcast %408 : vector<1x32xf32> to vector<16x32xf32>
    %410 = arith.mulf %407, %409 : vector<16x32xf32>
    %c14 = arith.constant 14 : index
    %c0_99 = arith.constant 0 : index
    %411 = vector.load %arg5[%c14, %c0_99] : memref<32x128xf32, #tpu.memory_space<vmem>>, vector<1x32xf32>
    %412 = vector.broadcast %411 : vector<1x32xf32> to vector<16x32xf32>
    %413 = arith.addf %410, %412 : vector<16x32xf32>
    %414 = arith.truncf %413 : vector<16x32xf32> to vector<16x32xbf16>
    %cst_100 = arith.constant dense<0.000000e+00> : vector<16x96xf32>
    %415 = tpu.matmul %414, %380, %cst_100 {dimension_numbers = #tpu.dot_dimension_numbers<[1], [0], [0], [1], [0, 0, 1, 1], [], []>} : vector<16x32xbf16>, vector<32x96xbf16>, vector<16x96xf32> -> vector<16x96xf32>
    %c15 = arith.constant 15 : index
    %c0_101 = arith.constant 0 : index
    %416 = vector.load %arg5[%c15, %c0_101] : memref<32x128xf32, #tpu.memory_space<vmem>>, vector<1x96xf32>
    %417 = vector.broadcast %416 : vector<1x96xf32> to vector<16x96xf32>
    %418 = arith.addf %415, %417 : vector<16x96xf32>
    %419 = vector.extract_strided_slice %418 {offsets = [0, 0], sizes = [16, 32], strides = [1, 1]} : vector<16x96xf32> to vector<16x32xf32>
    %420 = vector.extract_strided_slice %418 {offsets = [0, 32], sizes = [16, 32], strides = [1, 1]} : vector<16x96xf32> to vector<16x32xf32>
    %421 = vector.extract_strided_slice %418 {offsets = [0, 64], sizes = [16, 32], strides = [1, 1]} : vector<16x96xf32> to vector<16x32xf32>
    %c16 = arith.constant 16 : index
    %c0_102 = arith.constant 0 : index
    %422 = vector.load %arg5[%c16, %c0_102] : memref<32x128xf32, #tpu.memory_space<vmem>>, vector<1x32xf32>
    %423 = vector.shape_cast %422 : vector<1x32xf32> to vector<1x32xf32>
    %424 = vector.broadcast %423 : vector<1x32xf32> to vector<16x32xf32>
    %425 = vector.extract_strided_slice %419 {offsets = [0, 0], sizes = [16, 8], strides = [1, 1]} : vector<16x32xf32> to vector<16x8xf32>
    %cst_103 = arith.constant 0.353553385 : f32
    %426 = vector.broadcast %cst_103 : f32 to vector<16x8xf32>
    %427 = arith.mulf %425, %426 : vector<16x8xf32>
    %428 = vector.shape_cast %427 : vector<16x8xf32> to vector<2x8x8xf32>
    %429 = arith.truncf %428 : vector<2x8x8xf32> to vector<2x8x8xbf16>
    %430 = vector.extract_strided_slice %420 {offsets = [0, 0], sizes = [16, 8], strides = [1, 1]} : vector<16x32xf32> to vector<16x8xf32>
    %431 = vector.shape_cast %430 : vector<16x8xf32> to vector<2x8x8xf32>
    %432 = arith.truncf %431 : vector<2x8x8xf32> to vector<2x8x8xbf16>
    %433 = vector.extract_strided_slice %421 {offsets = [0, 0], sizes = [16, 8], strides = [1, 1]} : vector<16x32xf32> to vector<16x8xf32>
    %434 = vector.shape_cast %433 : vector<16x8xf32> to vector<2x8x8xf32>
    %435 = arith.truncf %434 : vector<2x8x8xf32> to vector<2x8x8xbf16>
    "tpu.trace_start"() <{level = 10 : i32, message = "bqd,bkd->bqk"}> : () -> ()
    %cst_104 = arith.constant dense<0.000000e+00> : vector<2x8x8xf32>
    %436 = tpu.matmul %429, %432, %cst_104 {dimension_numbers = #tpu.dot_dimension_numbers<[2], [2], [1], [1], [0, 0, 0, 1, 1, 1], [0], [0]>} : vector<2x8x8xbf16>, vector<2x8x8xbf16>, vector<2x8x8xf32> -> vector<2x8x8xf32>
    "tpu.trace_stop"() : () -> ()
    %437 = arith.addf %436, %12 : vector<2x8x8xf32>
    %cst_105 = arith.constant dense<0xFF800000> : vector<2x8xf32>
    %438 = vector.multi_reduction <maximumf>, %437, %cst_105 [2] : vector<2x8x8xf32> to vector<2x8xf32>
    %439 = vector.shape_cast %438 : vector<2x8xf32> to vector<2x8x1xf32>
    %440 = vector.broadcast %439 : vector<2x8x1xf32> to vector<2x8x8xf32>
    %441 = arith.subf %437, %440 : vector<2x8x8xf32>
    %442 = math.exp %441 : vector<2x8x8xf32>
    %cst_106 = arith.constant dense<0.000000e+00> : vector<2x8xf32>
    %443 = vector.multi_reduction <add>, %442, %cst_106 [2] : vector<2x8x8xf32> to vector<2x8xf32>
    %444 = vector.shape_cast %443 : vector<2x8xf32> to vector<2x8x1xf32>
    %445 = tpu.reciprocal %444 {approx = true} : vector<2x8x1xf32> -> vector<2x8x1xf32>
    %446 = vector.broadcast %445 : vector<2x8x1xf32> to vector<2x8x8xf32>
    %447 = arith.mulf %442, %446 : vector<2x8x8xf32>
    %448 = arith.truncf %447 : vector<2x8x8xf32> to vector<2x8x8xbf16>
    "tpu.trace_start"() <{level = 10 : i32, message = "bqk,bkd->bqd"}> : () -> ()
    %cst_107 = arith.constant dense<0.000000e+00> : vector<2x8x8xf32>
    %449 = tpu.matmul %448, %435, %cst_107 {dimension_numbers = #tpu.dot_dimension_numbers<[2], [1], [1], [2], [0, 0, 0, 1, 1, 2], [0], [0]>} : vector<2x8x8xbf16>, vector<2x8x8xbf16>, vector<2x8x8xf32> -> vector<2x8x8xf32>
    "tpu.trace_stop"() : () -> ()
    %450 = vector.shape_cast %449 : vector<2x8x8xf32> to vector<16x8xf32>
    %451 = vector.extract_strided_slice %381 {offsets = [0, 0], sizes = [8, 32], strides = [1, 1]} : vector<32x32xbf16> to vector<8x32xbf16>
    %452 = arith.truncf %450 : vector<16x8xf32> to vector<16x8xbf16>
    %cst_108 = arith.constant dense<0.000000e+00> : vector<16x32xf32>
    %453 = tpu.matmul %452, %451, %cst_108 {dimension_numbers = #tpu.dot_dimension_numbers<[1], [0], [0], [1], [0, 0, 1, 1], [], []>} : vector<16x8xbf16>, vector<8x32xbf16>, vector<16x32xf32> -> vector<16x32xf32>
    %454 = arith.addf %424, %453 : vector<16x32xf32>
    %455 = vector.extract_strided_slice %419 {offsets = [0, 8], sizes = [16, 8], strides = [1, 1]} : vector<16x32xf32> to vector<16x8xf32>
    %cst_109 = arith.constant 0.353553385 : f32
    %456 = vector.broadcast %cst_109 : f32 to vector<16x8xf32>
    %457 = arith.mulf %455, %456 : vector<16x8xf32>
    %458 = vector.shape_cast %457 : vector<16x8xf32> to vector<2x8x8xf32>
    %459 = arith.truncf %458 : vector<2x8x8xf32> to vector<2x8x8xbf16>
    %460 = vector.extract_strided_slice %420 {offsets = [0, 8], sizes = [16, 8], strides = [1, 1]} : vector<16x32xf32> to vector<16x8xf32>
    %461 = vector.shape_cast %460 : vector<16x8xf32> to vector<2x8x8xf32>
    %462 = arith.truncf %461 : vector<2x8x8xf32> to vector<2x8x8xbf16>
    %463 = vector.extract_strided_slice %421 {offsets = [0, 8], sizes = [16, 8], strides = [1, 1]} : vector<16x32xf32> to vector<16x8xf32>
    %464 = vector.shape_cast %463 : vector<16x8xf32> to vector<2x8x8xf32>
    %465 = arith.truncf %464 : vector<2x8x8xf32> to vector<2x8x8xbf16>
    "tpu.trace_start"() <{level = 10 : i32, message = "bqd,bkd->bqk"}> : () -> ()
    %cst_110 = arith.constant dense<0.000000e+00> : vector<2x8x8xf32>
    %466 = tpu.matmul %459, %462, %cst_110 {dimension_numbers = #tpu.dot_dimension_numbers<[2], [2], [1], [1], [0, 0, 0, 1, 1, 1], [0], [0]>} : vector<2x8x8xbf16>, vector<2x8x8xbf16>, vector<2x8x8xf32> -> vector<2x8x8xf32>
    "tpu.trace_stop"() : () -> ()
    %467 = arith.addf %466, %12 : vector<2x8x8xf32>
    %cst_111 = arith.constant dense<0xFF800000> : vector<2x8xf32>
    %468 = vector.multi_reduction <maximumf>, %467, %cst_111 [2] : vector<2x8x8xf32> to vector<2x8xf32>
    %469 = vector.shape_cast %468 : vector<2x8xf32> to vector<2x8x1xf32>
    %470 = vector.broadcast %469 : vector<2x8x1xf32> to vector<2x8x8xf32>
    %471 = arith.subf %467, %470 : vector<2x8x8xf32>
    %472 = math.exp %471 : vector<2x8x8xf32>
    %cst_112 = arith.constant dense<0.000000e+00> : vector<2x8xf32>
    %473 = vector.multi_reduction <add>, %472, %cst_112 [2] : vector<2x8x8xf32> to vector<2x8xf32>
    %474 = vector.shape_cast %473 : vector<2x8xf32> to vector<2x8x1xf32>
    %475 = tpu.reciprocal %474 {approx = true} : vector<2x8x1xf32> -> vector<2x8x1xf32>
    %476 = vector.broadcast %475 : vector<2x8x1xf32> to vector<2x8x8xf32>
    %477 = arith.mulf %472, %476 : vector<2x8x8xf32>
    %478 = arith.truncf %477 : vector<2x8x8xf32> to vector<2x8x8xbf16>
    "tpu.trace_start"() <{level = 10 : i32, message = "bqk,bkd->bqd"}> : () -> ()
    %cst_113 = arith.constant dense<0.000000e+00> : vector<2x8x8xf32>
    %479 = tpu.matmul %478, %465, %cst_113 {dimension_numbers = #tpu.dot_dimension_numbers<[2], [1], [1], [2], [0, 0, 0, 1, 1, 2], [0], [0]>} : vector<2x8x8xbf16>, vector<2x8x8xbf16>, vector<2x8x8xf32> -> vector<2x8x8xf32>
    "tpu.trace_stop"() : () -> ()
    %480 = vector.shape_cast %479 : vector<2x8x8xf32> to vector<16x8xf32>
    %481 = vector.extract_strided_slice %381 {offsets = [8, 0], sizes = [8, 32], strides = [1, 1]} : vector<32x32xbf16> to vector<8x32xbf16>
    %482 = arith.truncf %480 : vector<16x8xf32> to vector<16x8xbf16>
    %cst_114 = arith.constant dense<0.000000e+00> : vector<16x32xf32>
    %483 = tpu.matmul %482, %481, %cst_114 {dimension_numbers = #tpu.dot_dimension_numbers<[1], [0], [0], [1], [0, 0, 1, 1], [], []>} : vector<16x8xbf16>, vector<8x32xbf16>, vector<16x32xf32> -> vector<16x32xf32>
    %484 = arith.addf %454, %483 : vector<16x32xf32>
    %485 = vector.extract_strided_slice %419 {offsets = [0, 16], sizes = [16, 8], strides = [1, 1]} : vector<16x32xf32> to vector<16x8xf32>
    %cst_115 = arith.constant 0.353553385 : f32
    %486 = vector.broadcast %cst_115 : f32 to vector<16x8xf32>
    %487 = arith.mulf %485, %486 : vector<16x8xf32>
    %488 = vector.shape_cast %487 : vector<16x8xf32> to vector<2x8x8xf32>
    %489 = arith.truncf %488 : vector<2x8x8xf32> to vector<2x8x8xbf16>
    %490 = vector.extract_strided_slice %420 {offsets = [0, 16], sizes = [16, 8], strides = [1, 1]} : vector<16x32xf32> to vector<16x8xf32>
    %491 = vector.shape_cast %490 : vector<16x8xf32> to vector<2x8x8xf32>
    %492 = arith.truncf %491 : vector<2x8x8xf32> to vector<2x8x8xbf16>
    %493 = vector.extract_strided_slice %421 {offsets = [0, 16], sizes = [16, 8], strides = [1, 1]} : vector<16x32xf32> to vector<16x8xf32>
    %494 = vector.shape_cast %493 : vector<16x8xf32> to vector<2x8x8xf32>
    %495 = arith.truncf %494 : vector<2x8x8xf32> to vector<2x8x8xbf16>
    "tpu.trace_start"() <{level = 10 : i32, message = "bqd,bkd->bqk"}> : () -> ()
    %cst_116 = arith.constant dense<0.000000e+00> : vector<2x8x8xf32>
    %496 = tpu.matmul %489, %492, %cst_116 {dimension_numbers = #tpu.dot_dimension_numbers<[2], [2], [1], [1], [0, 0, 0, 1, 1, 1], [0], [0]>} : vector<2x8x8xbf16>, vector<2x8x8xbf16>, vector<2x8x8xf32> -> vector<2x8x8xf32>
    "tpu.trace_stop"() : () -> ()
    %497 = arith.addf %496, %12 : vector<2x8x8xf32>
    %cst_117 = arith.constant dense<0xFF800000> : vector<2x8xf32>
    %498 = vector.multi_reduction <maximumf>, %497, %cst_117 [2] : vector<2x8x8xf32> to vector<2x8xf32>
    %499 = vector.shape_cast %498 : vector<2x8xf32> to vector<2x8x1xf32>
    %500 = vector.broadcast %499 : vector<2x8x1xf32> to vector<2x8x8xf32>
    %501 = arith.subf %497, %500 : vector<2x8x8xf32>
    %502 = math.exp %501 : vector<2x8x8xf32>
    %cst_118 = arith.constant dense<0.000000e+00> : vector<2x8xf32>
    %503 = vector.multi_reduction <add>, %502, %cst_118 [2] : vector<2x8x8xf32> to vector<2x8xf32>
    %504 = vector.shape_cast %503 : vector<2x8xf32> to vector<2x8x1xf32>
    %505 = tpu.reciprocal %504 {approx = true} : vector<2x8x1xf32> -> vector<2x8x1xf32>
    %506 = vector.broadcast %505 : vector<2x8x1xf32> to vector<2x8x8xf32>
    %507 = arith.mulf %502, %506 : vector<2x8x8xf32>
    %508 = arith.truncf %507 : vector<2x8x8xf32> to vector<2x8x8xbf16>
    "tpu.trace_start"() <{level = 10 : i32, message = "bqk,bkd->bqd"}> : () -> ()
    %cst_119 = arith.constant dense<0.000000e+00> : vector<2x8x8xf32>
    %509 = tpu.matmul %508, %495, %cst_119 {dimension_numbers = #tpu.dot_dimension_numbers<[2], [1], [1], [2], [0, 0, 0, 1, 1, 2], [0], [0]>} : vector<2x8x8xbf16>, vector<2x8x8xbf16>, vector<2x8x8xf32> -> vector<2x8x8xf32>
    "tpu.trace_stop"() : () -> ()
    %510 = vector.shape_cast %509 : vector<2x8x8xf32> to vector<16x8xf32>
    %511 = vector.extract_strided_slice %381 {offsets = [16, 0], sizes = [8, 32], strides = [1, 1]} : vector<32x32xbf16> to vector<8x32xbf16>
    %512 = arith.truncf %510 : vector<16x8xf32> to vector<16x8xbf16>
    %cst_120 = arith.constant dense<0.000000e+00> : vector<16x32xf32>
    %513 = tpu.matmul %512, %511, %cst_120 {dimension_numbers = #tpu.dot_dimension_numbers<[1], [0], [0], [1], [0, 0, 1, 1], [], []>} : vector<16x8xbf16>, vector<8x32xbf16>, vector<16x32xf32> -> vector<16x32xf32>
    %514 = arith.addf %484, %513 : vector<16x32xf32>
    %515 = vector.extract_strided_slice %419 {offsets = [0, 24], sizes = [16, 8], strides = [1, 1]} : vector<16x32xf32> to vector<16x8xf32>
    %cst_121 = arith.constant 0.353553385 : f32
    %516 = vector.broadcast %cst_121 : f32 to vector<16x8xf32>
    %517 = arith.mulf %515, %516 : vector<16x8xf32>
    %518 = vector.shape_cast %517 : vector<16x8xf32> to vector<2x8x8xf32>
    %519 = arith.truncf %518 : vector<2x8x8xf32> to vector<2x8x8xbf16>
    %520 = vector.extract_strided_slice %420 {offsets = [0, 24], sizes = [16, 8], strides = [1, 1]} : vector<16x32xf32> to vector<16x8xf32>
    %521 = vector.shape_cast %520 : vector<16x8xf32> to vector<2x8x8xf32>
    %522 = arith.truncf %521 : vector<2x8x8xf32> to vector<2x8x8xbf16>
    %523 = vector.extract_strided_slice %421 {offsets = [0, 24], sizes = [16, 8], strides = [1, 1]} : vector<16x32xf32> to vector<16x8xf32>
    %524 = vector.shape_cast %523 : vector<16x8xf32> to vector<2x8x8xf32>
    %525 = arith.truncf %524 : vector<2x8x8xf32> to vector<2x8x8xbf16>
    "tpu.trace_start"() <{level = 10 : i32, message = "bqd,bkd->bqk"}> : () -> ()
    %cst_122 = arith.constant dense<0.000000e+00> : vector<2x8x8xf32>
    %526 = tpu.matmul %519, %522, %cst_122 {dimension_numbers = #tpu.dot_dimension_numbers<[2], [2], [1], [1], [0, 0, 0, 1, 1, 1], [0], [0]>} : vector<2x8x8xbf16>, vector<2x8x8xbf16>, vector<2x8x8xf32> -> vector<2x8x8xf32>
    "tpu.trace_stop"() : () -> ()
    %527 = arith.addf %526, %12 : vector<2x8x8xf32>
    %cst_123 = arith.constant dense<0xFF800000> : vector<2x8xf32>
    %528 = vector.multi_reduction <maximumf>, %527, %cst_123 [2] : vector<2x8x8xf32> to vector<2x8xf32>
    %529 = vector.shape_cast %528 : vector<2x8xf32> to vector<2x8x1xf32>
    %530 = vector.broadcast %529 : vector<2x8x1xf32> to vector<2x8x8xf32>
    %531 = arith.subf %527, %530 : vector<2x8x8xf32>
    %532 = math.exp %531 : vector<2x8x8xf32>
    %cst_124 = arith.constant dense<0.000000e+00> : vector<2x8xf32>
    %533 = vector.multi_reduction <add>, %532, %cst_124 [2] : vector<2x8x8xf32> to vector<2x8xf32>
    %534 = vector.shape_cast %533 : vector<2x8xf32> to vector<2x8x1xf32>
    %535 = tpu.reciprocal %534 {approx = true} : vector<2x8x1xf32> -> vector<2x8x1xf32>
    %536 = vector.broadcast %535 : vector<2x8x1xf32> to vector<2x8x8xf32>
    %537 = arith.mulf %532, %536 : vector<2x8x8xf32>
    %538 = arith.truncf %537 : vector<2x8x8xf32> to vector<2x8x8xbf16>
    "tpu.trace_start"() <{level = 10 : i32, message = "bqk,bkd->bqd"}> : () -> ()
    %cst_125 = arith.constant dense<0.000000e+00> : vector<2x8x8xf32>
    %539 = tpu.matmul %538, %525, %cst_125 {dimension_numbers = #tpu.dot_dimension_numbers<[2], [1], [1], [2], [0, 0, 0, 1, 1, 2], [0], [0]>} : vector<2x8x8xbf16>, vector<2x8x8xbf16>, vector<2x8x8xf32> -> vector<2x8x8xf32>
    "tpu.trace_stop"() : () -> ()
    %540 = vector.shape_cast %539 : vector<2x8x8xf32> to vector<16x8xf32>
    %541 = vector.extract_strided_slice %381 {offsets = [24, 0], sizes = [8, 32], strides = [1, 1]} : vector<32x32xbf16> to vector<8x32xbf16>
    %542 = arith.truncf %540 : vector<16x8xf32> to vector<16x8xbf16>
    %cst_126 = arith.constant dense<0.000000e+00> : vector<16x32xf32>
    %543 = tpu.matmul %542, %541, %cst_126 {dimension_numbers = #tpu.dot_dimension_numbers<[1], [0], [0], [1], [0, 0, 1, 1], [], []>} : vector<16x8xbf16>, vector<8x32xbf16>, vector<16x32xf32> -> vector<16x32xf32>
    %544 = arith.addf %514, %543 : vector<16x32xf32>
    %545 = arith.addf %377, %544 : vector<16x32xf32>
    %cst_127 = arith.constant dense<0.000000e+00> : vector<16xf32>
    %546 = vector.multi_reduction <add>, %545, %cst_127 [1] : vector<16x32xf32> to vector<16xf32>
    %547 = vector.shape_cast %546 : vector<16xf32> to vector<16x1xf32>
    %cst_128 = arith.constant 3.200000e+01 : f32
    %548 = vector.broadcast %cst_128 : f32 to vector<16x1xf32>
    %549 = arith.divf %547, %548 : vector<16x1xf32>
    %550 = vector.broadcast %549 : vector<16x1xf32> to vector<16x32xf32>
    %551 = arith.subf %545, %550 : vector<16x32xf32>
    %552 = vector.broadcast %549 : vector<16x1xf32> to vector<16x32xf32>
    %553 = arith.subf %545, %552 : vector<16x32xf32>
    %554 = arith.mulf %551, %553 : vector<16x32xf32>
    %cst_129 = arith.constant dense<0.000000e+00> : vector<16xf32>
    %555 = vector.multi_reduction <add>, %554, %cst_129 [1] : vector<16x32xf32> to vector<16xf32>
    %556 = vector.shape_cast %555 : vector<16xf32> to vector<16x1xf32>
    %cst_130 = arith.constant 3.200000e+01 : f32
    %557 = vector.broadcast %cst_130 : f32 to vector<16x1xf32>
    %558 = arith.divf %556, %557 : vector<16x1xf32>
    %559 = vector.broadcast %549 : vector<16x1xf32> to vector<16x32xf32>
    %560 = arith.subf %545, %559 : vector<16x32xf32>
    %cst_131 = arith.constant 9.99999974E-6 : f32
    %561 = vector.broadcast %cst_131 : f32 to vector<16x1xf32>
    %562 = arith.addf %558, %561 : vector<16x1xf32>
    %563 = math.rsqrt %562 : vector<16x1xf32>
    %564 = vector.broadcast %563 : vector<16x1xf32> to vector<16x32xf32>
    %565 = arith.mulf %560, %564 : vector<16x32xf32>
    %c17 = arith.constant 17 : index
    %c0_132 = arith.constant 0 : index
    %566 = vector.load %arg5[%c17, %c0_132] : memref<32x128xf32, #tpu.memory_space<vmem>>, vector<1x32xf32>
    %567 = vector.broadcast %566 : vector<1x32xf32> to vector<16x32xf32>
    %568 = arith.mulf %565, %567 : vector<16x32xf32>
    %c18 = arith.constant 18 : index
    %c0_133 = arith.constant 0 : index
    %569 = vector.load %arg5[%c18, %c0_133] : memref<32x128xf32, #tpu.memory_space<vmem>>, vector<1x32xf32>
    %570 = vector.broadcast %569 : vector<1x32xf32> to vector<16x32xf32>
    %571 = arith.addf %568, %570 : vector<16x32xf32>
    %572 = arith.truncf %571 : vector<16x32xf32> to vector<16x32xbf16>
    %cst_134 = arith.constant dense<0.000000e+00> : vector<16x32xf32>
    %573 = tpu.matmul %572, %382, %cst_134 {dimension_numbers = #tpu.dot_dimension_numbers<[1], [0], [0], [1], [0, 0, 1, 1], [], []>} : vector<16x32xbf16>, vector<32x32xbf16>, vector<16x32xf32> -> vector<16x32xf32>
    %c19 = arith.constant 19 : index
    %c0_135 = arith.constant 0 : index
    %574 = vector.load %arg5[%c19, %c0_135] : memref<32x128xf32, #tpu.memory_space<vmem>>, vector<1x32xf32>
    %575 = vector.broadcast %574 : vector<1x32xf32> to vector<16x32xf32>
    %576 = arith.addf %573, %575 : vector<16x32xf32>
    %577 = arith.truncf %1 : vector<16x32xf32> to vector<16x32xbf16>
    %cst_136 = arith.constant dense<0.000000e+00> : vector<16x64xf32>
    %578 = tpu.matmul %577, %383, %cst_136 {dimension_numbers = #tpu.dot_dimension_numbers<[1], [0], [0], [1], [0, 0, 1, 1], [], []>} : vector<16x32xbf16>, vector<32x64xbf16>, vector<16x64xf32> -> vector<16x64xf32>
    %c20 = arith.constant 20 : index
    %c0_137 = arith.constant 0 : index
    %579 = vector.load %arg5[%c20, %c0_137] : memref<32x128xf32, #tpu.memory_space<vmem>>, vector<1x64xf32>
    %580 = vector.broadcast %579 : vector<1x64xf32> to vector<16x64xf32>
    %581 = arith.addf %578, %580 : vector<16x64xf32>
    %582 = vector.extract_strided_slice %581 {offsets = [0, 0], sizes = [16, 32], strides = [1, 1]} : vector<16x64xf32> to vector<16x32xf32>
    %583 = vector.extract_strided_slice %581 {offsets = [0, 32], sizes = [16, 32], strides = [1, 1]} : vector<16x64xf32> to vector<16x32xf32>
    %c21 = arith.constant 21 : index
    %c0_138 = arith.constant 0 : index
    %584 = vector.load %arg5[%c21, %c0_138] : memref<32x128xf32, #tpu.memory_space<vmem>>, vector<1x32xf32>
    %585 = vector.shape_cast %584 : vector<1x32xf32> to vector<1x32xf32>
    %586 = vector.broadcast %585 : vector<1x32xf32> to vector<16x32xf32>
    %587 = vector.extract_strided_slice %576 {offsets = [0, 0], sizes = [16, 8], strides = [1, 1]} : vector<16x32xf32> to vector<16x8xf32>
    %cst_139 = arith.constant 0.353553385 : f32
    %588 = vector.broadcast %cst_139 : f32 to vector<16x8xf32>
    %589 = arith.mulf %587, %588 : vector<16x8xf32>
    %590 = vector.shape_cast %589 : vector<16x8xf32> to vector<2x8x8xf32>
    %591 = arith.truncf %590 : vector<2x8x8xf32> to vector<2x8x8xbf16>
    %592 = vector.extract_strided_slice %582 {offsets = [0, 0], sizes = [16, 8], strides = [1, 1]} : vector<16x32xf32> to vector<16x8xf32>
    %593 = vector.shape_cast %592 : vector<16x8xf32> to vector<2x8x8xf32>
    %594 = arith.truncf %593 : vector<2x8x8xf32> to vector<2x8x8xbf16>
    %595 = vector.extract_strided_slice %583 {offsets = [0, 0], sizes = [16, 8], strides = [1, 1]} : vector<16x32xf32> to vector<16x8xf32>
    %596 = vector.shape_cast %595 : vector<16x8xf32> to vector<2x8x8xf32>
    %597 = arith.truncf %596 : vector<2x8x8xf32> to vector<2x8x8xbf16>
    "tpu.trace_start"() <{level = 10 : i32, message = "bqd,bkd->bqk"}> : () -> ()
    %cst_140 = arith.constant dense<0.000000e+00> : vector<2x8x8xf32>
    %598 = tpu.matmul %591, %594, %cst_140 {dimension_numbers = #tpu.dot_dimension_numbers<[2], [2], [1], [1], [0, 0, 0, 1, 1, 1], [0], [0]>} : vector<2x8x8xbf16>, vector<2x8x8xbf16>, vector<2x8x8xf32> -> vector<2x8x8xf32>
    "tpu.trace_stop"() : () -> ()
    %cst_141 = arith.constant dense<0xFF800000> : vector<2x8xf32>
    %599 = vector.multi_reduction <maximumf>, %598, %cst_141 [2] : vector<2x8x8xf32> to vector<2x8xf32>
    %600 = vector.shape_cast %599 : vector<2x8xf32> to vector<2x8x1xf32>
    %601 = vector.broadcast %600 : vector<2x8x1xf32> to vector<2x8x8xf32>
    %602 = arith.subf %598, %601 : vector<2x8x8xf32>
    %603 = math.exp %602 : vector<2x8x8xf32>
    %cst_142 = arith.constant dense<0.000000e+00> : vector<2x8xf32>
    %604 = vector.multi_reduction <add>, %603, %cst_142 [2] : vector<2x8x8xf32> to vector<2x8xf32>
    %605 = vector.shape_cast %604 : vector<2x8xf32> to vector<2x8x1xf32>
    %606 = tpu.reciprocal %605 {approx = true} : vector<2x8x1xf32> -> vector<2x8x1xf32>
    %607 = vector.broadcast %606 : vector<2x8x1xf32> to vector<2x8x8xf32>
    %608 = arith.mulf %603, %607 : vector<2x8x8xf32>
    %609 = arith.truncf %608 : vector<2x8x8xf32> to vector<2x8x8xbf16>
    "tpu.trace_start"() <{level = 10 : i32, message = "bqk,bkd->bqd"}> : () -> ()
    %cst_143 = arith.constant dense<0.000000e+00> : vector<2x8x8xf32>
    %610 = tpu.matmul %609, %597, %cst_143 {dimension_numbers = #tpu.dot_dimension_numbers<[2], [1], [1], [2], [0, 0, 0, 1, 1, 2], [0], [0]>} : vector<2x8x8xbf16>, vector<2x8x8xbf16>, vector<2x8x8xf32> -> vector<2x8x8xf32>
    "tpu.trace_stop"() : () -> ()
    %611 = vector.shape_cast %610 : vector<2x8x8xf32> to vector<16x8xf32>
    %612 = vector.extract_strided_slice %384 {offsets = [0, 0], sizes = [8, 32], strides = [1, 1]} : vector<32x32xbf16> to vector<8x32xbf16>
    %613 = arith.truncf %611 : vector<16x8xf32> to vector<16x8xbf16>
    %cst_144 = arith.constant dense<0.000000e+00> : vector<16x32xf32>
    %614 = tpu.matmul %613, %612, %cst_144 {dimension_numbers = #tpu.dot_dimension_numbers<[1], [0], [0], [1], [0, 0, 1, 1], [], []>} : vector<16x8xbf16>, vector<8x32xbf16>, vector<16x32xf32> -> vector<16x32xf32>
    %615 = arith.addf %586, %614 : vector<16x32xf32>
    %616 = vector.extract_strided_slice %576 {offsets = [0, 8], sizes = [16, 8], strides = [1, 1]} : vector<16x32xf32> to vector<16x8xf32>
    %cst_145 = arith.constant 0.353553385 : f32
    %617 = vector.broadcast %cst_145 : f32 to vector<16x8xf32>
    %618 = arith.mulf %616, %617 : vector<16x8xf32>
    %619 = vector.shape_cast %618 : vector<16x8xf32> to vector<2x8x8xf32>
    %620 = arith.truncf %619 : vector<2x8x8xf32> to vector<2x8x8xbf16>
    %621 = vector.extract_strided_slice %582 {offsets = [0, 8], sizes = [16, 8], strides = [1, 1]} : vector<16x32xf32> to vector<16x8xf32>
    %622 = vector.shape_cast %621 : vector<16x8xf32> to vector<2x8x8xf32>
    %623 = arith.truncf %622 : vector<2x8x8xf32> to vector<2x8x8xbf16>
    %624 = vector.extract_strided_slice %583 {offsets = [0, 8], sizes = [16, 8], strides = [1, 1]} : vector<16x32xf32> to vector<16x8xf32>
    %625 = vector.shape_cast %624 : vector<16x8xf32> to vector<2x8x8xf32>
    %626 = arith.truncf %625 : vector<2x8x8xf32> to vector<2x8x8xbf16>
    "tpu.trace_start"() <{level = 10 : i32, message = "bqd,bkd->bqk"}> : () -> ()
    %cst_146 = arith.constant dense<0.000000e+00> : vector<2x8x8xf32>
    %627 = tpu.matmul %620, %623, %cst_146 {dimension_numbers = #tpu.dot_dimension_numbers<[2], [2], [1], [1], [0, 0, 0, 1, 1, 1], [0], [0]>} : vector<2x8x8xbf16>, vector<2x8x8xbf16>, vector<2x8x8xf32> -> vector<2x8x8xf32>
    "tpu.trace_stop"() : () -> ()
    %cst_147 = arith.constant dense<0xFF800000> : vector<2x8xf32>
    %628 = vector.multi_reduction <maximumf>, %627, %cst_147 [2] : vector<2x8x8xf32> to vector<2x8xf32>
    %629 = vector.shape_cast %628 : vector<2x8xf32> to vector<2x8x1xf32>
    %630 = vector.broadcast %629 : vector<2x8x1xf32> to vector<2x8x8xf32>
    %631 = arith.subf %627, %630 : vector<2x8x8xf32>
    %632 = math.exp %631 : vector<2x8x8xf32>
    %cst_148 = arith.constant dense<0.000000e+00> : vector<2x8xf32>
    %633 = vector.multi_reduction <add>, %632, %cst_148 [2] : vector<2x8x8xf32> to vector<2x8xf32>
    %634 = vector.shape_cast %633 : vector<2x8xf32> to vector<2x8x1xf32>
    %635 = tpu.reciprocal %634 {approx = true} : vector<2x8x1xf32> -> vector<2x8x1xf32>
    %636 = vector.broadcast %635 : vector<2x8x1xf32> to vector<2x8x8xf32>
    %637 = arith.mulf %632, %636 : vector<2x8x8xf32>
    %638 = arith.truncf %637 : vector<2x8x8xf32> to vector<2x8x8xbf16>
    "tpu.trace_start"() <{level = 10 : i32, message = "bqk,bkd->bqd"}> : () -> ()
    %cst_149 = arith.constant dense<0.000000e+00> : vector<2x8x8xf32>
    %639 = tpu.matmul %638, %626, %cst_149 {dimension_numbers = #tpu.dot_dimension_numbers<[2], [1], [1], [2], [0, 0, 0, 1, 1, 2], [0], [0]>} : vector<2x8x8xbf16>, vector<2x8x8xbf16>, vector<2x8x8xf32> -> vector<2x8x8xf32>
    "tpu.trace_stop"() : () -> ()
    %640 = vector.shape_cast %639 : vector<2x8x8xf32> to vector<16x8xf32>
    %641 = vector.extract_strided_slice %384 {offsets = [8, 0], sizes = [8, 32], strides = [1, 1]} : vector<32x32xbf16> to vector<8x32xbf16>
    %642 = arith.truncf %640 : vector<16x8xf32> to vector<16x8xbf16>
    %cst_150 = arith.constant dense<0.000000e+00> : vector<16x32xf32>
    %643 = tpu.matmul %642, %641, %cst_150 {dimension_numbers = #tpu.dot_dimension_numbers<[1], [0], [0], [1], [0, 0, 1, 1], [], []>} : vector<16x8xbf16>, vector<8x32xbf16>, vector<16x32xf32> -> vector<16x32xf32>
    %644 = arith.addf %615, %643 : vector<16x32xf32>
    %645 = vector.extract_strided_slice %576 {offsets = [0, 16], sizes = [16, 8], strides = [1, 1]} : vector<16x32xf32> to vector<16x8xf32>
    %cst_151 = arith.constant 0.353553385 : f32
    %646 = vector.broadcast %cst_151 : f32 to vector<16x8xf32>
    %647 = arith.mulf %645, %646 : vector<16x8xf32>
    %648 = vector.shape_cast %647 : vector<16x8xf32> to vector<2x8x8xf32>
    %649 = arith.truncf %648 : vector<2x8x8xf32> to vector<2x8x8xbf16>
    %650 = vector.extract_strided_slice %582 {offsets = [0, 16], sizes = [16, 8], strides = [1, 1]} : vector<16x32xf32> to vector<16x8xf32>
    %651 = vector.shape_cast %650 : vector<16x8xf32> to vector<2x8x8xf32>
    %652 = arith.truncf %651 : vector<2x8x8xf32> to vector<2x8x8xbf16>
    %653 = vector.extract_strided_slice %583 {offsets = [0, 16], sizes = [16, 8], strides = [1, 1]} : vector<16x32xf32> to vector<16x8xf32>
    %654 = vector.shape_cast %653 : vector<16x8xf32> to vector<2x8x8xf32>
    %655 = arith.truncf %654 : vector<2x8x8xf32> to vector<2x8x8xbf16>
    "tpu.trace_start"() <{level = 10 : i32, message = "bqd,bkd->bqk"}> : () -> ()
    %cst_152 = arith.constant dense<0.000000e+00> : vector<2x8x8xf32>
    %656 = tpu.matmul %649, %652, %cst_152 {dimension_numbers = #tpu.dot_dimension_numbers<[2], [2], [1], [1], [0, 0, 0, 1, 1, 1], [0], [0]>} : vector<2x8x8xbf16>, vector<2x8x8xbf16>, vector<2x8x8xf32> -> vector<2x8x8xf32>
    "tpu.trace_stop"() : () -> ()
    %cst_153 = arith.constant dense<0xFF800000> : vector<2x8xf32>
    %657 = vector.multi_reduction <maximumf>, %656, %cst_153 [2] : vector<2x8x8xf32> to vector<2x8xf32>
    %658 = vector.shape_cast %657 : vector<2x8xf32> to vector<2x8x1xf32>
    %659 = vector.broadcast %658 : vector<2x8x1xf32> to vector<2x8x8xf32>
    %660 = arith.subf %656, %659 : vector<2x8x8xf32>
    %661 = math.exp %660 : vector<2x8x8xf32>
    %cst_154 = arith.constant dense<0.000000e+00> : vector<2x8xf32>
    %662 = vector.multi_reduction <add>, %661, %cst_154 [2] : vector<2x8x8xf32> to vector<2x8xf32>
    %663 = vector.shape_cast %662 : vector<2x8xf32> to vector<2x8x1xf32>
    %664 = tpu.reciprocal %663 {approx = true} : vector<2x8x1xf32> -> vector<2x8x1xf32>
    %665 = vector.broadcast %664 : vector<2x8x1xf32> to vector<2x8x8xf32>
    %666 = arith.mulf %661, %665 : vector<2x8x8xf32>
    %667 = arith.truncf %666 : vector<2x8x8xf32> to vector<2x8x8xbf16>
    "tpu.trace_start"() <{level = 10 : i32, message = "bqk,bkd->bqd"}> : () -> ()
    %cst_155 = arith.constant dense<0.000000e+00> : vector<2x8x8xf32>
    %668 = tpu.matmul %667, %655, %cst_155 {dimension_numbers = #tpu.dot_dimension_numbers<[2], [1], [1], [2], [0, 0, 0, 1, 1, 2], [0], [0]>} : vector<2x8x8xbf16>, vector<2x8x8xbf16>, vector<2x8x8xf32> -> vector<2x8x8xf32>
    "tpu.trace_stop"() : () -> ()
    %669 = vector.shape_cast %668 : vector<2x8x8xf32> to vector<16x8xf32>
    %670 = vector.extract_strided_slice %384 {offsets = [16, 0], sizes = [8, 32], strides = [1, 1]} : vector<32x32xbf16> to vector<8x32xbf16>
    %671 = arith.truncf %669 : vector<16x8xf32> to vector<16x8xbf16>
    %cst_156 = arith.constant dense<0.000000e+00> : vector<16x32xf32>
    %672 = tpu.matmul %671, %670, %cst_156 {dimension_numbers = #tpu.dot_dimension_numbers<[1], [0], [0], [1], [0, 0, 1, 1], [], []>} : vector<16x8xbf16>, vector<8x32xbf16>, vector<16x32xf32> -> vector<16x32xf32>
    %673 = arith.addf %644, %672 : vector<16x32xf32>
    %674 = vector.extract_strided_slice %576 {offsets = [0, 24], sizes = [16, 8], strides = [1, 1]} : vector<16x32xf32> to vector<16x8xf32>
    %cst_157 = arith.constant 0.353553385 : f32
    %675 = vector.broadcast %cst_157 : f32 to vector<16x8xf32>
    %676 = arith.mulf %674, %675 : vector<16x8xf32>
    %677 = vector.shape_cast %676 : vector<16x8xf32> to vector<2x8x8xf32>
    %678 = arith.truncf %677 : vector<2x8x8xf32> to vector<2x8x8xbf16>
    %679 = vector.extract_strided_slice %582 {offsets = [0, 24], sizes = [16, 8], strides = [1, 1]} : vector<16x32xf32> to vector<16x8xf32>
    %680 = vector.shape_cast %679 : vector<16x8xf32> to vector<2x8x8xf32>
    %681 = arith.truncf %680 : vector<2x8x8xf32> to vector<2x8x8xbf16>
    %682 = vector.extract_strided_slice %583 {offsets = [0, 24], sizes = [16, 8], strides = [1, 1]} : vector<16x32xf32> to vector<16x8xf32>
    %683 = vector.shape_cast %682 : vector<16x8xf32> to vector<2x8x8xf32>
    %684 = arith.truncf %683 : vector<2x8x8xf32> to vector<2x8x8xbf16>
    "tpu.trace_start"() <{level = 10 : i32, message = "bqd,bkd->bqk"}> : () -> ()
    %cst_158 = arith.constant dense<0.000000e+00> : vector<2x8x8xf32>
    %685 = tpu.matmul %678, %681, %cst_158 {dimension_numbers = #tpu.dot_dimension_numbers<[2], [2], [1], [1], [0, 0, 0, 1, 1, 1], [0], [0]>} : vector<2x8x8xbf16>, vector<2x8x8xbf16>, vector<2x8x8xf32> -> vector<2x8x8xf32>
    "tpu.trace_stop"() : () -> ()
    %cst_159 = arith.constant dense<0xFF800000> : vector<2x8xf32>
    %686 = vector.multi_reduction <maximumf>, %685, %cst_159 [2] : vector<2x8x8xf32> to vector<2x8xf32>
    %687 = vector.shape_cast %686 : vector<2x8xf32> to vector<2x8x1xf32>
    %688 = vector.broadcast %687 : vector<2x8x1xf32> to vector<2x8x8xf32>
    %689 = arith.subf %685, %688 : vector<2x8x8xf32>
    %690 = math.exp %689 : vector<2x8x8xf32>
    %cst_160 = arith.constant dense<0.000000e+00> : vector<2x8xf32>
    %691 = vector.multi_reduction <add>, %690, %cst_160 [2] : vector<2x8x8xf32> to vector<2x8xf32>
    %692 = vector.shape_cast %691 : vector<2x8xf32> to vector<2x8x1xf32>
    %693 = tpu.reciprocal %692 {approx = true} : vector<2x8x1xf32> -> vector<2x8x1xf32>
    %694 = vector.broadcast %693 : vector<2x8x1xf32> to vector<2x8x8xf32>
    %695 = arith.mulf %690, %694 : vector<2x8x8xf32>
    %696 = arith.truncf %695 : vector<2x8x8xf32> to vector<2x8x8xbf16>
    "tpu.trace_start"() <{level = 10 : i32, message = "bqk,bkd->bqd"}> : () -> ()
    %cst_161 = arith.constant dense<0.000000e+00> : vector<2x8x8xf32>
    %697 = tpu.matmul %696, %684, %cst_161 {dimension_numbers = #tpu.dot_dimension_numbers<[2], [1], [1], [2], [0, 0, 0, 1, 1, 2], [0], [0]>} : vector<2x8x8xbf16>, vector<2x8x8xbf16>, vector<2x8x8xf32> -> vector<2x8x8xf32>
    "tpu.trace_stop"() : () -> ()
    %698 = vector.shape_cast %697 : vector<2x8x8xf32> to vector<16x8xf32>
    %699 = vector.extract_strided_slice %384 {offsets = [24, 0], sizes = [8, 32], strides = [1, 1]} : vector<32x32xbf16> to vector<8x32xbf16>
    %700 = arith.truncf %698 : vector<16x8xf32> to vector<16x8xbf16>
    %cst_162 = arith.constant dense<0.000000e+00> : vector<16x32xf32>
    %701 = tpu.matmul %700, %699, %cst_162 {dimension_numbers = #tpu.dot_dimension_numbers<[1], [0], [0], [1], [0, 0, 1, 1], [], []>} : vector<16x8xbf16>, vector<8x32xbf16>, vector<16x32xf32> -> vector<16x32xf32>
    %702 = arith.addf %673, %701 : vector<16x32xf32>
    %703 = arith.addf %545, %702 : vector<16x32xf32>
    %cst_163 = arith.constant dense<0.000000e+00> : vector<16xf32>
    %704 = vector.multi_reduction <add>, %703, %cst_163 [1] : vector<16x32xf32> to vector<16xf32>
    %705 = vector.shape_cast %704 : vector<16xf32> to vector<16x1xf32>
    %cst_164 = arith.constant 3.200000e+01 : f32
    %706 = vector.broadcast %cst_164 : f32 to vector<16x1xf32>
    %707 = arith.divf %705, %706 : vector<16x1xf32>
    %708 = vector.broadcast %707 : vector<16x1xf32> to vector<16x32xf32>
    %709 = arith.subf %703, %708 : vector<16x32xf32>
    %710 = vector.broadcast %707 : vector<16x1xf32> to vector<16x32xf32>
    %711 = arith.subf %703, %710 : vector<16x32xf32>
    %712 = arith.mulf %709, %711 : vector<16x32xf32>
    %cst_165 = arith.constant dense<0.000000e+00> : vector<16xf32>
    %713 = vector.multi_reduction <add>, %712, %cst_165 [1] : vector<16x32xf32> to vector<16xf32>
    %714 = vector.shape_cast %713 : vector<16xf32> to vector<16x1xf32>
    %cst_166 = arith.constant 3.200000e+01 : f32
    %715 = vector.broadcast %cst_166 : f32 to vector<16x1xf32>
    %716 = arith.divf %714, %715 : vector<16x1xf32>
    %717 = vector.broadcast %707 : vector<16x1xf32> to vector<16x32xf32>
    %718 = arith.subf %703, %717 : vector<16x32xf32>
    %cst_167 = arith.constant 9.99999974E-6 : f32
    %719 = vector.broadcast %cst_167 : f32 to vector<16x1xf32>
    %720 = arith.addf %716, %719 : vector<16x1xf32>
    %721 = math.rsqrt %720 : vector<16x1xf32>
    %722 = vector.broadcast %721 : vector<16x1xf32> to vector<16x32xf32>
    %723 = arith.mulf %718, %722 : vector<16x32xf32>
    %c22 = arith.constant 22 : index
    %c0_168 = arith.constant 0 : index
    %724 = vector.load %arg5[%c22, %c0_168] : memref<32x128xf32, #tpu.memory_space<vmem>>, vector<1x32xf32>
    %725 = vector.broadcast %724 : vector<1x32xf32> to vector<16x32xf32>
    %726 = arith.mulf %723, %725 : vector<16x32xf32>
    %c23 = arith.constant 23 : index
    %c0_169 = arith.constant 0 : index
    %727 = vector.load %arg5[%c23, %c0_169] : memref<32x128xf32, #tpu.memory_space<vmem>>, vector<1x32xf32>
    %728 = vector.broadcast %727 : vector<1x32xf32> to vector<16x32xf32>
    %729 = arith.addf %726, %728 : vector<16x32xf32>
    %730 = arith.truncf %729 : vector<16x32xf32> to vector<16x32xbf16>
    %cst_170 = arith.constant dense<0.000000e+00> : vector<16x64xf32>
    %731 = tpu.matmul %730, %385, %cst_170 {dimension_numbers = #tpu.dot_dimension_numbers<[1], [0], [0], [1], [0, 0, 1, 1], [], []>} : vector<16x32xbf16>, vector<32x64xbf16>, vector<16x64xf32> -> vector<16x64xf32>
    %c24 = arith.constant 24 : index
    %c0_171 = arith.constant 0 : index
    %732 = vector.load %arg5[%c24, %c0_171] : memref<32x128xf32, #tpu.memory_space<vmem>>, vector<1x64xf32>
    %733 = vector.broadcast %732 : vector<1x64xf32> to vector<16x64xf32>
    %734 = arith.addf %731, %733 : vector<16x64xf32>
    %cst_172 = arith.constant 0.000000e+00 : f32
    %735 = vector.broadcast %cst_172 : f32 to vector<16x64xf32>
    %736 = arith.maximumf %734, %735 : vector<16x64xf32>
    %737 = arith.truncf %736 : vector<16x64xf32> to vector<16x64xbf16>
    %cst_173 = arith.constant dense<0.000000e+00> : vector<16x32xf32>
    %738 = tpu.matmul %737, %387, %cst_173 {dimension_numbers = #tpu.dot_dimension_numbers<[1], [0], [0], [1], [0, 0, 1, 1], [], []>} : vector<16x64xbf16>, vector<64x32xbf16>, vector<16x32xf32> -> vector<16x32xf32>
    %739 = arith.addf %703, %738 : vector<16x32xf32>
    %c25 = arith.constant 25 : index
    %c0_174 = arith.constant 0 : index
    %740 = vector.load %arg5[%c25, %c0_174] : memref<32x128xf32, #tpu.memory_space<vmem>>, vector<1x32xf32>
    %741 = vector.broadcast %740 : vector<1x32xf32> to vector<16x32xf32>
    %742 = arith.addf %739, %741 : vector<16x32xf32>
    %cst_175 = arith.constant dense<0.000000e+00> : vector<16xf32>
    %743 = vector.multi_reduction <add>, %742, %cst_175 [1] : vector<16x32xf32> to vector<16xf32>
    %744 = vector.shape_cast %743 : vector<16xf32> to vector<16x1xf32>
    %cst_176 = arith.constant 3.200000e+01 : f32
    %745 = vector.broadcast %cst_176 : f32 to vector<16x1xf32>
    %746 = arith.divf %744, %745 : vector<16x1xf32>
    %747 = vector.broadcast %746 : vector<16x1xf32> to vector<16x32xf32>
    %748 = arith.subf %742, %747 : vector<16x32xf32>
    %749 = vector.broadcast %746 : vector<16x1xf32> to vector<16x32xf32>
    %750 = arith.subf %742, %749 : vector<16x32xf32>
    %751 = arith.mulf %748, %750 : vector<16x32xf32>
    %cst_177 = arith.constant dense<0.000000e+00> : vector<16xf32>
    %752 = vector.multi_reduction <add>, %751, %cst_177 [1] : vector<16x32xf32> to vector<16xf32>
    %753 = vector.shape_cast %752 : vector<16xf32> to vector<16x1xf32>
    %cst_178 = arith.constant 3.200000e+01 : f32
    %754 = vector.broadcast %cst_178 : f32 to vector<16x1xf32>
    %755 = arith.divf %753, %754 : vector<16x1xf32>
    %756 = vector.broadcast %746 : vector<16x1xf32> to vector<16x32xf32>
    %757 = arith.subf %742, %756 : vector<16x32xf32>
    %cst_179 = arith.constant 9.99999974E-6 : f32
    %758 = vector.broadcast %cst_179 : f32 to vector<16x1xf32>
    %759 = arith.addf %755, %758 : vector<16x1xf32>
    %760 = math.rsqrt %759 : vector<16x1xf32>
    %761 = vector.broadcast %760 : vector<16x1xf32> to vector<16x32xf32>
    %762 = arith.mulf %757, %761 : vector<16x32xf32>
    %c26 = arith.constant 26 : index
    %c0_180 = arith.constant 0 : index
    %763 = vector.load %arg5[%c26, %c0_180] : memref<32x128xf32, #tpu.memory_space<vmem>>, vector<1x32xf32>
    %764 = vector.broadcast %763 : vector<1x32xf32> to vector<16x32xf32>
    %765 = arith.mulf %762, %764 : vector<16x32xf32>
    %c27 = arith.constant 27 : index
    %c0_181 = arith.constant 0 : index
    %766 = vector.load %arg5[%c27, %c0_181] : memref<32x128xf32, #tpu.memory_space<vmem>>, vector<1x32xf32>
    %767 = vector.broadcast %766 : vector<1x32xf32> to vector<16x32xf32>
    %768 = arith.addf %765, %767 : vector<16x32xf32>
    %c0_182 = arith.constant 0 : index
    %c0_183 = arith.constant 0 : index
    %769 = vector.load %arg4[%c0_182, %c0_183] : memref<32x128xbf16, #tpu.memory_space<vmem>>, vector<32x128xbf16>
    %770 = arith.truncf %768 : vector<16x32xf32> to vector<16x32xbf16>
    %cst_184 = arith.constant dense<0.000000e+00> : vector<16x128xf32>
    %771 = tpu.matmul %770, %769, %cst_184 {dimension_numbers = #tpu.dot_dimension_numbers<[1], [0], [0], [1], [0, 0, 1, 1], [], []>} : vector<16x32xbf16>, vector<32x128xbf16>, vector<16x128xf32> -> vector<16x128xf32>
    %c0_185 = arith.constant 0 : index
    %c0_186 = arith.constant 0 : index
    %772 = vector.load %arg6[%c0_185, %c0_186] : memref<16x128xf32, #tpu.memory_space<vmem>>, vector<16x128xf32>
    tpu.vector_store %arg6[%c0_185, %c0_186], %771 {strides = array<i32>} : memref<16x128xf32, #tpu.memory_space<vmem>>, vector<16x128xf32>,
    return
  }
}

</mosaic_0001>

<bundles_post_ra>
// kernel: transformer_decoder_forward.1
= control target key start
LH: loop header
LB: loop body
LE: loop exit
PB: predicated region body
PF: predicated region fallthrough
CT: control target
= control target key end

     0   :  { %vm67_vm0 = vcmask 261120   ;;  %s4447_s0 = inlined_call_operand.vmem [shape: f32[16,32], index: 0, kind: input, shape index: {}]   ;;  %s4448_s1 = inlined_call_operand.vmem [shape: f32[16,32], index: 1, kind: input, shape index: {}]   ;;  %s4449_s2 = inlined_call_operand.vmem [shape: bf16[2,32,320], index: 2, kind: input, shape index: {}]   ;;  %s4450_s3 = inlined_call_operand.vmem [shape: bf16[2,64,32], index: 3, kind: input, shape index: {}]   ;;  %s4451_s4 = inlined_call_operand.vmem [shape: bf16[32,128], index: 4, kind: input, shape index: {}]   ;;  %s4452_s5 = inlined_call_operand.vmem [shape: f32[32,128], index: 5, kind: input, shape index: {}]   ;;  %s4453_s6 = inlined_call_operand.hbm [shape: f32[16,128], index: 6, kind: output, shape index: {}]  }
   0x1   :  { %v3545_v0 = vld [vmem:[%s4447_s0] sm:$0xff]  ;;  %v3550_v1 = vld [vmem:[%s4447_s0 + $0x8] sm:$0xff] }
   0x2   :  { %v68_v2 = vsel %vm67_vm0, %v3545_v0, 0.0  ;;  %v71_v3 = vsel %vm67_vm0, %v3550_v1, 0.0 }
   0x3   :  { %69 = vadd.xlane.f32.xlu0 %v68_v2 }
   0xb   :  { %72 = vadd.xlane.f32.xlu0 %v71_v3 }
   0xc   :  { %11 = vsyncpa [#allocation3], 0  ;;  %v3490_v4 = vmov 32.0   ;;  %v3567_v21 = vld [vmem:[%s4449_s2 + $0x18] sm:$0xff]  ;;  %v3572_v22 = vld [vmem:[%s4449_s2 + $0x24] sm:$0xff]  ;;  %s3491_s14 = smov 88  }
   0xd   :  { %3306 = vrcp.f32 %v3490_v4  ;;  %v3575_v23 = vunpack.c.l.b16 %v3567_v21  ;;  %v3578_v24 = vunpack.c.l.b16 %v3572_v22  ;;  %v3585_v26 = vld [vmem:[%s4449_s2] sm:$0xff]  ;;  %v3590_v27 = vld [vmem:[%s4449_s2 + $0xc] sm:$0xff]  ;;  %s3492_s15 = smov 96   ;;  %s3493_s16 = smov 120   ;;  %vm172_vm8 = vcmask 64512  }
   0xe   :  { %v3593_v28 = vunpack.c.l.b16 %v3585_v26  ;;  %v3596_v29 = vunpack.c.l.b16 %v3590_v27  ;;  %v3278_v50 = vld [vmem:[%s4452_s5] ss:$0 sm:$0xff]  ;;  %v3279_v55 = vld [vmem:[%s4452_s5 + $0x1] ss:$0 sm:$0xff]  ;;  %v3280_v60 = vld [vmem:[%s4452_s5 + $0x2] ss:$0 sm:$0xff] }
   0xf   :  { %v139_v25 = vpack.c.b16 %v3578_v24, %v3575_v23  ;;  %s3494_s17 = smov 80   ;;  %s3495_s18 = smov 112   ;;  %vm245_vm10 = vcmask 1043456  }
  0x10   :  { %v138_v32 = vpack.c.b16 %v3596_v29, %v3593_v28  ;;  %s3497_s19 = smov 64   ;;  %s3498_s20 = smov 56  }
  0x11   :  { %151 = vmatpush.bf16.msra.mxu0 %v139_v25  ;;  %s3499_s21 = smov 32   ;;  %s3500_s22 = smov 72  }
  0x12   :  { %s3501_s23 = smov 48   ;;  %s3502_s24 = smov 104  }
  0x13   :  { %v3307_v5 = vpop.eup %3306  ;;  %s3503_s0 = smov 40   ;;  %s3088_s30 = sshll.u32 %s4453_s6, 4  ;;  %s3089_s30 = int_to_ptr.hbm [resolvable:$true] %s3088_s30 }
  0x14   :  { %v75_v6 = vmul.f32 32.0, %v3307_v5  ;;  %vm79_vm1 = vweird.f32 %v3307_v5 }
  0x15   :  { %152 = vmatpush.bf16.msra.mxu0 %v138_v32 }
  0x16   :  { %v76_v7 = vsub.f32 1.0, %v75_v6 }
  0x18   :  { %v77_v8 = vmul.f32 %v3307_v5, %v76_v7 }
  0x1a   :  { %v78_v9 = vadd.f32 %v3307_v5, %v77_v8 }
  0x1c   :  { %v3556_v10 = vsel %vm79_vm1, %v3307_v5, %v78_v9 }
  0x76   :  { %v70_v11 = vpop.xlane.xlu0 %69 }
  0x77   :  { %v81_v12 = vmul.f32 %v3556_v10, %v70_v11 }
  0x79   :  { %v83_v13 = vsub.f32 %v3545_v0, %v81_v12 }
  0x7b   :  { %v85_v14 = vmul.f32 %v83_v13, %v83_v13 }
  0x7d   :  { %v87_v15 = vsel %vm67_vm0, %v85_v14, 0.0 }
  0x7e   :  { %88 = vadd.xlane.f32.xlu1 %v87_v15  ;;  %v73_v16 = vpop.xlane.xlu0 %72 }
  0x7f   :  { %v82_v17 = vmul.f32 %v3556_v10, %v73_v16 }
  0x81   :  { %v84_v18 = vsub.f32 %v3550_v1, %v82_v17 }
  0x83   :  { %v86_v19 = vmul.f32 %v84_v18, %v84_v18 }
  0x85   :  { %v90_v20 = vsel %vm67_vm0, %v86_v19, 0.0 }
  0x86   :  { %91 = vadd.xlane.f32.xlu1 %v90_v20 }
  0xf1   :  { %v89_v30 = vpop.xlane.xlu1 %88 }
  0xf2   :  { %v93_v31 = vmul.f32 %v89_v30, %v3556_v10 }
  0xf4   :  { %v95_v33 = vadd.f32 1e-05, %v93_v31 }
  0xf6   :  { %3308 = vrsqrt.f32 %v95_v33  ;;  %vm103_vm3 = vweird.f32 %v95_v33 }
  0xf9   :  { %v92_v34 = vpop.xlane.xlu1 %91 }
  0xfa   :  { %v94_v35 = vmul.f32 %v92_v34, %v3556_v10 }
  0xfc   :  { %v3309_v36 = vpop.eup %3308  ;;  %v96_v37 = vadd.f32 1e-05, %v94_v35 }
  0xfd   :  { %v98_v38 = vmul.f32 %v3309_v36, %v95_v33  ;;  %vm104_vm2 = vweird.f32 %v3309_v36 }
  0xfe   :  { %3310 = vrsqrt.f32 %v96_v37  ;;  %vm105_vm4 = vmor %vm103_vm3, %vm104_vm2  ;;  %vm113_vm6 = vweird.f32 %v96_v37 }
  0xff   :  { %v99_v39 = vmul.f32 %v3309_v36, %v98_v38 }
 0x101   :  { %v100_v40 = vmul.f32 0.5, %v99_v39  ;;  %v61_v39 = vlaneseq }
 0x103   :  { %v101_v41 = vsub.f32 1.5, %v100_v40  ;;  %v62_v40 = vshrl.u32 %v61_v39, 7 }
 0x104   :  { %v3311_v42 = vpop.eup %3310 }
 0x105   :  { %v102_v43 = vmul.f32 %v3309_v36, %v101_v41  ;;  %v108_v44 = vmul.f32 %v3311_v42, %v96_v37  ;;  %vm114_vm5 = vweird.f32 %v3311_v42  ;;  %v64_v41 = vand.u32 127, %v61_v39 }
 0x106   :  { %vm115_vm7 = vmor %vm113_vm6, %vm114_vm5 }
 0x107   :  { %v109_v45 = vmul.f32 %v3311_v42, %v108_v44  ;;  %v106_v46 = vsel %vm105_vm4, %v3309_v36, %v102_v43  ;;  %vm65_vm9 = vcmp.gt.s32.totalorder %v64_v41, %v62_v40 }
 0x108   :  { %v117_v49 = vmul.f32 %v106_v46, %v83_v13 }
 0x109   :  { %v110_v47 = vmul.f32 0.5, %v109_v45 }
 0x10a   :  { %v121_v54 = vmul.f32 %v3278_v50, %v117_v49 }
 0x10b   :  { %v111_v48 = vsub.f32 1.5, %v110_v47 }
 0x10c   :  { %v125_v57 = vadd.f32 %v3279_v55, %v121_v54 }
 0x10d   :  { %v112_v51 = vmul.f32 %v3311_v42, %v111_v48 }
 0x10f   :  { %v116_v52 = vsel %vm115_vm7, %v3311_v42, %v112_v51  ;;  %v3496_v42 = vmov 0.0  }
 0x110   :  { %v118_v53 = vmul.f32 %v116_v52, %v84_v18  ;;  %v3646_v43 = vsel %vm65_vm9, -1e+30, %v3496_v42  ;;  %vm1514_vm9 = vcmask 523264  }
 0x112   :  { %v122_v56 = vmul.f32 %v3278_v50, %v118_v53 }
 0x114   :  { %v126_v58 = vadd.f32 %v3279_v55, %v122_v56 }
 0x116   :  { %v127_v59 = vpack.c.bf16 %v126_v58, %v125_v57 }
 0x118   :  { %3100 = vmatmul.msk.bf16.vlgmr.msra.gmra.mxu0 %vm67_vm0, %v127_v59 }
 0x195   :  { %v154_v61 = vpop.f32.mrf.mxu0 }
 0x196   :  { %v155_v62 = vadd.f32 %v3280_v60, %v154_v61 }
 0x198   :  { %v161_v63 = vmul.f32 0.35355338, %v155_v62  ;;  %v165_v2 = vpack.c.bf16 %v155_v62, %v155_v62 }
 0x19a   :  { %v163_v3 = vpack.c.bf16 %v161_v63, %v161_v63  ;;  %v168_v4 = vunpack.c.l.b16 %v165_v2 }
 0x19c   :  { %v3612_v5 = vpack.c.b16 %v168_v4, %v168_v4  ;;  %v310_v6 = vunpack.c.l.b16 %v163_v3 }
 0x19d   :  { %v156_v7 = vpop.f32.mrf.mxu0 }
 0x19e   :  { %v157_v8 = vadd.f32 %v3280_v60, %v156_v7  ;;  %314 = vrot.lane.b32.xlu0 %v3612_v5, %s3491_s14  ;;  %170 = vrot.lane.b32.xlu2 %v3612_v5, %s3492_s15  ;;  %v3618_v9 = vpack.c.b16 %v310_v6, %v310_v6 }
 0x1a0   :  { %v166_v11 = vpack.c.bf16 %v157_v8, %v157_v8  ;;  %312 = vrot.lane.b32.xlu1 %v3618_v9, %s3493_s16  ;;  %v162_v14 = vmul.f32 0.35355338, %v157_v8 }
 0x1a2   :  { %v193_v12 = vunpack.c.l.b16 %v166_v11  ;;  %v164_v15 = vpack.c.bf16 %v162_v14, %v162_v14 }
 0x1a4   :  { %v3622_v13 = vpack.c.b16 %v193_v12, %v193_v12  ;;  %v336_v16 = vunpack.c.l.b16 %v164_v15 }
 0x1a6   :  { %195 = vrot.lane.b32.xlu2 %v3622_v13, %s3492_s15  ;;  %v3632_v17 = vpack.c.b16 %v336_v16, %v336_v16 }
 0x1a8   :  { %455 = vrot.lane.b32.xlu1 %v3612_v5, %s3494_s17 }
 0x1ae   :  { %340 = vrot.lane.b32.xlu2 %v3622_v13, %s3491_s14 }
 0x1b0   :  { %453 = vrot.lane.b32.xlu1 %v3618_v9, %s3495_s18 }
 0x1b6   :  { %338 = vrot.lane.b32.xlu2 %v3632_v17, %s3493_s16 }
 0x1f8   :  { %v171_v18 = vpop.permute.xlu2 %170 }
 0x1f9   :  { %v177_v19 = vsel %vm172_vm8, %v171_v18, 0 }
 0x1fa   :  { %186 = vmatpush.bf16.xpose.msra.mxu1 %v177_v19 }
 0x200   :  { %v196_v20 = vpop.permute.xlu2 %195 }
 0x201   :  { %3101 = vmatmul.msk.bf16.vlgmr.msra.gmra.mxu1 %vm172_vm8, %v163_v3  ;;  %v201_v25 = vsel %vm172_vm8, %v196_v20, 0  ;;  %v284_v20 = vpack.c.b16 %v3593_v28, %v3593_v28 }
 0x202   :  { %210 = vmatpush.bf16.xpose.msra.mxu2 %v201_v25 }
 0x208   :  { %v341_v30 = vpop.permute.xlu2 %340 }
 0x209   :  { %3102 = vmatmul.msk.bf16.vlgmr.msra.gmra.mxu2 %vm172_vm8, %v164_v15  ;;  %v346_v31 = vsel %vm172_vm8, %v341_v30, 0 }
 0x20a   :  { %355 = vmatpush.bf16.xpose.msrb.mxu2 %v346_v31 }
 0x210   :  { %v315_v32 = vpop.permute.xlu0 %314  ;;  %v339_v35 = vpop.permute.xlu2 %338 }
 0x211   :  { %v320_v33 = vsel %vm172_vm8, %v315_v32, 0 }
 0x212   :  { %329 = vmatpush.bf16.xpose.msrb.mxu1 %v320_v33  ;;  %v313_v34 = vpop.permute.xlu1 %312 }
 0x219   :  { %3106 = vmatmul.msk.bf16.vlgmr.msrb.gmra.mxu1 %vm172_vm8, %v313_v34  ;;  %3107 = vmatmul.msk.bf16.vlgmr.msrb.gmra.mxu2 %vm172_vm8, %v339_v35 }
 0x21a   :  { %v456_v36 = vpop.permute.xlu1 %455 }
 0x21b   :  { %v461_v37 = vsel %vm172_vm8, %v456_v36, 0 }
 0x21c   :  { %470 = vmatpush.bf16.xpose.msra.mxu2 %v461_v37 }
 0x222   :  { %v454_v38 = vpop.permute.xlu1 %453 }
 0x229   :  { %3111 = vmatmul.msk.bf16.vlgmr.msra.gmra.mxu2 %vm172_vm8, %v454_v38 }
 0x27e   :  { %v188_v44 = vpop.f32.mrf.mxu1 }
 0x27f   :  { %v189_v45 = vadd.f32 %v188_v44, %v3646_v43 }
 0x281   :  { %v216_v46 = vsel %vm172_vm8, %v189_v45, -inf }
 0x282   :  { %217 = vmax.xlane.f32.xlu2 %v216_v46 }
 0x286   :  { %v190_v47 = vpop.f32.mrf.mxu1 }
 0x28c   :  { %v212_v48 = vpop.f32.mrf.mxu2 }
 0x28d   :  { %v213_v49 = vadd.f32 %v212_v48, %v3646_v43 }
 0x28f   :  { %v219_v50 = vsel %vm172_vm8, %v213_v49, -inf }
 0x290   :  { %220 = vmax.xlane.f32.xlu0 %v219_v50 }
 0x294   :  { %v214_v51 = vpop.f32.mrf.mxu2 }
 0x296   :  { %v331_v52 = vpop.f32.mrf.mxu1 }
 0x297   :  { %v332_v53 = vadd.f32 %v331_v52, %v3646_v43 }
 0x299   :  { %v361_v54 = vsel %vm172_vm8, %v332_v53, -inf }
 0x29a   :  { %362 = vmax.xlane.f32.xlu2 %v361_v54 }
 0x29c   :  { %v357_v55 = vpop.f32.mrf.mxu2 }
 0x29d   :  { %v358_v25 = vadd.f32 %v357_v55, %v3646_v43 }
 0x29e   :  { %v333_v56 = vpop.f32.mrf.mxu1 }
 0x29f   :  { %v364_v30 = vsel %vm172_vm8, %v358_v25, -inf }
 0x2a4   :  { %240 = vrot.lane.b32.xlu0 %v3612_v5, %s3497_s19  ;;  %v359_v57 = vpop.f32.mrf.mxu2 }
 0x2ac   :  { %v472_v58 = vpop.f32.mrf.mxu2 }
 0x2ad   :  { %v473_v31 = vadd.f32 %v472_v58, %v3646_v43 }
 0x2af   :  { %v499_v28 = vsel %vm172_vm8, %v473_v31, -inf }
 0x2b4   :  { %v474_v59 = vpop.f32.mrf.mxu2 }
 0x2f5   :  { %v218_v60 = vpop.xlane.xlu2 %217 }
 0x2f6   :  { %v222_v61 = vsub.f32 %v189_v45, %v218_v60 }
 0x2f8   :  { %v224_v62 = vmul.f32 1.442695, %v222_v61 }
 0x2fa   :  { %3312 = vpow2.f32 %v224_v62 }
 0x300   :  { %v3313_v63 = vpop.eup %3312 }
 0x301   :  { %v228_v2 = vsel %vm172_vm8, %v3313_v63, 0.0 }
 0x302   :  { %229 = vadd.xlane.f32.xlu1 %v228_v2 }
 0x303   :  { %v221_v3 = vpop.xlane.xlu0 %220 }
 0x304   :  { %v223_v4 = vsub.f32 %v213_v49, %v221_v3 }
 0x306   :  { %v226_v6 = vmul.f32 1.442695, %v223_v4 }
 0x308   :  { %3314 = vpow2.f32 %v226_v6 }
 0x30d   :  { %v363_v7 = vpop.xlane.xlu2 %362 }
 0x30e   :  { %v3315_v8 = vpop.eup %3314  ;;  %v367_v11 = vsub.f32 %v332_v53, %v363_v7  ;;  %v428_v7 = vpack.c.b16 %v3596_v29, %v3596_v29 }
 0x30f   :  { %v231_v12 = vsel %vm172_vm8, %v3315_v8, 0.0 }
 0x310   :  { %v369_v14 = vmul.f32 1.442695, %v367_v11  ;;  %232 = vadd.xlane.f32.xlu2 %v231_v12 }
 0x312   :  { %3316 = vpow2.f32 %v369_v14 }
 0x316   :  { %v241_v15 = vpop.permute.xlu0 %240 }
 0x317   :  { %v247_v16 = vsel %vm245_vm10, %v241_v15, 0 }
 0x318   :  { %v3317_v18 = vpop.eup %3316  ;;  %256 = vmatpush.bf16.msra.mxu3 %v247_v16 }
 0x319   :  { %v373_v19 = vsel %vm172_vm8, %v3317_v18, 0.0 }
 0x31a   :  { %374 = vadd.xlane.f32.xlu0 %v373_v19 }
 0x31b   :  { %385 = vrot.lane.b32.xlu1 %v3612_v5, %s3498_s20 }
 0x328   :  { %262 = vrot.lane.b32.xlu2 %v3622_v13, %s3497_s19 }
 0x32e   :  { %285 = vrot.lane.b32.xlu0 %v284_v20, %s3499_s21 }
 0x330   :  { %478 = vrot.lane.b32.xlu2 %v3622_v13, %s3494_s17 }
 0x338   :  { %476 = vrot.lane.b32.xlu2 %v3632_v17, %s3495_s18 }
 0x345   :  { %365 = vmax.xlane.f32.xlu1 %v364_v30 }
 0x35e   :  { %406 = vrot.lane.b32.xlu1 %v3622_v13, %s3498_s20 }
 0x361   :  { %500 = vmax.xlane.f32.xlu2 %v499_v28 }
 0x366   :  { %593 = vrot.lane.b32.xlu1 %v3612_v5, %s3500_s22 }
 0x36e   :  { %616 = vrot.lane.b32.xlu1 %v3622_v13, %s3500_s22 }
 0x375   :  { %v230_v32 = vpop.xlane.xlu1 %229 }
 0x376   :  { %3318 = vrcp.f32 %v230_v32 }
 0x379   :  { %523 = vrot.lane.b32.xlu2 %v3612_v5, %s3501_s23 }
 0x37c   :  { %v3319_v33 = vpop.eup %3318 }
 0x37d   :  { %v236_v34 = vmul.f32 %v3319_v33, %v3313_v63 }
 0x37f   :  { %v238_v35 = vpack.c.bf16 %v236_v34, %v236_v34 }
 0x381   :  { %3103 = vmatmul.msk.bf16.vlgmr.msra.gmra.mxu3 %vm172_vm8, %v238_v35 }
 0x383   :  { %v233_v36 = vpop.xlane.xlu2 %232 }
 0x384   :  { %3320 = vrcp.f32 %v233_v36 }
 0x38a   :  { %v3321_v37 = vpop.eup %3320 }
 0x38b   :  { %v263_v38 = vpop.permute.xlu2 %262  ;;  %v237_v39 = vmul.f32 %v3321_v37, %v3315_v8 }
 0x38c   :  { %v268_v40 = vsel %vm245_vm10, %v263_v38, 0 }
 0x38d   :  { %v386_v41 = vpop.permute.xlu1 %385  ;;  %277 = vmatpush.bf16.msrb.mxu3 %v268_v40  ;;  %v375_v44 = vpop.xlane.xlu0 %374  ;;  %v239_v45 = vpack.c.bf16 %v237_v39, %v237_v39 }
 0x38e   :  { %v391_v42 = vsel %vm245_vm10, %v386_v41, 0  ;;  %3322 = vrcp.f32 %v375_v44 }
 0x391   :  { %400 = vmatpush.bf16.msra.mxu3 %v391_v42 }
 0x392   :  { %3104 = vmatmul.msk.bf16.vlgmr.msrb.gmra.mxu3 %vm172_vm8, %v239_v45 }
 0x393   :  { %v479_v46 = vpop.permute.xlu2 %478 }
 0x394   :  { %v484_v47 = vsel %vm172_vm8, %v479_v46, 0  ;;  %v3323_v48 = vpop.eup %3322 }
 0x395   :  { %493 = vmatpush.bf16.xpose.msrb.mxu3 %v484_v47  ;;  %v381_v49 = vmul.f32 %v3323_v48, %v3317_v18 }
 0x397   :  { %v383_v50 = vpack.c.bf16 %v381_v49, %v381_v49 }
 0x39b   :  { %v477_v52 = vpop.permute.xlu2 %476 }
 0x3a0   :  { %v286_v51 = vpop.permute.xlu0 %285 }
 0x3a1   :  { %v291_v53 = vsel %vm245_vm10, %v286_v51, 0 }
 0x3a2   :  { %3108 = vmatmul.msk.bf16.vlgmr.msra.gmra.mxu3 %vm172_vm8, %v383_v50  ;;  %300 = vmatpush.bf16.msrb.mxu0 %v291_v53 }
 0x3b2   :  { %3112 = vmatmul.msk.bf16.vlgmr.msrb.gmra.mxu3 %vm172_vm8, %v477_v52 }
 0x3b8   :  { %v366_v54 = vpop.xlane.xlu1 %365 }
 0x3b9   :  { %v368_v55 = vsub.f32 %v358_v25, %v366_v54 }
 0x3bb   :  { %v371_v56 = vmul.f32 1.442695, %v368_v55 }
 0x3bd   :  { %3324 = vpow2.f32 %v371_v56 }
 0x3c3   :  { %v3325_v57 = vpop.eup %3324 }
 0x3c4   :  { %v376_v58 = vsel %vm172_vm8, %v3325_v57, 0.0 }
 0x3c5   :  { %377 = vadd.xlane.f32.xlu0 %v376_v58 }
 0x3d0   :  { %v407_v59 = vpop.permute.xlu1 %406 }
 0x3d1   :  { %v412_v60 = vsel %vm245_vm10, %v407_v59, 0 }
 0x3d2   :  { %421 = vmatpush.bf16.msra.mxu0 %v412_v60 }
 0x3d4   :  { %v501_v61 = vpop.xlane.xlu2 %500 }
 0x3d5   :  { %v505_v62 = vsub.f32 %v473_v31, %v501_v61 }
 0x3d7   :  { %v507_v63 = vmul.f32 1.442695, %v505_v62  ;;  %v566_v62 = vpack.c.b16 %v3575_v23, %v3575_v23  ;;  %v3281_v23 = vld [vmem:[%s4452_s5 + $0x3] ss:$0 sm:$0xff] }
 0x3d8   :  { %v594_v2 = vpop.permute.xlu1 %593 }
 0x3d9   :  { %3326 = vpow2.f32 %v507_v63  ;;  %v599_v3 = vsel %vm172_vm8, %v594_v2, 0  ;;  %591 = vrot.lane.b32.xlu0 %v3618_v9, %s3502_s24 }
 0x3da   :  { %608 = vmatpush.bf16.xpose.msra.mxu3 %v599_v3 }
 0x3dc   :  { %v524_v12 = vpop.permute.xlu2 %523 }
 0x3dd   :  { %v529_v15 = vsel %vm245_vm10, %v524_v12, 0 }
 0x3df   :  { %v3327_v4 = vpop.eup %3326 }
 0x3e0   :  { %v511_v6 = vsel %vm172_vm8, %v3327_v4, 0.0  ;;  %v617_v32 = vpop.permute.xlu1 %616 }
 0x3e1   :  { %544 = vrot.lane.b32.xlu0 %v3622_v13, %s3501_s23  ;;  %512 = vadd.xlane.f32.xlu2 %v511_v6  ;;  %v622_v34 = vsel %vm172_vm8, %v617_v32, 0 }
 0x3f9   :  { %614 = vrot.lane.b32.xlu2 %v3632_v17, %s3502_s24 }
 0x401   :  { %429 = vrot.lane.b32.xlu2 %v428_v7, %s3499_s21 }
 0x404   :  { %v258_v8 = vpop.f32.mrf.mxu3 }
 0x40c   :  { %v260_v11 = vpop.f32.mrf.mxu3 }
 0x415   :  { %v279_v9 = vpop.f32.mrf.mxu3 }
 0x416   :  { %v283_v14 = vpack.c.bf16 %v279_v9, %v258_v8 }
 0x418   :  { %3105 = vmatmul.msk.bf16.vlgmr.msrb.gmra.mxu0 %vm172_vm8, %v283_v14 }
 0x419   :  { %538 = vmatpush.bf16.msrb.mxu0 %v529_v15 }
 0x41d   :  { %v281_v16 = vpop.f32.mrf.mxu3 }
 0x425   :  { %v402_v18 = vpop.f32.mrf.mxu3 }
 0x42d   :  { %v404_v19 = vpop.f32.mrf.mxu3 }
 0x435   :  { %v495_v20 = vpop.f32.mrf.mxu3 }
 0x436   :  { %v496_v17 = vadd.f32 %v495_v20, %v3646_v43 }
 0x438   :  { %v502_v29 = vsel %vm172_vm8, %v496_v17, -inf  ;;  %v378_v25 = vpop.xlane.xlu0 %377 }
 0x439   :  { %503 = vmax.xlane.f32.xlu1 %v502_v29  ;;  %3328 = vrcp.f32 %v378_v25 }
 0x43d   :  { %v497_v30 = vpop.f32.mrf.mxu3 }
 0x43f   :  { %v3329_v31 = vpop.eup %3328 }
 0x440   :  { %v382_v28 = vmul.f32 %v3329_v31, %v3325_v57 }
 0x442   :  { %v384_v33 = vpack.c.bf16 %v382_v28, %v382_v28 }
 0x444   :  { %3109 = vmatmul.msk.bf16.vlgmr.msra.gmra.mxu0 %vm172_vm8, %v384_v33 }
 0x445   :  { %631 = vmatpush.bf16.xpose.msra.mxu0 %v622_v34 }
 0x44b   :  { %v592_v35 = vpop.permute.xlu0 %591 }
 0x44c   :  { %3116 = vmatmul.msk.bf16.vlgmr.msra.gmra.mxu3 %vm172_vm8, %v592_v35 }
 0x453   :  { %v545_v41 = vpop.permute.xlu0 %544 }
 0x454   :  { %v513_v36 = vpop.xlane.xlu2 %512  ;;  %v550_v45 = vsel %vm245_vm10, %v545_v41, 0 }
 0x455   :  { %3330 = vrcp.f32 %v513_v36 }
 0x45b   :  { %v3331_v37 = vpop.eup %3330 }
 0x45c   :  { %v519_v38 = vmul.f32 %v3331_v37, %v3327_v4  ;;  %v615_v39 = vpop.permute.xlu2 %614 }
 0x45e   :  { %v521_v40 = vpack.c.bf16 %v519_v38, %v519_v38  ;;  %v704_v38 = vpack.c.b16 %v3578_v24, %v3578_v24 }
 0x460   :  { %3113 = vmatmul.msk.bf16.vlgmr.msrb.gmra.mxu0 %vm172_vm8, %v521_v40 }
 0x464   :  { %v430_v42 = vpop.permute.xlu2 %429 }
 0x465   :  { %v435_v44 = vsel %vm245_vm10, %v430_v42, 0 }
 0x466   :  { %444 = vmatpush.bf16.msra.mxu1 %v435_v44 }
 0x46a   :  { %559 = vmatpush.bf16.msrb.mxu1 %v550_v45 }
 0x470   :  { %3117 = vmatmul.msk.bf16.vlgmr.msra.gmra.mxu0 %vm172_vm8, %v615_v39 }
 0x495   :  { %v302_v49 = vpop.f32.mrf.mxu0 }
 0x496   :  { %v307_v12 = vadd.f32 %v3281_v23, %v302_v49 }
 0x49d   :  { %v3716_v52 = vpop.f32.mrf.mxu0 }
 0x4ac   :  { %v504_v46 = vpop.xlane.xlu1 %503 }
 0x4ad   :  { %v506_v47 = vsub.f32 %v496_v17, %v504_v46 }
 0x4af   :  { %v509_v48 = vmul.f32 1.442695, %v506_v47 }
 0x4b1   :  { %3332 = vpow2.f32 %v509_v48 }
 0x4b7   :  { %v3333_v50 = vpop.eup %3332 }
 0x4b8   :  { %v514_v51 = vsel %vm172_vm8, %v3333_v50, 0.0 }
 0x4b9   :  { %515 = vadd.xlane.f32.xlu2 %v514_v51 }
 0x4c1   :  { %v423_v53 = vpop.f32.mrf.mxu0 }
 0x4c2   :  { %v427_v54 = vpack.c.bf16 %v423_v53, %v402_v18 }
 0x4c4   :  { %3110 = vmatmul.msk.bf16.vlgmr.msra.gmra.mxu1 %vm172_vm8, %v427_v54 }
 0x4c9   :  { %v425_v55 = vpop.f32.mrf.mxu0 }
 0x4cf   :  { %v610_v56 = vpop.f32.mrf.mxu3 }
 0x4d0   :  { %v611_v57 = vadd.f32 %v610_v56, %v3646_v43 }
 0x4d2   :  { %v637_v58 = vsel %vm172_vm8, %v611_v57, -inf }
 0x4d3   :  { %638 = vmax.xlane.f32.xlu1 %v637_v58 }
 0x4d7   :  { %v612_v59 = vpop.f32.mrf.mxu3 }
 0x4dd   :  { %v540_v60 = vpop.f32.mrf.mxu0 }
 0x4e5   :  { %v542_v61 = vpop.f32.mrf.mxu0 }
 0x4e6   :  { %v308_v61 = vadd.f32 %v3281_v23, %v3716_v52  ;;  %v3759_v52 = vunpack.c.h.b16 %v3567_v21  ;;  %v3768_v23 = vunpack.c.h.b16 %v3590_v27 }
 0x4ec   :  { %567 = vrot.lane.b32.xlu1 %v566_v62, %s3499_s21 }
 0x4ed   :  { %v633_v63 = vpop.f32.mrf.mxu0 }
 0x4ee   :  { %v634_v2 = vadd.f32 %v633_v63, %v3646_v43 }
 0x4f0   :  { %v640_v3 = vsel %vm172_vm8, %v634_v2, -inf }
 0x4f1   :  { %641 = vmax.xlane.f32.xlu0 %v640_v3 }
 0x4f4   :  { %705 = vrot.lane.b32.xlu1 %v704_v38, %s3499_s21 }
 0x4f5   :  { %v635_v4 = vpop.f32.mrf.mxu0 }
 0x505   :  { %682 = vrot.lane.b32.xlu0 %v3622_v13, %s3503_s0 }
 0x52c   :  { %v516_v6 = vpop.xlane.xlu2 %515 }
 0x52d   :  { %3334 = vrcp.f32 %v516_v6 }
 0x533   :  { %v3335_v7 = vpop.eup %3334 }
 0x534   :  { %v520_v8 = vmul.f32 %v3335_v7, %v3333_v50 }
 0x536   :  { %v522_v11 = vpack.c.bf16 %v520_v8, %v520_v8 }
 0x538   :  { %3114 = vmatmul.msk.bf16.vlgmr.msrb.gmra.mxu1 %vm172_vm8, %v522_v11  ;;  %v3765_v11 = vunpack.c.h.b16 %v3585_v26 }
 0x541   :  { %v446_v9 = vpop.f32.mrf.mxu1 }
 0x542   :  { %v451_v14 = vadd.f32 %v446_v9, %v307_v12  ;;  %v790_v12 = vpack.c.b16 %v3768_v23, %v3765_v11 }
 0x546   :  { %v639_v15 = vpop.xlane.xlu1 %638 }
 0x547   :  { %v643_v16 = vsub.f32 %v611_v57, %v639_v15 }
 0x549   :  { %v645_v18 = vmul.f32 1.442695, %v643_v16  ;;  %v448_v34 = vpop.f32.mrf.mxu1 }
 0x54a   :  { %v452_v63 = vadd.f32 %v448_v34, %v308_v61 }
 0x54b   :  { %3336 = vpow2.f32 %v645_v18 }
 0x551   :  { %v3337_v19 = vpop.eup %3336 }
 0x552   :  { %v649_v13 = vsel %vm172_vm8, %v3337_v19, 0.0 }
 0x553   :  { %650 = vadd.xlane.f32.xlu2 %v649_v13 }
 0x55e   :  { %v568_v20 = vpop.permute.xlu1 %567 }
 0x55f   :  { %v573_v17 = vsel %vm245_vm10, %v568_v20, 0 }
 0x560   :  { %582 = vmatpush.bf16.msrb.mxu2 %v573_v17 }
 0x564   :  { %v642_v29 = vpop.xlane.xlu0 %641 }
 0x565   :  { %v644_v25 = vsub.f32 %v634_v2, %v642_v29 }
 0x566   :  { %v706_v50 = vpop.permute.xlu1 %705 }
 0x567   :  { %v647_v30 = vmul.f32 1.442695, %v644_v25  ;;  %v711_v51 = vsel %vm245_vm10, %v706_v50, 0 }
 0x568   :  { %720 = vmatpush.bf16.msrb.mxu3 %v711_v51 }
 0x569   :  { %3338 = vpow2.f32 %v647_v30 }
 0x56f   :  { %v3339_v31 = vpop.eup %3338 }
 0x570   :  { %v652_v28 = vsel %vm172_vm8, %v3339_v31, 0.0 }
 0x571   :  { %653 = vadd.xlane.f32.xlu2 %v652_v28 }
 0x577   :  { %v683_v32 = vpop.permute.xlu0 %682 }
 0x578   :  { %v688_v33 = vsel %vm245_vm10, %v683_v32, 0 }
 0x579   :  { %697 = vmatpush.bf16.msra.mxu2 %v688_v33 }
 0x589   :  { %661 = vrot.lane.b32.xlu2 %v3612_v5, %s3503_s0 }
 0x5b5   :  { %v561_v35 = vpop.f32.mrf.mxu1 }
 0x5b6   :  { %v565_v36 = vpack.c.bf16 %v561_v35, %v540_v60 }
 0x5b8   :  { %3115 = vmatmul.msk.bf16.vlgmr.msrb.gmra.mxu2 %vm172_vm8, %v565_v36 }
 0x5bd   :  { %v563_v37 = vpop.f32.mrf.mxu1 }
 0x5c6   :  { %v651_v39 = vpop.xlane.xlu2 %650 }
 0x5c7   :  { %3340 = vrcp.f32 %v651_v39 }
 0x5cd   :  { %v3341_v41 = vpop.eup %3340 }
 0x5ce   :  { %v657_v44 = vmul.f32 %v3341_v41, %v3337_v19 }
 0x5d0   :  { %v659_v48 = vpack.c.bf16 %v657_v44, %v657_v44  ;;  %v3282_v44 = vld [vmem:[%s4452_s5 + $0x4] ss:$0 sm:$0xff] }
 0x5e4   :  { %v654_v40 = vpop.xlane.xlu2 %653 }
 0x5e5   :  { %3342 = vrcp.f32 %v654_v40 }
 0x5eb   :  { %v3343_v42 = vpop.eup %3342 }
 0x5ec   :  { %v658_v45 = vmul.f32 %v3343_v42, %v3339_v31  ;;  %v662_v5 = vpop.permute.xlu2 %661 }
 0x5ed   :  { %v667_v46 = vsel %vm245_vm10, %v662_v5, 0 }
 0x5ee   :  { %v660_v47 = vpack.c.bf16 %v658_v45, %v658_v45  ;;  %676 = vmatpush.bf16.msra.mxu1 %v667_v46  ;;  %v27_v46 = vld [vmem:[%s4448_s1] sm:$0xff] }
 0x5f0   :  { %3119 = vmatmul.msk.bf16.vlgmr.msra.gmra.mxu2 %vm172_vm8, %v660_v47  ;;  %v28_v47 = vld [vmem:[%s4448_s1 + $0x8] sm:$0xff] }
 0x5f1   :  { %3118 = vmatmul.msk.bf16.vlgmr.msra.gmra.mxu1 %vm172_vm8, %v659_v48 }
 0x63b   :  { %v584_v24 = vpop.f32.mrf.mxu2 }
 0x63c   :  { %v589_v49 = vadd.f32 %v584_v24, %v451_v14  ;;  %v3283_v24 = vld [vmem:[%s4452_s5 + $0x5] ss:$0 sm:$0xff] }
 0x643   :  { %v586_v53 = vpop.f32.mrf.mxu2 }
 0x644   :  { %v590_v3 = vadd.f32 %v586_v53, %v452_v63  ;;  %v3796_v53 = vpack.c.bf16 %v28_v47, %v27_v46 }
 0x66e   :  { %v678_v54 = vpop.f32.mrf.mxu1 }
 0x673   :  { %v699_v55 = vpop.f32.mrf.mxu2 }
 0x674   :  { %v703_v56 = vpack.c.bf16 %v699_v55, %v678_v54 }
 0x676   :  { %v680_v57 = vpop.f32.mrf.mxu1  ;;  %3120 = vmatmul.msk.bf16.vlgmr.msrb.gmra.mxu3 %vm172_vm8, %v703_v56 }
 0x67b   :  { %v701_v58 = vpop.f32.mrf.mxu2 }
 0x67c   :  { %v3284_v58 = vld [vmem:[%s4452_s5 + $0x7] ss:$0 sm:$0xff] }
 0x6f9   :  { %v722_v59 = vpop.f32.mrf.mxu3 }
 0x6fa   :  { %v727_v60 = vadd.f32 %v722_v59, %v589_v49 }
 0x6fc   :  { %v3749_v62 = vadd.f32 %v727_v60, %v3545_v0  ;;  %v3762_v0 = vunpack.c.h.b16 %v3572_v22  ;;  %v3285_v60 = vld [vmem:[%s4452_s5 + $0x6] ss:$0 sm:$0xff] }
 0x6fe   :  { %v731_v2 = vsel %vm67_vm0, %v3749_v62, 0.0 }
 0x6ff   :  { %732 = vadd.xlane.f32.xlu1 %v731_v2 }
 0x701   :  { %v724_v4 = vpop.f32.mrf.mxu3 }
 0x702   :  { %v728_v6 = vadd.f32 %v724_v4, %v590_v3 }
 0x704   :  { %v3754_v7 = vadd.f32 %v728_v6, %v3550_v1  ;;  %v791_v1 = vpack.c.b16 %v3762_v0, %v3759_v52 }
 0x706   :  { %v734_v8 = vsel %vm67_vm0, %v3754_v7, 0.0  ;;  %803 = vmatpush.bf16.msrb.mxu0 %v791_v1 }
 0x707   :  { %735 = vadd.xlane.f32.xlu0 %v734_v8 }
 0x70a   :  { %804 = vmatpush.bf16.msrb.mxu0 %v790_v12 }
 0x71b   :  { %816 = vrot.lane.b32.xlu0 %v791_v1, %s3492_s15 }
 0x772   :  { %v733_v21 = vpop.xlane.xlu1 %732 }
 0x773   :  { %v737_v22 = vmul.f32 %v733_v21, %v3556_v10 }
 0x775   :  { %v739_v9 = vsub.f32 %v3749_v62, %v737_v22 }
 0x777   :  { %v741_v26 = vmul.f32 %v739_v9, %v739_v9 }
 0x779   :  { %v743_v14 = vsel %vm67_vm0, %v741_v26, 0.0 }
 0x77a   :  { %744 = vadd.xlane.f32.xlu2 %v743_v14  ;;  %v736_v27 = vpop.xlane.xlu0 %735 }
 0x77b   :  { %v738_v15 = vmul.f32 %v736_v27, %v3556_v10 }
 0x77d   :  { %v740_v16 = vsub.f32 %v3754_v7, %v738_v15 }
 0x77f   :  { %v742_v18 = vmul.f32 %v740_v16, %v740_v16 }
 0x781   :  { %v746_v19 = vsel %vm67_vm0, %v742_v18, 0.0 }
 0x782   :  { %747 = vadd.xlane.f32.xlu1 %v746_v19 }
 0x78d   :  { %v817_v13 = vpop.permute.xlu0 %816 }
 0x78e   :  { %829 = vmatpush.bf16.msrb.mxu1 %v817_v13 }
 0x79b   :  { %814 = vrot.lane.b32.xlu1 %v790_v12, %s3492_s15 }
 0x7ed   :  { %v745_v20 = vpop.xlane.xlu2 %744 }
 0x7ee   :  { %v749_v17 = vmul.f32 %v745_v20, %v3556_v10 }
 0x7f0   :  { %v751_v29 = vadd.f32 1e-05, %v749_v17 }
 0x7f2   :  { %3344 = vrsqrt.f32 %v751_v29  ;;  %vm759_vm12 = vweird.f32 %v751_v29 }
 0x7f5   :  { %v748_v25 = vpop.xlane.xlu1 %747 }
 0x7f6   :  { %v750_v30 = vmul.f32 %v748_v25, %v3556_v10 }
 0x7f8   :  { %v3345_v31 = vpop.eup %3344  ;;  %v752_v28 = vadd.f32 1e-05, %v750_v30 }
 0x7f9   :  { %v754_v32 = vmul.f32 %v3345_v31, %v751_v29  ;;  %vm760_vm11 = vweird.f32 %v3345_v31 }
 0x7fa   :  { %3346 = vrsqrt.f32 %v752_v28  ;;  %vm761_vm13 = vmor %vm759_vm12, %vm760_vm11  ;;  %vm769_vm15 = vweird.f32 %v752_v28 }
 0x7fb   :  { %v755_v33 = vmul.f32 %v3345_v31, %v754_v32 }
 0x7fd   :  { %v756_v34 = vmul.f32 0.5, %v755_v33 }
 0x7ff   :  { %v757_v35 = vsub.f32 1.5, %v756_v34 }
 0x800   :  { %v3347_v36 = vpop.eup %3346 }
 0x801   :  { %v758_v37 = vmul.f32 %v3345_v31, %v757_v35  ;;  %v764_v38 = vmul.f32 %v3347_v36, %v752_v28  ;;  %vm770_vm14 = vweird.f32 %v3347_v36 }
 0x802   :  { %vm771_vm1 = vmor %vm769_vm15, %vm770_vm14 }
 0x803   :  { %v765_v39 = vmul.f32 %v3347_v36, %v764_v38  ;;  %v762_v40 = vsel %vm761_vm13, %v3345_v31, %v758_v37 }
 0x804   :  { %v773_v45 = vmul.f32 %v762_v40, %v739_v9 }
 0x805   :  { %v766_v41 = vmul.f32 0.5, %v765_v39 }
 0x806   :  { %v777_v49 = vmul.f32 %v3282_v44, %v773_v45 }
 0x807   :  { %v767_v42 = vsub.f32 1.5, %v766_v41 }
 0x808   :  { %v781_v55 = vadd.f32 %v3283_v24, %v777_v49 }
 0x809   :  { %v768_v5 = vmul.f32 %v3347_v36, %v767_v42 }
 0x80b   :  { %v772_v48 = vsel %vm771_vm1, %v3347_v36, %v768_v5 }
 0x80c   :  { %v774_v50 = vmul.f32 %v772_v48, %v740_v16 }
 0x80d   :  { %v815_v51 = vpop.permute.xlu1 %814 }
 0x80e   :  { %v778_v54 = vmul.f32 %v3282_v44, %v774_v50  ;;  %830 = vmatpush.bf16.msrb.mxu1 %v815_v51 }
 0x810   :  { %v782_v56 = vadd.f32 %v3283_v24, %v778_v54 }
 0x811   :  { %3122 = vmatmul.msk.bf16.vlgmr.msrb.gmra.mxu1 %vm67_vm0, %v3796_v53 }
 0x812   :  { %v783_v57 = vpack.c.bf16 %v782_v56, %v781_v55 }
 0x814   :  { %3121 = vmatmul.msk.bf16.vlgmr.msrb.gmra.mxu0 %vm67_vm0, %v783_v57 }
 0x88e   :  { %v832_v59 = vpop.f32.mrf.mxu1 }
 0x88f   :  { %v833_v61 = vadd.f32 %v3284_v58, %v832_v59 }
 0x891   :  { %v843_v63 = vpack.c.bf16 %v833_v61, %v833_v61  ;;  %v806_v2 = vpop.f32.mrf.mxu0 }
 0x892   :  { %v807_v3 = vadd.f32 %v3285_v60, %v806_v2 }
 0x893   :  { %v849_v4 = vsel %vm172_vm8, %v843_v63, 0  ;;  %v908_v6 = vunpack.c.l.b16 %v843_v63 }
 0x894   :  { %v839_v8 = vmul.f32 0.35355338, %v807_v3  ;;  %858 = vmatpush.bf16.xpose.msrb.mxu2 %v849_v4 }
 0x895   :  { %v3808_v1 = vpack.c.b16 %v908_v6, %v908_v6 }
 0x896   :  { %v841_v12 = vpack.c.bf16 %v839_v8, %v839_v8  ;;  %v834_v21 = vpop.f32.mrf.mxu1 }
 0x897   :  { %v835_v22 = vadd.f32 %v3284_v58, %v834_v21  ;;  %910 = vrot.lane.b32.xlu1 %v3808_v1, %s3492_s15  ;;  %986 = vrot.lane.b32.xlu2 %v3808_v1, %s3493_s16 }
 0x898   :  { %v982_v9 = vunpack.c.l.b16 %v841_v12 }
 0x899   :  { %v844_v26 = vpack.c.bf16 %v835_v22, %v835_v22  ;;  %v808_v14 = vpop.f32.mrf.mxu0 }
 0x89a   :  { %v809_v27 = vadd.f32 %v3285_v60, %v808_v14  ;;  %v3814_v15 = vpack.c.b16 %v982_v9, %v982_v9 }
 0x89b   :  { %v932_v16 = vunpack.c.l.b16 %v844_v26  ;;  %3123 = vmatmul.msk.bf16.vlgmr.msrb.gmra.mxu2 %vm172_vm8, %v841_v12  ;;  %v868_v18 = vsel %vm172_vm8, %v844_v26, 0  ;;  %v956_v26 = vpack.c.b16 %v3765_v11, %v3765_v11 }
 0x89c   :  { %v840_v19 = vmul.f32 0.35355338, %v809_v27  ;;  %984 = vrot.lane.b32.xlu0 %v3814_v15, %s3493_s16  ;;  %877 = vmatpush.bf16.xpose.msra.mxu3 %v868_v18 }
 0x89d   :  { %v3820_v13 = vpack.c.b16 %v932_v16, %v932_v16 }
 0x89e   :  { %v842_v20 = vpack.c.bf16 %v840_v19, %v840_v19 }
 0x89f   :  { %1012 = vrot.lane.b32.xlu1 %v3820_v13, %s3493_s16 }
 0x8a0   :  { %v1008_v17 = vunpack.c.l.b16 %v842_v20 }
 0x8a2   :  { %v3825_v29 = vpack.c.b16 %v1008_v17, %v1008_v17 }
 0x8a3   :  { %3124 = vmatmul.msk.bf16.vlgmr.msra.gmra.mxu3 %vm172_vm8, %v842_v20 }
 0x8a7   :  { %1010 = vrot.lane.b32.xlu1 %v3825_v29, %s3493_s16 }
 0x8f1   :  { %v987_v25 = vpop.permute.xlu2 %986 }
 0x8f2   :  { %v992_v30 = vsel %vm172_vm8, %v987_v25, 0 }
 0x8f3   :  { %1001 = vmatpush.bf16.xpose.msrb.mxu3 %v992_v30 }
 0x909   :  { %v911_v31 = vpop.permute.xlu1 %910 }
 0x90a   :  { %v916_v28 = vsel %vm245_vm10, %v911_v31, 0 }
 0x90b   :  { %925 = vmatpush.bf16.msra.mxu0 %v916_v28 }
 0x90e   :  { %v985_v32 = vpop.permute.xlu0 %984 }
 0x90f   :  { %3128 = vmatmul.msk.bf16.vlgmr.msrb.gmra.mxu3 %vm172_vm8, %v985_v32 }
 0x911   :  { %v1013_v33 = vpop.permute.xlu1 %1012 }
 0x912   :  { %v1018_v34 = vsel %vm172_vm8, %v1013_v33, 0 }
 0x913   :  { %1027 = vmatpush.bf16.xpose.msrb.mxu0 %v1018_v34 }
 0x919   :  { %v1011_v24 = vpop.permute.xlu1 %1010 }
 0x91e   :  { %v860_v35 = vpop.f32.mrf.mxu2 }
 0x91f   :  { %v883_v36 = vsel %vm172_vm8, %v860_v35, -inf }
 0x920   :  { %884 = vmax.xlane.f32.xlu0 %v883_v36 }
 0x926   :  { %v862_v37 = vpop.f32.mrf.mxu2  ;;  %v879_v38 = vpop.f32.mrf.mxu3 }
 0x927   :  { %v886_v39 = vsel %vm172_vm8, %v879_v38, -inf }
 0x928   :  { %887 = vmax.xlane.f32.xlu1 %v886_v39 }
 0x92e   :  { %v881_v40 = vpop.f32.mrf.mxu3 }
 0x934   :  { %1127 = vrot.lane.b32.xlu0 %v3808_v1, %s3495_s18 }
 0x941   :  { %934 = vrot.lane.b32.xlu1 %v3820_v13, %s3492_s15 }
 0x992   :  { %v1003_v41 = vpop.f32.mrf.mxu3 }
 0x993   :  { %v885_v42 = vpop.xlane.xlu0 %884  ;;  %v1033_v44 = vsel %vm172_vm8, %v1003_v41, -inf }
 0x994   :  { %v889_v45 = vsub.f32 %v860_v35, %v885_v42  ;;  %1034 = vmax.xlane.f32.xlu0 %v1033_v44 }
 0x996   :  { %v891_v5 = vmul.f32 1.442695, %v889_v45 }
 0x998   :  { %3348 = vpow2.f32 %v891_v5 }
 0x99a   :  { %v1005_v46 = vpop.f32.mrf.mxu3 }
 0x99b   :  { %v888_v49 = vpop.xlane.xlu1 %887 }
 0x99c   :  { %v890_v54 = vsub.f32 %v879_v38, %v888_v49 }
 0x99e   :  { %v3349_v47 = vpop.eup %3348  ;;  %v893_v55 = vmul.f32 1.442695, %v890_v54 }
 0x99f   :  { %v895_v48 = vsel %vm172_vm8, %v3349_v47, 0.0 }
 0x9a0   :  { %896 = vadd.xlane.f32.xlu2 %v895_v48  ;;  %3350 = vpow2.f32 %v893_v55 }
 0x9a6   :  { %v3351_v56 = vpop.eup %3350  ;;  %v1128_v58 = vpop.permute.xlu0 %1127 }
 0x9a7   :  { %v898_v57 = vsel %vm172_vm8, %v3351_v56, 0.0  ;;  %v1133_v22 = vsel %vm172_vm8, %v1128_v58, 0 }
 0x9a8   :  { %1057 = vrot.lane.b32.xlu0 %v3808_v1, %s3491_s14 }
 0x9b0   :  { %1148 = vrot.lane.b32.xlu0 %v3825_v29, %s3495_s18 }
 0x9b3   :  { %v935_v50 = vpop.permute.xlu1 %934 }
 0x9b4   :  { %v940_v51 = vsel %vm245_vm10, %v935_v50, 0 }
 0x9b5   :  { %949 = vmatpush.bf16.msra.mxu1 %v940_v51 }
 0x9b8   :  { %1125 = vrot.lane.b32.xlu2 %v3814_v15, %s3495_s18 }
 0x9e1   :  { %899 = vadd.xlane.f32.xlu2 %v898_v57 }
 0x9f9   :  { %1150 = vrot.lane.b32.xlu2 %v3820_v13, %s3495_s18 }
 0xa01   :  { %957 = vrot.lane.b32.xlu2 %v956_v26, %s3499_s21 }
 0xa07   :  { %v1035_v59 = vpop.xlane.xlu0 %1034 }
 0xa08   :  { %v1039_v60 = vsub.f32 %v1003_v41, %v1035_v59 }
 0xa0a   :  { %v1041_v61 = vmul.f32 1.442695, %v1039_v60 }
 0xa0c   :  { %3352 = vpow2.f32 %v1041_v61 }
 0xa12   :  { %v3353_v63 = vpop.eup %3352 }
 0xa13   :  { %v897_v2 = vpop.xlane.xlu2 %896  ;;  %v1045_v3 = vsel %vm172_vm8, %v3353_v63, 0.0 }
 0xa14   :  { %3354 = vrcp.f32 %v897_v2  ;;  %1046 = vadd.xlane.f32.xlu1 %v1045_v3  ;;  %v1100_v2 = vpack.c.b16 %v3768_v23, %v3768_v23 }
 0xa1a   :  { %v3355_v4 = vpop.eup %3354  ;;  %v1058_v6 = vpop.permute.xlu0 %1057 }
 0xa1b   :  { %v903_v8 = vmul.f32 %v3355_v4, %v3349_v47  ;;  %v1063_v12 = vsel %vm245_vm10, %v1058_v6, 0  ;;  %v1126_v9 = vpop.permute.xlu2 %1125 }
 0xa1c   :  { %1072 = vmatpush.bf16.msrb.mxu1 %v1063_v12 }
 0xa1d   :  { %v905_v21 = vpack.c.bf16 %v903_v8, %v903_v8 }
 0xa1f   :  { %3125 = vmatmul.msk.bf16.vlgmr.msra.gmra.mxu0 %vm172_vm8, %v905_v21 }
 0xa20   :  { %1142 = vmatpush.bf16.xpose.msra.mxu0 %v1133_v22 }
 0xa22   :  { %v1149_v28 = vpop.permute.xlu0 %1148 }
 0xa2f   :  { %3129 = vmatmul.msk.bf16.vlgmr.msrb.gmra.mxu0 %vm172_vm8, %v1011_v24 }
 0xa3f   :  { %3133 = vmatmul.msk.bf16.vlgmr.msra.gmra.mxu0 %vm172_vm8, %v1126_v9 }
 0xa54   :  { %v900_v14 = vpop.xlane.xlu2 %899 }
 0xa55   :  { %3356 = vrcp.f32 %v900_v14 }
 0xa5b   :  { %v3357_v27 = vpop.eup %3356 }
 0xa5c   :  { %v904_v16 = vmul.f32 %v3357_v27, %v3351_v56  ;;  %v1151_v18 = vpop.permute.xlu2 %1150 }
 0xa5d   :  { %v1156_v20 = vsel %vm172_vm8, %v1151_v18, 0 }
 0xa5e   :  { %v906_v19 = vpack.c.bf16 %v904_v16, %v904_v16 }
 0xa60   :  { %3126 = vmatmul.msk.bf16.vlgmr.msra.gmra.mxu1 %vm172_vm8, %v906_v19  ;;  %v1238_v19 = vpack.c.b16 %v3759_v52, %v3759_v52 }
 0xa61   :  { %1165 = vmatpush.bf16.xpose.msra.mxu1 %v1156_v20 }
 0xa64   :  { %v958_v36 = vpop.permute.xlu2 %957 }
 0xa65   :  { %v963_v37 = vsel %vm245_vm10, %v958_v36, 0 }
 0xa66   :  { %972 = vmatpush.bf16.msra.mxu2 %v963_v37 }
 0xa87   :  { %v1047_v17 = vpop.xlane.xlu1 %1046 }
 0xa88   :  { %3358 = vrcp.f32 %v1047_v17 }
 0xa8e   :  { %v3359_v25 = vpop.eup %3358 }
 0xa8f   :  { %v1053_v30 = vmul.f32 %v3359_v25, %v3353_v63 }
 0xa91   :  { %v1055_v31 = vpack.c.bf16 %v1053_v30, %v1053_v30 }
 0xa93   :  { %3130 = vmatmul.msk.bf16.vlgmr.msrb.gmra.mxu1 %vm172_vm8, %v1055_v31 }
 0xa9c   :  { %v927_v11 = vpop.f32.mrf.mxu0 }
 0xaa3   :  { %3134 = vmatmul.msk.bf16.vlgmr.msra.gmra.mxu1 %vm172_vm8, %v1149_v28 }
 0xaa4   :  { %v929_v32 = vpop.f32.mrf.mxu0 }
 0xaac   :  { %v1029_v33 = vpop.f32.mrf.mxu0 }
 0xaad   :  { %v1036_v34 = vsel %vm172_vm8, %v1029_v33, -inf }
 0xaae   :  { %1037 = vmax.xlane.f32.xlu0 %v1036_v34 }
 0xab4   :  { %v1031_v35 = vpop.f32.mrf.mxu0 }
 0xabc   :  { %v1144_v38 = vpop.f32.mrf.mxu0 }
 0xabd   :  { %v1171_v39 = vsel %vm172_vm8, %v1144_v38, -inf }
 0xabe   :  { %1172 = vmax.xlane.f32.xlu1 %v1171_v39 }
 0xac2   :  { %1195 = vrot.lane.b32.xlu0 %v3808_v1, %s3494_s17 }
 0xac4   :  { %v1146_v40 = vpop.f32.mrf.mxu0 }
 0xaca   :  { %1288 = vrot.lane.b32.xlu0 %v3820_v13, %s3502_s24 }
 0xad2   :  { %1263 = vrot.lane.b32.xlu0 %v3814_v15, %s3502_s24 }
 0xad7   :  { %1078 = vrot.lane.b32.xlu1 %v3820_v13, %s3491_s14 }
 0xadd   :  { %v951_v41 = vpop.f32.mrf.mxu1 }
 0xade   :  { %v955_v42 = vpack.c.bf16 %v951_v41, %v927_v11 }
 0xae0   :  { %3127 = vmatmul.msk.bf16.vlgmr.msra.gmra.mxu2 %vm172_vm8, %v955_v42 }
 0xae5   :  { %v953_v44 = vpop.f32.mrf.mxu1 }
 0xb10   :  { %v3876_v45 = vpop.f32.mrf.mxu1 }
 0xb18   :  { %v1076_v5 = vpop.f32.mrf.mxu1 }
 0xb20   :  { %v1167_v46 = vpop.f32.mrf.mxu1 }
 0xb21   :  { %v1038_v47 = vpop.xlane.xlu0 %1037  ;;  %v1174_v48 = vsel %vm172_vm8, %v1167_v46, -inf }
 0xb22   :  { %v1040_v24 = vsub.f32 %v1029_v33, %v1038_v47  ;;  %1175 = vmax.xlane.f32.xlu0 %v1174_v48 }
 0xb24   :  { %v1043_v49 = vmul.f32 1.442695, %v1040_v24 }
 0xb26   :  { %3360 = vpow2.f32 %v1043_v49 }
 0xb28   :  { %v1169_v15 = vpop.f32.mrf.mxu1 }
 0xb2c   :  { %v3361_v50 = vpop.eup %3360 }
 0xb2d   :  { %v1048_v51 = vsel %vm172_vm8, %v3361_v50, 0.0 }
 0xb2e   :  { %1049 = vadd.xlane.f32.xlu2 %v1048_v51 }
 0xb31   :  { %v1173_v54 = vpop.xlane.xlu1 %1172 }
 0xb32   :  { %v1177_v55 = vsub.f32 %v1144_v38, %v1173_v54 }
 0xb34   :  { %v1179_v56 = vmul.f32 1.442695, %v1177_v55  ;;  %v1196_v59 = vpop.permute.xlu0 %1195 }
 0xb35   :  { %v1201_v63 = vsel %vm245_vm10, %v1196_v59, 0 }
 0xb36   :  { %3362 = vpow2.f32 %v1179_v56 }
 0xb3c   :  { %v3363_v57 = vpop.eup %3362  ;;  %v1289_v3 = vpop.permute.xlu0 %1288 }
 0xb3d   :  { %v1183_v58 = vsel %vm172_vm8, %v3363_v57, 0.0  ;;  %v1294_v16 = vsel %vm172_vm8, %v1289_v3, 0 }
 0xb3e   :  { %1184 = vadd.xlane.f32.xlu1 %v1183_v58 }
 0xb44   :  { %v1264_v4 = vpop.permute.xlu0 %1263 }
 0xb46   :  { %1265 = vrot.lane.b32.xlu2 %v3808_v1, %s3502_s24 }
 0xb49   :  { %v1079_v60 = vpop.permute.xlu1 %1078 }
 0xb4a   :  { %v1084_v61 = vsel %vm245_vm10, %v1079_v60, 0 }
 0xb4b   :  { %1093 = vmatpush.bf16.msrb.mxu2 %v1084_v61 }
 0xb4e   :  { %1286 = vrot.lane.b32.xlu2 %v3825_v29, %s3502_s24 }
 0xb4f   :  { %1210 = vmatpush.bf16.msra.mxu2 %v1201_v63 }
 0xb57   :  { %1101 = vrot.lane.b32.xlu1 %v1100_v2, %s3499_s21 }
 0xb5f   :  { %1216 = vrot.lane.b32.xlu1 %v3820_v13, %s3494_s17 }
 0xb63   :  { %v974_v34 = vpop.f32.mrf.mxu2 }
 0xb6b   :  { %v3908_v37 = vpop.f32.mrf.mxu2 }
 0xb95   :  { %v1176_v6 = vpop.xlane.xlu0 %1175 }
 0xb96   :  { %v1178_v8 = vsub.f32 %v1167_v46, %v1176_v6 }
 0xb98   :  { %v1181_v12 = vmul.f32 1.442695, %v1178_v8 }
 0xb9a   :  { %3364 = vpow2.f32 %v1181_v12 }
 0xba0   :  { %v3365_v21 = vpop.eup %3364 }
 0xba1   :  { %v1050_v22 = vpop.xlane.xlu2 %1049  ;;  %v1186_v9 = vsel %vm172_vm8, %v3365_v21, 0.0 }
 0xba2   :  { %3366 = vrcp.f32 %v1050_v22  ;;  %1187 = vadd.xlane.f32.xlu2 %v1186_v9  ;;  %v1376_v9 = vpack.c.b16 %v3762_v0, %v3762_v0 }
 0xba8   :  { %v3367_v29 = vpop.eup %3366 }
 0xba9   :  { %v1054_v26 = vmul.f32 %v3367_v29, %v3361_v50  ;;  %v1266_v23 = vpop.permute.xlu2 %1265 }
 0xbaa   :  { %v1271_v14 = vsel %vm172_vm8, %v1266_v23, 0 }
 0xbab   :  { %v1056_v27 = vpack.c.bf16 %v1054_v26, %v1054_v26  ;;  %1280 = vmatpush.bf16.xpose.msrb.mxu1 %v1271_v14 }
 0xbad   :  { %3131 = vmatmul.msk.bf16.vlgmr.msrb.gmra.mxu2 %vm172_vm8, %v1056_v27 }
 0xbae   :  { %1303 = vmatpush.bf16.xpose.msrb.mxu2 %v1294_v16 }
 0xbb1   :  { %v1185_v18 = vpop.xlane.xlu1 %1184  ;;  %v1287_v11 = vpop.permute.xlu2 %1286 }
 0xbb2   :  { %3368 = vrcp.f32 %v1185_v18  ;;  %3138 = vmatmul.msk.bf16.vlgmr.msrb.gmra.mxu1 %vm172_vm8, %v1264_v4 }
 0xbb8   :  { %v3369_v20 = vpop.eup %3368 }
 0xbb9   :  { %v1191_v17 = vmul.f32 %v3369_v20, %v3363_v57  ;;  %v3286_v57 = vld [vmem:[%s4452_s5 + $0x8] ss:$0 sm:$0xff] }
 0xbba   :  { %1239 = vrot.lane.b32.xlu2 %v1238_v19, %s3499_s21  ;;  %v979_v58 = vadd.f32 %v3286_v57, %v974_v34 }
 0xbbb   :  { %v1193_v25 = vpack.c.bf16 %v1191_v17, %v1191_v17 }
 0xbbd   :  { %3135 = vmatmul.msk.bf16.vlgmr.msra.gmra.mxu2 %vm172_vm8, %v1193_v25 }
 0xbc2   :  { %1354 = vrot.lane.b32.xlu2 %v3820_v13, %s3500_s22 }
 0xbc9   :  { %v1102_v30 = vpop.permute.xlu1 %1101 }
 0xbca   :  { %v1107_v31 = vsel %vm245_vm10, %v1102_v30, 0 }
 0xbcb   :  { %1116 = vmatpush.bf16.msra.mxu3 %v1107_v31 }
 0xbcd   :  { %3139 = vmatmul.msk.bf16.vlgmr.msrb.gmra.mxu2 %vm172_vm8, %v1287_v11 }
 0xbd1   :  { %v1217_v28 = vpop.permute.xlu1 %1216 }
 0xbd2   :  { %v1222_v52 = vsel %vm245_vm10, %v1217_v28, 0 }
 0xbd3   :  { %1231 = vmatpush.bf16.msrb.mxu3 %v1222_v52 }
 0xc15   :  { %v1188_v32 = vpop.xlane.xlu2 %1187 }
 0xc16   :  { %3370 = vrcp.f32 %v1188_v32 }
 0xc1c   :  { %v3371_v5 = vpop.eup %3370 }
 0xc1d   :  { %v1240_v33 = vpop.permute.xlu2 %1239  ;;  %v1192_v46 = vmul.f32 %v3371_v5, %v3365_v21 }
 0xc1e   :  { %v1245_v35 = vsel %vm245_vm10, %v1240_v33, 0 }
 0xc1f   :  { %1254 = vmatpush.bf16.msrb.mxu0 %v1245_v35  ;;  %v1194_v48 = vpack.c.bf16 %v1192_v46, %v1192_v46  ;;  %v980_v35 = vadd.f32 %v3286_v57, %v3908_v37  ;;  %v3247_v57 = vld [vmem:[%s4449_s2 + $0x10] sm:$0xf0] }
 0xc25   :  { %v1355_v36 = vpop.permute.xlu2 %1354 }
 0xc26   :  { %v1360_v13 = vsel %vm245_vm10, %v1355_v36, 0 }
 0xc27   :  { %1369 = vmatpush.bf16.msra.mxu0 %v1360_v13 }
 0xc2f   :  { %v1282_v38 = vpop.f32.mrf.mxu1 }
 0xc30   :  { %v1095_v39 = vpop.f32.mrf.mxu2  ;;  %v1309_v40 = vsel %vm172_vm8, %v1282_v38, -inf }
 0xc31   :  { %v1099_v41 = vpack.c.bf16 %v1095_v39, %v3876_v45  ;;  %1310 = vmax.xlane.f32.xlu1 %v1309_v40 }
 0xc33   :  { %3132 = vmatmul.msk.bf16.vlgmr.msra.gmra.mxu3 %vm172_vm8, %v1099_v41 }
 0xc37   :  { %v1284_v42 = vpop.f32.mrf.mxu1 }
 0xc38   :  { %v1097_v44 = vpop.f32.mrf.mxu2 }
 0xc40   :  { %v1212_v47 = vpop.f32.mrf.mxu2 }
 0xc43   :  { %3136 = vmatmul.msk.bf16.vlgmr.msrb.gmra.mxu3 %vm172_vm8, %v1194_v48 }
 0xc48   :  { %v1214_v24 = vpop.f32.mrf.mxu2 }
 0xc4a   :  { %1377 = vrot.lane.b32.xlu1 %v1376_v9, %s3499_s21 }
 0xc50   :  { %v1305_v49 = vpop.f32.mrf.mxu2 }
 0xc51   :  { %v1312_v15 = vsel %vm172_vm8, %v1305_v49, -inf }
 0xc52   :  { %1313 = vmax.xlane.f32.xlu0 %v1312_v15 }
 0xc58   :  { %v1307_v50 = vpop.f32.mrf.mxu2 }
 0xc59   :  { %v3149_v50 = vld [vmem:[%s4449_s2 + $0x20] sm:$0xf] }
 0xca4   :  { %v1311_v51 = vpop.xlane.xlu1 %1310 }
 0xca5   :  { %v1315_v45 = vsub.f32 %v1282_v38, %v1311_v51  ;;  %v3248_v51 = vld [vmem:[%s4449_s2 + $0x28] sm:$0xf0] }
 0xca7   :  { %v1317_v54 = vmul.f32 1.442695, %v1315_v45  ;;  %v3150_v45 = vor.u32 %v3248_v51, %v3149_v50 }
 0xca9   :  { %3372 = vpow2.f32 %v1317_v54  ;;  %1479 = vmatpush.bf16.msra.mxu2 %v3150_v45 }
 0xcaf   :  { %v3373_v55 = vpop.eup %3372 }
 0xcb0   :  { %v1321_v56 = vsel %vm172_vm8, %v3373_v55, 0.0 }
 0xcb1   :  { %1322 = vadd.xlane.f32.xlu0 %v1321_v56  ;;  %v3145_v56 = vld [vmem:[%s4449_s2 + $0x8] sm:$0xf] }
 0xcb6   :  { %v1118_v59 = vpop.f32.mrf.mxu3 }
 0xcb7   :  { %v1123_v60 = vadd.f32 %v1118_v59, %v979_v58  ;;  %v3146_v59 = vor.u32 %v3247_v57, %v3145_v56  ;;  %v4007_v56 = vld [vmem:[%s4449_s2 + $0x48] sm:$0xff]  ;;  %v4012_v57 = vld [vmem:[%s4449_s2 + $0x54] sm:$0xff] }
 0xcb9   :  { %1480 = vmatpush.bf16.msra.mxu2 %v3146_v59  ;;  %v4018_v59 = vunpack.c.l.b16 %v4012_v57 }
 0xcbc   :  { %v1378_v0 = vpop.permute.xlu1 %1377 }
 0xcbd   :  { %v1383_v25 = vsel %vm245_vm10, %v1378_v0, 0 }
 0xcbe   :  { %v1120_v61 = vpop.f32.mrf.mxu3  ;;  %1392 = vmatpush.bf16.msra.mxu1 %v1383_v25 }
 0xcbf   :  { %v1124_v13 = vadd.f32 %v1120_v61, %v980_v35 }
 0xcc5   :  { %v1314_v63 = vpop.xlane.xlu0 %1313 }
 0xcc6   :  { %v1316_v2 = vsub.f32 %v1305_v49, %v1314_v63  ;;  %v1233_v3 = vpop.f32.mrf.mxu3 }
 0xcc7   :  { %v1237_v4 = vpack.c.bf16 %v1233_v3, %v1212_v47 }
 0xcc8   :  { %v1319_v6 = vmul.f32 1.442695, %v1316_v2 }
 0xcc9   :  { %3137 = vmatmul.msk.bf16.vlgmr.msrb.gmra.mxu0 %vm172_vm8, %v1237_v4 }
 0xcca   :  { %3374 = vpow2.f32 %v1319_v6 }
 0xcce   :  { %v1235_v8 = vpop.f32.mrf.mxu3 }
 0xcd0   :  { %v3375_v12 = vpop.eup %3374 }
 0xcd1   :  { %v1324_v21 = vsel %vm172_vm8, %v3375_v12, 0.0 }
 0xcd2   :  { %1325 = vadd.xlane.f32.xlu0 %v1324_v21 }
 0xce6   :  { %1333 = vrot.lane.b32.xlu0 %v3808_v1, %s3500_s22 }
 0xd24   :  { %v1323_v22 = vpop.xlane.xlu0 %1322 }
 0xd45   :  { %v1326_v29 = vpop.xlane.xlu0 %1325 }
 0xd46   :  { %3376 = vrcp.f32 %v1326_v29  ;;  %v1256_v26 = vpop.f32.mrf.mxu0 }
 0xd47   :  { %v1261_v23 = vadd.f32 %v1256_v26, %v1123_v60  ;;  %3378 = vrcp.f32 %v1323_v22 }
 0xd4c   :  { %v3377_v14 = vpop.eup %3376 }
 0xd4d   :  { %v1330_v27 = vmul.f32 %v3377_v14, %v3375_v12  ;;  %v3379_v18 = vpop.eup %3378  ;;  %v3287_v14 = vld [vmem:[%s4452_s5 + $0x9] ss:$0 sm:$0xff] }
 0xd4e   :  { %v1329_v19 = vmul.f32 %v3379_v18, %v3373_v55  ;;  %v1258_v30 = vpop.f32.mrf.mxu0 }
 0xd4f   :  { %v1332_v16 = vpack.c.bf16 %v1330_v27, %v1330_v27  ;;  %v1262_v39 = vadd.f32 %v1258_v30, %v1124_v13 }
 0xd50   :  { %v1331_v17 = vpack.c.bf16 %v1329_v19, %v1329_v19  ;;  %v3288_v19 = vld [vmem:[%s4452_s5 + $0xa] ss:$0 sm:$0xff] }
 0xd51   :  { %3141 = vmatmul.msk.bf16.vlgmr.msra.gmra.mxu0 %vm172_vm8, %v1332_v16 }
 0xd58   :  { %v1334_v20 = vpop.permute.xlu0 %1333 }
 0xd59   :  { %v1339_v1 = vsel %vm245_vm10, %v1334_v20, 0 }
 0xd5a   :  { %1348 = vmatpush.bf16.msra.mxu3 %v1339_v1 }
 0xd5d   :  { %3140 = vmatmul.msk.bf16.vlgmr.msra.gmra.mxu3 %vm172_vm8, %v1331_v17 }
 0xdce   :  { %v1371_v31 = vpop.f32.mrf.mxu0 }
 0xdd6   :  { %v1373_v11 = vpop.f32.mrf.mxu0 }
 0xdd7   :  { %v3253_v11 = vld [vmem:[%s4450_s3 + $0x10] sm:$0xff] }
 0xde0   :  { %v1350_v28 = vpop.f32.mrf.mxu3 }
 0xde1   :  { %v1375_v52 = vpack.c.bf16 %v1371_v31, %v1350_v28  ;;  %v3254_v31 = vld [vmem:[%s4450_s3 + $0x18] sm:$0xff]  ;;  %v3252_v28 = vld [vmem:[%s4450_s3 + $0x8] sm:$0xff] }
 0xde2   :  { %1522 = vmatpush.bf16.msrb.mxu3 %v3254_v31 }
 0xde3   :  { %3142 = vmatmul.msk.bf16.vlgmr.msra.gmra.mxu1 %vm172_vm8, %v1375_v52  ;;  %v3251_v52 = vld [vmem:[%s4450_s3] sm:$0xff] }
 0xde6   :  { %1523 = vmatpush.bf16.msrb.mxu3 %v3253_v11 }
 0xde8   :  { %v1352_v32 = vpop.f32.mrf.mxu3 }
 0xdea   :  { %1524 = vmatpush.bf16.msrb.mxu3 %v3252_v28  ;;  %v3292_v28 = vld [vmem:[%s4452_s5 + $0xe] ss:$0 sm:$0xff] }
 0xdee   :  { %1525 = vmatpush.bf16.msrb.mxu3 %v3251_v52 }
 0xe60   :  { %v1394_v33 = vpop.f32.mrf.mxu1 }
 0xe61   :  { %v1399_v34 = vadd.f32 %v1394_v33, %v1261_v23  ;;  %v3289_v33 = vld [vmem:[%s4452_s5 + $0xb] ss:$0 sm:$0xff] }
 0xe63   :  { %v3933_v36 = vadd.f32 %v1399_v34, %v3749_v62 }
 0xe65   :  { %v1403_v38 = vsel %vm67_vm0, %v3933_v36, 0.0 }
 0xe66   :  { %1404 = vadd.xlane.f32.xlu2 %v1403_v38 }
 0xe68   :  { %v1396_v40 = vpop.f32.mrf.mxu1 }
 0xe69   :  { %v1400_v41 = vadd.f32 %v1396_v40, %v1262_v39 }
 0xe6b   :  { %v3938_v42 = vadd.f32 %v1400_v41, %v3754_v7  ;;  %v3290_v41 = vld [vmem:[%s4452_s5 + $0xc] ss:$0 sm:$0xff] }
 0xe6d   :  { %v1406_v44 = vsel %vm67_vm0, %v3938_v42, 0.0 }
 0xe6e   :  { %1407 = vadd.xlane.f32.xlu0 %v1406_v44 }
 0xed9   :  { %v1405_v5 = vpop.xlane.xlu2 %1404 }
 0xeda   :  { %v1409_v37 = vmul.f32 %v1405_v5, %v3556_v10 }
 0xedc   :  { %v1411_v62 = vsub.f32 %v3933_v36, %v1409_v37 }
 0xede   :  { %v1413_v46 = vmul.f32 %v1411_v62, %v1411_v62 }
 0xee0   :  { %v1415_v47 = vsel %vm67_vm0, %v1413_v46, 0.0 }
 0xee1   :  { %1416 = vadd.xlane.f32.xlu1 %v1415_v47  ;;  %v1408_v48 = vpop.xlane.xlu0 %1407 }
 0xee2   :  { %v1410_v24 = vmul.f32 %v1408_v48, %v3556_v10 }
 0xee4   :  { %v1412_v49 = vsub.f32 %v3938_v42, %v1410_v24 }
 0xee6   :  { %v1414_v7 = vmul.f32 %v1412_v49, %v1412_v49 }
 0xee8   :  { %v1418_v15 = vsel %vm67_vm0, %v1414_v7, 0.0 }
 0xee9   :  { %1419 = vadd.xlane.f32.xlu2 %v1418_v15 }
 0xf54   :  { %v1417_v54 = vpop.xlane.xlu1 %1416 }
 0xf55   :  { %v1421_v55 = vmul.f32 %v1417_v54, %v3556_v10 }
 0xf57   :  { %v1423_v58 = vadd.f32 1e-05, %v1421_v55 }
 0xf59   :  { %3380 = vrsqrt.f32 %v1423_v58  ;;  %vm1431_vm3 = vweird.f32 %v1423_v58 }
 0xf5c   :  { %v1420_v60 = vpop.xlane.xlu2 %1419 }
 0xf5d   :  { %v1422_v61 = vmul.f32 %v1420_v60, %v3556_v10 }
 0xf5f   :  { %v3381_v63 = vpop.eup %3380  ;;  %v1424_v2 = vadd.f32 1e-05, %v1422_v61 }
 0xf60   :  { %v1426_v3 = vmul.f32 %v3381_v63, %v1423_v58  ;;  %vm1432_vm2 = vweird.f32 %v3381_v63  ;;  %v4015_v58 = vunpack.c.l.b16 %v4007_v56 }
 0xf61   :  { %3382 = vrsqrt.f32 %v1424_v2  ;;  %vm1433_vm4 = vmor %vm1431_vm3, %vm1432_vm2  ;;  %vm1441_vm6 = vweird.f32 %v1424_v2 }
 0xf62   :  { %v1427_v4 = vmul.f32 %v3381_v63, %v1426_v3  ;;  %v1602_v60 = vpack.c.b16 %v4018_v59, %v4015_v58 }
 0xf64   :  { %v1428_v6 = vmul.f32 0.5, %v1427_v4  ;;  %1614 = vmatpush.bf16.msrb.mxu0 %v1602_v60 }
 0xf66   :  { %v1429_v8 = vsub.f32 1.5, %v1428_v6 }
 0xf67   :  { %v3383_v12 = vpop.eup %3382 }
 0xf68   :  { %v1430_v21 = vmul.f32 %v3381_v63, %v1429_v8  ;;  %v1436_v22 = vmul.f32 %v3383_v12, %v1424_v2  ;;  %vm1442_vm5 = vweird.f32 %v3383_v12  ;;  %v4030_v2 = vld [vmem:[%s4449_s2 + $0x3c] sm:$0xff] }
 0xf69   :  { %vm1443_vm7 = vmor %vm1441_vm6, %vm1442_vm5  ;;  %v4037_v6 = vunpack.c.l.b16 %v4030_v2 }
 0xf6a   :  { %v1437_v9 = vmul.f32 %v3383_v12, %v1436_v22  ;;  %v1434_v29 = vsel %vm1433_vm4, %v3381_v63, %v1430_v21  ;;  %v4025_v63 = vld [vmem:[%s4449_s2 + $0x30] sm:$0xff] }
 0xf6b   :  { %v1445_v27 = vmul.f32 %v1434_v29, %v1411_v62  ;;  %v4034_v4 = vunpack.c.l.b16 %v4025_v63 }
 0xf6c   :  { %v1438_v26 = vmul.f32 0.5, %v1437_v9 }
 0xf6d   :  { %v1449_v20 = vmul.f32 %v3287_v14, %v1445_v27 }
 0xf6e   :  { %v1439_v23 = vsub.f32 1.5, %v1438_v26 }
 0xf6f   :  { %v1453_v0 = vadd.f32 %v3288_v19, %v1449_v20 }
 0xf70   :  { %v1440_v16 = vmul.f32 %v3383_v12, %v1439_v23 }
 0xf72   :  { %v1444_v18 = vsel %vm1443_vm7, %v3383_v12, %v1440_v16  ;;  %v1601_v12 = vpack.c.b16 %v4037_v6, %v4034_v4 }
 0xf73   :  { %v1446_v1 = vmul.f32 %v1444_v18, %v1412_v49 }
 0xf74   :  { %1615 = vmatpush.bf16.msrb.mxu0 %v1601_v12 }
 0xf75   :  { %v1450_v17 = vmul.f32 %v3287_v14, %v1446_v1 }
 0xf77   :  { %v1454_v25 = vadd.f32 %v3288_v19, %v1450_v17 }
 0xf79   :  { %v1455_v30 = vpack.c.bf16 %v1454_v25, %v1453_v0  ;;  %v3291_v25 = vld [vmem:[%s4452_s5 + $0xd] ss:$0 sm:$0xff] }
 0xf7b   :  { %3151 = vmatmul.msk.bf16.vlgmr.msra.gmra.mxu2 %vm67_vm0, %v1455_v30 }
 0xffe   :  { %v1482_v32 = vpop.f32.mrf.mxu2 }
 0xfff   :  { %v1483_v34 = vadd.f32 %v3289_v33, %v1482_v32 }
0x1001   :  { %v1487_v38 = vmax.f32 %v1483_v34, 0.0 }
0x1006   :  { %v1484_v35 = vpop.f32.mrf.mxu2 }
0x1007   :  { %v1485_v13 = vadd.f32 %v3289_v33, %v1484_v35 }
0x1009   :  { %v1488_v39 = vmax.f32 %v1485_v13, 0.0 }
0x100b   :  { %v1489_v40 = vpack.c.bf16 %v1488_v39, %v1487_v38  ;;  %v3293_v38 = vld [vmem:[%s4452_s5 + $0xf] ss:$0 sm:$0xff] }
0x100d   :  { %3168 = vmatmul.msk.bf16.vlgmr.msrb.gmra.mxu3 %vm1514_vm9, %v1489_v40 }
0x1090   :  { %v1527_v44 = vpop.f32.mrf.mxu3 }
0x1091   :  { %v1532_v5 = vadd.f32 %v1527_v44, %v3933_v36 }
0x1093   :  { %v3989_v37 = vadd.f32 %v3290_v41, %v1532_v5 }
0x1095   :  { %v1538_v62 = vsel %vm67_vm0, %v3989_v37, 0.0 }
0x1096   :  { %1539 = vadd.xlane.f32.xlu2 %v1538_v62 }
0x1098   :  { %v1529_v46 = vpop.f32.mrf.mxu3 }
0x1099   :  { %v1533_v47 = vadd.f32 %v1529_v46, %v3938_v42 }
0x109b   :  { %v3994_v48 = vadd.f32 %v3290_v41, %v1533_v47 }
0x109d   :  { %v1541_v24 = vsel %vm67_vm0, %v3994_v48, 0.0 }
0x109e   :  { %1542 = vadd.xlane.f32.xlu0 %v1541_v24 }
0x1109   :  { %v1540_v49 = vpop.xlane.xlu2 %1539 }
0x110a   :  { %v1544_v7 = vmul.f32 %v1540_v49, %v3556_v10 }
0x110c   :  { %v1546_v36 = vsub.f32 %v3989_v37, %v1544_v7 }
0x110e   :  { %v1548_v15 = vmul.f32 %v1546_v36, %v1546_v36 }
0x1110   :  { %v1550_v50 = vsel %vm67_vm0, %v1548_v15, 0.0 }
0x1111   :  { %1551 = vadd.xlane.f32.xlu2 %v1550_v50  ;;  %v1543_v51 = vpop.xlane.xlu0 %1542 }
0x1112   :  { %v1545_v45 = vmul.f32 %v1543_v51, %v3556_v10 }
0x1114   :  { %v1547_v42 = vsub.f32 %v3994_v48, %v1545_v45 }
0x1116   :  { %v1549_v54 = vmul.f32 %v1547_v42, %v1547_v42 }
0x1118   :  { %v1553_v55 = vsel %vm67_vm0, %v1549_v54, 0.0 }
0x1119   :  { %1554 = vadd.xlane.f32.xlu0 %v1553_v55 }
0x1184   :  { %v1552_v61 = vpop.xlane.xlu2 %1551 }
0x1185   :  { %v1556_v3 = vmul.f32 %v1552_v61, %v3556_v10 }
0x1187   :  { %v1558_v8 = vadd.f32 1e-05, %v1556_v3 }
0x1189   :  { %3384 = vrsqrt.f32 %v1558_v8  ;;  %vm1566_vm12 = vweird.f32 %v1558_v8 }
0x118c   :  { %v1555_v21 = vpop.xlane.xlu0 %1554 }
0x118d   :  { %v1557_v22 = vmul.f32 %v1555_v21, %v3556_v10 }
0x118f   :  { %v3385_v9 = vpop.eup %3384  ;;  %v1559_v29 = vadd.f32 1e-05, %v1557_v22 }
0x1190   :  { %v1561_v26 = vmul.f32 %v3385_v9, %v1558_v8  ;;  %vm1567_vm11 = vweird.f32 %v3385_v9 }
0x1191   :  { %3386 = vrsqrt.f32 %v1559_v29  ;;  %vm1568_vm13 = vmor %vm1566_vm12, %vm1567_vm11  ;;  %vm1576_vm15 = vweird.f32 %v1559_v29 }
0x1192   :  { %v1562_v23 = vmul.f32 %v3385_v9, %v1561_v26 }
0x1194   :  { %v1563_v14 = vmul.f32 0.5, %v1562_v23 }
0x1196   :  { %v1564_v27 = vsub.f32 1.5, %v1563_v14 }
0x1197   :  { %v3387_v16 = vpop.eup %3386 }
0x1198   :  { %v1565_v18 = vmul.f32 %v3385_v9, %v1564_v27  ;;  %v1571_v19 = vmul.f32 %v3387_v16, %v1559_v29  ;;  %vm1577_vm14 = vweird.f32 %v3387_v16 }
0x1199   :  { %vm1578_vm1 = vmor %vm1576_vm15, %vm1577_vm14 }
0x119a   :  { %v1572_v20 = vmul.f32 %v3387_v16, %v1571_v19  ;;  %v1569_v1 = vsel %vm1568_vm13, %v3385_v9, %v1565_v18 }
0x119b   :  { %v1580_v30 = vmul.f32 %v1569_v1, %v1546_v36 }
0x119c   :  { %v1573_v17 = vmul.f32 0.5, %v1572_v20 }
0x119d   :  { %v1584_v52 = vmul.f32 %v3291_v25, %v1580_v30 }
0x119e   :  { %v1574_v0 = vsub.f32 1.5, %v1573_v17 }
0x119f   :  { %v1588_v34 = vadd.f32 %v3292_v28, %v1584_v52 }
0x11a0   :  { %v1575_v31 = vmul.f32 %v3387_v16, %v1574_v0 }
0x11a2   :  { %v1579_v11 = vsel %vm1578_vm1, %v3387_v16, %v1575_v31 }
0x11a3   :  { %v1581_v32 = vmul.f32 %v1579_v11, %v1547_v42 }
0x11a5   :  { %v1585_v33 = vmul.f32 %v3291_v25, %v1581_v32 }
0x11a7   :  { %v1589_v35 = vadd.f32 %v3292_v28, %v1585_v33 }
0x11a9   :  { %v1590_v13 = vpack.c.bf16 %v1589_v35, %v1588_v34 }
0x11ab   :  { %3169 = vmatmul.msk.bf16.vlgmr.msrb.gmra.mxu0 %vm67_vm0, %v1590_v13 }
0x1228   :  { %v1617_v39 = vpop.f32.mrf.mxu0 }
0x1229   :  { %v1618_v40 = vadd.f32 %v3293_v38, %v1617_v39 }
0x122b   :  { %v1624_v41 = vmul.f32 0.35355338, %v1618_v40  ;;  %v1628_v44 = vpack.c.bf16 %v1618_v40, %v1618_v40 }
0x122d   :  { %v1631_v5 = vunpack.c.l.b16 %v1628_v44  ;;  %v1626_v62 = vpack.c.bf16 %v1624_v41, %v1624_v41 }
0x122f   :  { %v4052_v46 = vpack.c.b16 %v1631_v5, %v1631_v5  ;;  %v1771_v7 = vunpack.c.l.b16 %v1626_v62 }
0x1230   :  { %v1619_v47 = vpop.f32.mrf.mxu0 }
0x1231   :  { %v1620_v24 = vadd.f32 %v3293_v38, %v1619_v47  ;;  %1775 = vrot.lane.b32.xlu0 %v4052_v46, %s3491_s14  ;;  %1633 = vrot.lane.b32.xlu2 %v4052_v46, %s3492_s15  ;;  %v4060_v50 = vpack.c.b16 %v1771_v7, %v1771_v7 }
0x1233   :  { %v1629_v49 = vpack.c.bf16 %v1620_v24, %v1620_v24  ;;  %v1625_v51 = vmul.f32 0.35355338, %v1620_v24 }
0x1235   :  { %v1655_v36 = vunpack.c.l.b16 %v1629_v49  ;;  %v1627_v45 = vpack.c.bf16 %v1625_v51, %v1625_v51  ;;  %v1745_v51 = vpack.c.b16 %v4034_v4, %v4034_v4 }
0x1237   :  { %v4058_v15 = vpack.c.b16 %v1655_v36, %v1655_v36  ;;  %v1797_v42 = vunpack.c.l.b16 %v1627_v45 }
0x1239   :  { %1657 = vrot.lane.b32.xlu1 %v4058_v15, %s3492_s15  ;;  %1773 = vrot.lane.b32.xlu0 %v4060_v50, %s3493_s16  ;;  %v4070_v54 = vpack.c.b16 %v1797_v42, %v1797_v42 }
0x1241   :  { %1702 = vrot.lane.b32.xlu0 %v4052_v46, %s3497_s19 }
0x1249   :  { %1801 = vrot.lane.b32.xlu0 %v4058_v15, %s3491_s14 }
0x1251   :  { %1799 = vrot.lane.b32.xlu0 %v4070_v54, %s3493_s16 }
0x128b   :  { %v1634_v55 = vpop.permute.xlu2 %1633 }
0x128c   :  { %v1639_v60 = vsel %vm172_vm8, %v1634_v55, 0 }
0x128d   :  { %1648 = vmatpush.bf16.xpose.msrb.mxu1 %v1639_v60 }
0x1294   :  { %3170 = vmatmul.msk.bf16.vlgmr.msrb.gmra.mxu1 %vm172_vm8, %v1626_v62 }
0x12a3   :  { %v1776_v61 = vpop.permute.xlu0 %1775 }
0x12a4   :  { %v1781_v21 = vsel %vm172_vm8, %v1776_v61, 0 }
0x12ab   :  { %v1658_v3 = vpop.permute.xlu1 %1657  ;;  %v1774_v8 = vpop.permute.xlu0 %1773 }
0x12ac   :  { %v1663_v12 = vsel %vm172_vm8, %v1658_v3, 0 }
0x12ad   :  { %1672 = vmatpush.bf16.xpose.msrb.mxu2 %v1663_v12 }
0x12b3   :  { %v1703_v22 = vpop.permute.xlu0 %1702 }
0x12b4   :  { %v1708_v9 = vsel %vm245_vm10, %v1703_v22, 0  ;;  %3171 = vmatmul.msk.bf16.vlgmr.msrb.gmra.mxu2 %vm172_vm8, %v1627_v45 }
0x12b5   :  { %1790 = vmatpush.bf16.xpose.msra.mxu2 %v1781_v21  ;;  %1717 = vmatpush.bf16.msra.mxu3 %v1708_v9 }
0x12bb   :  { %v1802_v29 = vpop.permute.xlu0 %1801 }
0x12bc   :  { %v1807_v26 = vsel %vm172_vm8, %v1802_v29, 0 }
0x12bd   :  { %1816 = vmatpush.bf16.xpose.msrb.mxu3 %v1807_v26 }
0x12c3   :  { %v1800_v33 = vpop.permute.xlu0 %1799 }
0x12c4   :  { %3175 = vmatmul.msk.bf16.vlgmr.msra.gmra.mxu2 %vm172_vm8, %v1774_v8 }
0x1311   :  { %v1650_v23 = vpop.f32.mrf.mxu1 }
0x1312   :  { %v1651_v14 = vadd.f32 %v1650_v23, %v3646_v43 }
0x1314   :  { %v1678_v27 = vsel %vm172_vm8, %v1651_v14, -inf }
0x1315   :  { %1679 = vmax.xlane.f32.xlu2 %v1678_v27 }
0x1319   :  { %v1652_v16 = vpop.f32.mrf.mxu1 }
0x132d   :  { %1916 = vrot.lane.b32.xlu2 %v4052_v46, %s3494_s17 }
0x1337   :  { %v1674_v18 = vpop.f32.mrf.mxu2 }
0x1338   :  { %v1675_v19 = vadd.f32 %v1674_v18, %v3646_v43 }
0x133a   :  { %v1681_v20 = vsel %vm172_vm8, %v1675_v19, -inf }
0x133b   :  { %1682 = vmax.xlane.f32.xlu0 %v1681_v20 }
0x133f   :  { %v1676_v1 = vpop.f32.mrf.mxu2 }
0x1347   :  { %v1792_v17 = vpop.f32.mrf.mxu2 }
0x1348   :  { %v1793_v25 = vadd.f32 %v1792_v17, %v3646_v43 }
0x134a   :  { %v1822_v30 = vsel %vm172_vm8, %v1793_v25, -inf }
0x134f   :  { %1723 = vrot.lane.b32.xlu0 %v4058_v15, %s3497_s19  ;;  %v1794_v0 = vpop.f32.mrf.mxu2 }
0x1356   :  { %1823 = vmax.xlane.f32.xlu2 %v1822_v30 }
0x136e   :  { %1846 = vrot.lane.b32.xlu2 %v4052_v46, %s3498_s20 }
0x1376   :  { %1937 = vrot.lane.b32.xlu2 %v4070_v54, %s3495_s18 }
0x1388   :  { %v1680_v31 = vpop.xlane.xlu2 %1679 }
0x1389   :  { %v1684_v11 = vsub.f32 %v1651_v14, %v1680_v31 }
0x138b   :  { %v1686_v28 = vmul.f32 1.442695, %v1684_v11 }
0x138d   :  { %3388 = vpow2.f32 %v1686_v28 }
0x1390   :  { %v1917_v35 = vpop.permute.xlu2 %1916 }
0x1391   :  { %v1922_v61 = vsel %vm172_vm8, %v1917_v35, 0 }
0x1393   :  { %v3389_v52 = vpop.eup %3388 }
0x1394   :  { %v1690_v32 = vsel %vm172_vm8, %v3389_v52, 0.0 }
0x1395   :  { %1691 = vadd.xlane.f32.xlu1 %v1690_v32 }
0x13ae   :  { %1914 = vrot.lane.b32.xlu1 %v4060_v50, %s3495_s18  ;;  %v1683_v34 = vpop.xlane.xlu0 %1682 }
0x13af   :  { %v1685_v39 = vsub.f32 %v1675_v19, %v1683_v34 }
0x13b1   :  { %v1688_v40 = vmul.f32 1.442695, %v1685_v39 }
0x13b3   :  { %3390 = vpow2.f32 %v1688_v40 }
0x13b9   :  { %v3391_v24 = vpop.eup %3390 }
0x13ba   :  { %v1693_v36 = vsel %vm172_vm8, %v3391_v24, 0.0 }
0x13c1   :  { %v1724_v13 = vpop.permute.xlu0 %1723 }
0x13c2   :  { %v1729_v38 = vsel %vm245_vm10, %v1724_v13, 0 }
0x13c3   :  { %1738 = vmatpush.bf16.msra.mxu0 %v1729_v38 }
0x13c9   :  { %v1824_v41 = vpop.xlane.xlu2 %1823 }
0x13ca   :  { %v1828_v44 = vsub.f32 %v1793_v25, %v1824_v41 }
0x13cc   :  { %v1830_v5 = vmul.f32 1.442695, %v1828_v44 }
0x13ce   :  { %3392 = vpow2.f32 %v1830_v5 }
0x13d1   :  { %v1847_v62 = vpop.permute.xlu2 %1846 }
0x13d2   :  { %v1852_v47 = vsel %vm245_vm10, %v1847_v62, 0 }
0x13d3   :  { %1861 = vmatpush.bf16.msrb.mxu0 %v1852_v47 }
0x13d4   :  { %v3393_v49 = vpop.eup %3392 }
0x13d5   :  { %v1834_v7 = vsel %vm172_vm8, %v3393_v49, 0.0 }
0x13d6   :  { %1835 = vadd.xlane.f32.xlu0 %v1834_v7 }
0x13d8   :  { %1694 = vadd.xlane.f32.xlu1 %v1693_v36 }
0x13d9   :  { %v1938_v18 = vpop.permute.xlu2 %1937 }
0x13f1   :  { %1939 = vrot.lane.b32.xlu1 %v4058_v15, %s3494_s17 }
0x13f9   :  { %1746 = vrot.lane.b32.xlu1 %v1745_v51, %s3499_s21 }
0x1401   :  { %1867 = vrot.lane.b32.xlu1 %v4058_v15, %s3498_s20 }
0x1408   :  { %v1692_v45 = vpop.xlane.xlu1 %1691 }
0x1409   :  { %3394 = vrcp.f32 %v1692_v45  ;;  %1984 = vrot.lane.b32.xlu1 %v4052_v46, %s3501_s23 }
0x140f   :  { %v3395_v42 = vpop.eup %3394 }
0x1410   :  { %v1698_v55 = vmul.f32 %v3395_v42, %v3389_v52  ;;  %v1889_v52 = vpack.c.b16 %v4037_v6, %v4037_v6 }
0x1411   :  { %2077 = vrot.lane.b32.xlu1 %v4058_v15, %s3500_s22 }
0x1412   :  { %v1700_v60 = vpack.c.bf16 %v1698_v55, %v1698_v55 }
0x1414   :  { %3172 = vmatmul.msk.bf16.vlgmr.msra.gmra.mxu3 %vm172_vm8, %v1700_v60 }
0x1415   :  { %1931 = vmatpush.bf16.xpose.msra.mxu3 %v1922_v61 }
0x1419   :  { %2052 = vrot.lane.b32.xlu1 %v4060_v50, %s3502_s24 }
0x1420   :  { %v1915_v4 = vpop.permute.xlu1 %1914 }
0x1421   :  { %2075 = vrot.lane.b32.xlu1 %v4070_v54, %s3502_s24 }
0x1424   :  { %3176 = vmatmul.msk.bf16.vlgmr.msrb.gmra.mxu3 %vm172_vm8, %v1800_v33 }
0x1434   :  { %3180 = vmatmul.msk.bf16.vlgmr.msra.gmra.mxu3 %vm172_vm8, %v1915_v4 }
0x1449   :  { %v1836_v21 = vpop.xlane.xlu0 %1835 }
0x144b   :  { %v1695_v3 = vpop.xlane.xlu1 %1694 }
0x144c   :  { %3396 = vrcp.f32 %v1695_v3 }
0x144d   :  { %3398 = vrcp.f32 %v1836_v21 }
0x1452   :  { %v3397_v8 = vpop.eup %3396 }
0x1453   :  { %v1699_v12 = vmul.f32 %v3397_v8, %v3391_v24  ;;  %v3399_v9 = vpop.eup %3398 }
0x1454   :  { %v1842_v29 = vmul.f32 %v3399_v9, %v3393_v49 }
0x1455   :  { %v1701_v22 = vpack.c.bf16 %v1699_v12, %v1699_v12 }
0x1456   :  { %v1844_v54 = vpack.c.bf16 %v1842_v29, %v1842_v29 }
0x1457   :  { %3173 = vmatmul.msk.bf16.vlgmr.msra.gmra.mxu0 %vm172_vm8, %v1701_v22 }
0x1463   :  { %v1940_v50 = vpop.permute.xlu1 %1939 }
0x1464   :  { %v1945_v26 = vsel %vm172_vm8, %v1940_v50, 0 }
0x1465   :  { %1954 = vmatpush.bf16.xpose.msra.mxu0 %v1945_v26 }
0x1467   :  { %3177 = vmatmul.msk.bf16.vlgmr.msrb.gmra.mxu0 %vm172_vm8, %v1844_v54 }
0x146b   :  { %v1747_v23 = vpop.permute.xlu1 %1746 }
0x146c   :  { %v1752_v14 = vsel %vm245_vm10, %v1747_v23, 0 }
0x146d   :  { %1761 = vmatpush.bf16.msra.mxu1 %v1752_v14 }
0x1473   :  { %v1868_v27 = vpop.permute.xlu1 %1867 }
0x1474   :  { %v1873_v16 = vsel %vm245_vm10, %v1868_v27, 0 }
0x1475   :  { %1882 = vmatpush.bf16.msrb.mxu1 %v1873_v16 }
0x1477   :  { %3181 = vmatmul.msk.bf16.vlgmr.msra.gmra.mxu0 %vm172_vm8, %v1938_v18 }
0x147b   :  { %v1985_v32 = vpop.permute.xlu1 %1984 }
0x147c   :  { %v1990_v35 = vsel %vm245_vm10, %v1985_v32, 0 }
0x1483   :  { %v2078_v21 = vpop.permute.xlu1 %2077 }
0x1484   :  { %v2083_v9 = vsel %vm172_vm8, %v2078_v21, 0 }
0x148b   :  { %v2053_v23 = vpop.permute.xlu1 %2052 }
0x1493   :  { %v2076_v16 = vpop.permute.xlu1 %2075 }
0x1497   :  { %v1719_v19 = vpop.f32.mrf.mxu3 }
0x149f   :  { %v1721_v20 = vpop.f32.mrf.mxu3 }
0x14a7   :  { %v1818_v1 = vpop.f32.mrf.mxu3 }
0x14a8   :  { %v1819_v17 = vadd.f32 %v1818_v1, %v3646_v43 }
0x14aa   :  { %v1825_v0 = vsel %vm172_vm8, %v1819_v17, -inf }
0x14ab   :  { %1826 = vmax.xlane.f32.xlu0 %v1825_v0  ;;  %v2027_v0 = vpack.c.b16 %v4015_v58, %v4015_v58 }
0x14af   :  { %v1820_v25 = vpop.f32.mrf.mxu3 }
0x14b7   :  { %v1933_v30 = vpop.f32.mrf.mxu3 }
0x14b8   :  { %v1934_v31 = vadd.f32 %v1933_v30, %v3646_v43 }
0x14ba   :  { %v1960_v11 = vsel %vm172_vm8, %v1934_v31, -inf }
0x14bb   :  { %1961 = vmax.xlane.f32.xlu2 %v1960_v11 }
0x14bf   :  { %v1935_v28 = vpop.f32.mrf.mxu3 }
0x14d3   :  { %1890 = vrot.lane.b32.xlu2 %v1889_v52, %s3499_s21 }
0x14d4   :  { %v1740_v33 = vpop.f32.mrf.mxu0 }
0x14d5   :  { %v1744_v34 = vpack.c.bf16 %v1740_v33, %v1719_v19 }
0x14d7   :  { %3174 = vmatmul.msk.bf16.vlgmr.msra.gmra.mxu1 %vm172_vm8, %v1744_v34 }
0x14d8   :  { %1999 = vmatpush.bf16.msra.mxu1 %v1990_v35 }
0x14db   :  { %2005 = vrot.lane.b32.xlu2 %v4058_v15, %s3501_s23 }
0x14dc   :  { %v1742_v13 = vpop.f32.mrf.mxu0 }
0x14e4   :  { %v4139_v38 = vpop.f32.mrf.mxu0 }
0x14ec   :  { %v1865_v39 = vpop.f32.mrf.mxu0 }
0x14f4   :  { %v1956_v40 = vpop.f32.mrf.mxu0 }
0x14f5   :  { %v1957_v61 = vadd.f32 %v1956_v40, %v3646_v43 }
0x14f7   :  { %v1963_v4 = vsel %vm172_vm8, %v1957_v61, -inf }
0x14fc   :  { %v1958_v41 = vpop.f32.mrf.mxu0 }
0x151e   :  { %v1827_v6 = vpop.xlane.xlu0 %1826 }
0x151f   :  { %v1829_v44 = vsub.f32 %v1819_v17, %v1827_v6 }
0x1521   :  { %v1832_v5 = vmul.f32 1.442695, %v1829_v44 }
0x1523   :  { %3400 = vpow2.f32 %v1832_v5 }
0x1529   :  { %v3401_v62 = vpop.eup %3400 }
0x152a   :  { %v1837_v47 = vsel %vm172_vm8, %v3401_v62, 0.0 }
0x152b   :  { %1838 = vadd.xlane.f32.xlu0 %v1837_v47 }
0x152e   :  { %v1962_v24 = vpop.xlane.xlu2 %1961 }
0x152f   :  { %v1966_v49 = vsub.f32 %v1934_v31, %v1962_v24  ;;  %v3294_v24 = vld [vmem:[%s4452_s5 + $0x10] ss:$0 sm:$0xff] }
0x1531   :  { %v1968_v7 = vmul.f32 1.442695, %v1966_v49 }
0x1533   :  { %3402 = vpow2.f32 %v1968_v7 }
0x1536   :  { %v1891_v36 = vpop.permute.xlu2 %1890 }
0x1537   :  { %v1896_v51 = vsel %vm245_vm10, %v1891_v36, 0 }
0x1538   :  { %1905 = vmatpush.bf16.msrb.mxu2 %v1896_v51 }
0x1539   :  { %v3403_v45 = vpop.eup %3402 }
0x153a   :  { %v1972_v42 = vsel %vm172_vm8, %v3403_v45, 0.0 }
0x153b   :  { %1973 = vadd.xlane.f32.xlu0 %v1972_v42 }
0x153e   :  { %v2006_v55 = vpop.permute.xlu2 %2005 }
0x153f   :  { %v2011_v60 = vsel %vm245_vm10, %v2006_v55, 0 }
0x1540   :  { %2020 = vmatpush.bf16.msra.mxu2 %v2011_v60 }
0x154f   :  { %2054 = vrot.lane.b32.xlu0 %v4052_v46, %s3500_s22 }
0x1554   :  { %v1763_v25 = vpop.f32.mrf.mxu1 }
0x1555   :  { %v1768_v49 = vadd.f32 %v3294_v24, %v1763_v25 }
0x155c   :  { %v4161_v30 = vpop.f32.mrf.mxu1 }
0x1579   :  { %1964 = vmax.xlane.f32.xlu0 %v1963_v4 }
0x159e   :  { %v1839_v3 = vpop.xlane.xlu0 %1838 }
0x159f   :  { %3404 = vrcp.f32 %v1839_v3 }
0x15a5   :  { %v3405_v8 = vpop.eup %3404 }
0x15a6   :  { %v1843_v12 = vmul.f32 %v3405_v8, %v3401_v62 }
0x15a8   :  { %v1845_v22 = vpack.c.bf16 %v1843_v12, %v1843_v12 }
0x15aa   :  { %3178 = vmatmul.msk.bf16.vlgmr.msrb.gmra.mxu1 %vm172_vm8, %v1845_v22 }
0x15ab   :  { %2092 = vmatpush.bf16.xpose.msrb.mxu1 %v2083_v9 }
0x15ae   :  { %v1974_v29 = vpop.xlane.xlu0 %1973 }
0x15af   :  { %3406 = vrcp.f32 %v1974_v29 }
0x15b5   :  { %v3407_v50 = vpop.eup %3406 }
0x15b6   :  { %v1980_v26 = vmul.f32 %v3407_v50, %v3403_v45 }
0x15b8   :  { %v1982_v54 = vpack.c.bf16 %v1980_v26, %v1980_v26 }
0x15ba   :  { %3182 = vmatmul.msk.bf16.vlgmr.msra.gmra.mxu1 %vm172_vm8, %v1982_v54 }
0x15c1   :  { %v2055_v14 = vpop.permute.xlu0 %2054 }
0x15c2   :  { %v2060_v27 = vsel %vm172_vm8, %v2055_v14, 0 }
0x15c3   :  { %2069 = vmatpush.bf16.xpose.msrb.mxu0 %v2060_v27 }
0x15ca   :  { %3185 = vmatmul.msk.bf16.vlgmr.msrb.gmra.mxu0 %vm172_vm8, %v2053_v23  ;;  %3186 = vmatmul.msk.bf16.vlgmr.msrb.gmra.mxu1 %vm172_vm8, %v2076_v16 }
0x15ec   :  { %v1965_v18 = vpop.xlane.xlu0 %1964 }
0x15ed   :  { %v1967_v19 = vsub.f32 %v1957_v61, %v1965_v18 }
0x15ef   :  { %v1970_v20 = vmul.f32 1.442695, %v1967_v19 }
0x15f1   :  { %3408 = vpow2.f32 %v1970_v20  ;;  %v2165_v20 = vpack.c.b16 %v4018_v59, %v4018_v59  ;;  %v1769_v59 = vadd.f32 %v3294_v24, %v4161_v30  ;;  %v4200_v30 = vunpack.c.h.b16 %v4007_v56 }
0x15f7   :  { %v3409_v1 = vpop.eup %3408 }
0x15f8   :  { %v1975_v17 = vsel %vm172_vm8, %v3409_v1, 0.0 }
0x15f9   :  { %1976 = vadd.xlane.f32.xlu1 %v1975_v17 }
0x1612   :  { %2028 = vrot.lane.b32.xlu1 %v2027_v0, %s3499_s21 }
0x161a   :  { %2143 = vrot.lane.b32.xlu1 %v4058_v15, %s3503_s0 }
0x1627   :  { %v1884_v31 = vpop.f32.mrf.mxu1 }
0x1628   :  { %v1888_v11 = vpack.c.bf16 %v1884_v31, %v4139_v38 }
0x162a   :  { %3179 = vmatmul.msk.bf16.vlgmr.msrb.gmra.mxu2 %vm172_vm8, %v1888_v11 }
0x162f   :  { %v1886_v28 = vpop.f32.mrf.mxu1 }
0x1637   :  { %v2001_v52 = vpop.f32.mrf.mxu1 }
0x163f   :  { %v2003_v32 = vpop.f32.mrf.mxu1 }
0x1647   :  { %v2071_v33 = vpop.f32.mrf.mxu0  ;;  %v2094_v34 = vpop.f32.mrf.mxu1 }
0x1648   :  { %v2072_v58 = vadd.f32 %v2071_v33, %v3646_v43  ;;  %v2095_v35 = vadd.f32 %v2094_v34, %v3646_v43 }
0x164a   :  { %v2101_v13 = vsel %vm172_vm8, %v2095_v35, -inf  ;;  %v2098_v15 = vsel %vm172_vm8, %v2072_v58, -inf }
0x164b   :  { %2102 = vmax.xlane.f32.xlu0 %v2101_v13  ;;  %2099 = vmax.xlane.f32.xlu2 %v2098_v15 }
0x164f   :  { %v2073_v39 = vpop.f32.mrf.mxu0  ;;  %v2096_v40 = vpop.f32.mrf.mxu1 }
0x1663   :  { %2166 = vrot.lane.b32.xlu2 %v2165_v20, %s3499_s21 }
0x166c   :  { %v1977_v38 = vpop.xlane.xlu1 %1976 }
0x166d   :  { %3410 = vrcp.f32 %v1977_v38 }
0x1673   :  { %v3411_v41 = vpop.eup %3410 }
0x1674   :  { %v1981_v6 = vmul.f32 %v3411_v41, %v3409_v1 }
0x1676   :  { %v1983_v44 = vpack.c.bf16 %v1981_v6, %v1981_v6 }
0x1678   :  { %3183 = vmatmul.msk.bf16.vlgmr.msra.gmra.mxu2 %vm172_vm8, %v1983_v44 }
0x1684   :  { %v2029_v5 = vpop.permute.xlu1 %2028 }
0x1685   :  { %v2034_v62 = vsel %vm245_vm10, %v2029_v5, 0  ;;  %v4208_v5 = vunpack.c.h.b16 %v4025_v63 }
0x1686   :  { %2043 = vmatpush.bf16.msrb.mxu3 %v2034_v62  ;;  %v4211_v62 = vunpack.c.h.b16 %v4030_v2 }
0x168c   :  { %v2144_v43 = vpop.permute.xlu1 %2143 }
0x168d   :  { %v2149_v47 = vsel %vm245_vm10, %v2144_v43, 0 }
0x168e   :  { %2158 = vmatpush.bf16.msra.mxu3 %v2149_v47 }
0x16ad   :  { %v1907_v7 = vpop.f32.mrf.mxu2 }
0x16ae   :  { %v1912_v36 = vadd.f32 %v1907_v7, %v1768_v49 }
0x16b5   :  { %v1909_v21 = vpop.f32.mrf.mxu2 }
0x16b6   :  { %v1913_v13 = vadd.f32 %v1909_v21, %v1769_v59 }
0x16be   :  { %v2100_v51 = vpop.xlane.xlu2 %2099  ;;  %v2103_v45 = vpop.xlane.xlu0 %2102 }
0x16bf   :  { %v2104_v42 = vsub.f32 %v2072_v58, %v2100_v51  ;;  %v2105_v60 = vsub.f32 %v2095_v35, %v2103_v45 }
0x16c1   :  { %v2106_v55 = vmul.f32 1.442695, %v2104_v42  ;;  %v2108_v61 = vmul.f32 1.442695, %v2105_v60 }
0x16c3   :  { %3412 = vpow2.f32 %v2106_v55 }
0x16c4   :  { %3414 = vpow2.f32 %v2108_v61 }
0x16c6   :  { %v2167_v0 = vpop.permute.xlu2 %2166 }
0x16c7   :  { %v2172_v25 = vsel %vm245_vm10, %v2167_v0, 0 }
0x16c8   :  { %2181 = vmatpush.bf16.msra.mxu0 %v2172_v25 }
0x16c9   :  { %v3413_v4 = vpop.eup %3412 }
0x16ca   :  { %v2110_v3 = vsel %vm172_vm8, %v3413_v4, 0.0  ;;  %v3415_v8 = vpop.eup %3414 }
0x16cb   :  { %2111 = vadd.xlane.f32.xlu0 %v2110_v3  ;;  %v2113_v12 = vsel %vm172_vm8, %v3415_v8, 0.0 }
0x16d3   :  { %2114 = vadd.xlane.f32.xlu0 %v2113_v12 }
0x16e7   :  { %2122 = vrot.lane.b32.xlu0 %v4052_v46, %s3503_s0 }
0x16fb   :  { %v2022_v22 = vpop.f32.mrf.mxu2 }
0x16fc   :  { %v2026_v9 = vpack.c.bf16 %v2022_v22, %v2001_v52 }
0x16fe   :  { %3184 = vmatmul.msk.bf16.vlgmr.msrb.gmra.mxu3 %vm172_vm8, %v2026_v9 }
0x1703   :  { %v2024_v29 = vpop.f32.mrf.mxu2 }
0x173e   :  { %v2112_v50 = vpop.xlane.xlu0 %2111 }
0x1746   :  { %v2115_v26 = vpop.xlane.xlu0 %2114 }
0x1747   :  { %3416 = vrcp.f32 %v2115_v26 }
0x1748   :  { %3418 = vrcp.f32 %v2112_v50 }
0x174d   :  { %v3417_v54 = vpop.eup %3416 }
0x174e   :  { %v2119_v23 = vmul.f32 %v3417_v54, %v3415_v8  ;;  %v3419_v27 = vpop.eup %3418 }
0x174f   :  { %v2118_v16 = vmul.f32 %v3419_v27, %v3413_v4  ;;  %v3295_v27 = vld [vmem:[%s4452_s5 + $0x11] ss:$0 sm:$0xff] }
0x1750   :  { %v2121_v14 = vpack.c.bf16 %v2119_v23, %v2119_v23 }
0x1751   :  { %v2120_v19 = vpack.c.bf16 %v2118_v16, %v2118_v16 }
0x1752   :  { %3188 = vmatmul.msk.bf16.vlgmr.msra.gmra.mxu3 %vm172_vm8, %v2121_v14 }
0x1759   :  { %v2123_v18 = vpop.permute.xlu0 %2122 }
0x175a   :  { %v2128_v46 = vsel %vm245_vm10, %v2123_v18, 0 }
0x175b   :  { %2137 = vmatpush.bf16.msrb.mxu2 %v2128_v46 }
0x175e   :  { %3187 = vmatmul.msk.bf16.vlgmr.msrb.gmra.mxu2 %vm172_vm8, %v2120_v19  ;;  %v3296_v19 = vld [vmem:[%s4452_s5 + $0x12] ss:$0 sm:$0xff] }
0x1781   :  { %v2045_v1 = vpop.f32.mrf.mxu3 }
0x1782   :  { %v2050_v17 = vadd.f32 %v2045_v1, %v1912_v36 }
0x1789   :  { %v2047_v31 = vpop.f32.mrf.mxu3 }
0x178a   :  { %v2051_v39 = vadd.f32 %v2047_v31, %v1913_v13 }
0x17d5   :  { %v2160_v11 = vpop.f32.mrf.mxu3 }
0x17dd   :  { %v2162_v28 = vpop.f32.mrf.mxu3 }
0x17de   :  { %v3297_v28 = vld [vmem:[%s4452_s5 + $0x13] ss:$0 sm:$0xff] }
0x17e1   :  { %v2139_v52 = vpop.f32.mrf.mxu2 }
0x17e2   :  { %v2164_v32 = vpack.c.bf16 %v2160_v11, %v2139_v52 }
0x17e4   :  { %3189 = vmatmul.msk.bf16.vlgmr.msra.gmra.mxu0 %vm172_vm8, %v2164_v32  ;;  %v3298_v32 = vld [vmem:[%s4452_s5 + $0x14] ss:$0 sm:$0xff] }
0x17e9   :  { %v2141_v33 = vpop.f32.mrf.mxu2 }
0x1861   :  { %v2183_v34 = vpop.f32.mrf.mxu0 }
0x1862   :  { %v2188_v58 = vadd.f32 %v2183_v34, %v2050_v17 }
0x1864   :  { %v4190_v35 = vadd.f32 %v2188_v58, %v3989_v37  ;;  %v4203_v37 = vunpack.c.h.b16 %v4012_v57 }
0x1866   :  { %v2192_v15 = vsel %vm67_vm0, %v4190_v35, 0.0  ;;  %v2252_v44 = vpack.c.b16 %v4203_v37, %v4200_v30 }
0x1867   :  { %2193 = vadd.xlane.f32.xlu1 %v2192_v15 }
0x1868   :  { %2264 = vmatpush.bf16.msra.mxu1 %v2252_v44 }
0x1869   :  { %v2185_v40 = vpop.f32.mrf.mxu0 }
0x186a   :  { %v2189_v38 = vadd.f32 %v2185_v40, %v2051_v39 }
0x186c   :  { %v4195_v41 = vadd.f32 %v2189_v38, %v3994_v48  ;;  %v2251_v48 = vpack.c.b16 %v4211_v62, %v4208_v5 }
0x186e   :  { %v2195_v6 = vsel %vm67_vm0, %v4195_v41, 0.0  ;;  %2265 = vmatpush.bf16.msra.mxu1 %v2251_v48 }
0x186f   :  { %2196 = vadd.xlane.f32.xlu0 %v2195_v6 }
0x1883   :  { %2276 = vrot.lane.b32.xlu0 %v2252_v44, %s3492_s15 }
0x18da   :  { %v2194_v56 = vpop.xlane.xlu1 %2193 }
0x18db   :  { %v2198_v57 = vmul.f32 %v2194_v56, %v3556_v10 }
0x18dd   :  { %v2200_v43 = vsub.f32 %v4190_v35, %v2198_v57 }
0x18df   :  { %v2202_v47 = vmul.f32 %v2200_v43, %v2200_v43 }
0x18e1   :  { %v2204_v24 = vsel %vm67_vm0, %v2202_v47, 0.0 }
0x18e2   :  { %2205 = vadd.xlane.f32.xlu2 %v2204_v24  ;;  %v2197_v63 = vpop.xlane.xlu0 %2196 }
0x18e3   :  { %v2199_v2 = vmul.f32 %v2197_v63, %v3556_v10 }
0x18e5   :  { %v2201_v49 = vsub.f32 %v4195_v41, %v2199_v2 }
0x18e7   :  { %v2203_v7 = vmul.f32 %v2201_v49, %v2201_v49 }
0x18e9   :  { %v2207_v36 = vsel %vm67_vm0, %v2203_v7, 0.0 }
0x18ea   :  { %2208 = vadd.xlane.f32.xlu1 %v2207_v36 }
0x18f5   :  { %v2277_v51 = vpop.permute.xlu0 %2276 }
0x18f6   :  { %2286 = vmatpush.bf16.msra.mxu2 %v2277_v51 }
0x1903   :  { %2274 = vrot.lane.b32.xlu1 %v2251_v48, %s3492_s15 }
0x1955   :  { %v2206_v45 = vpop.xlane.xlu2 %2205 }
0x1956   :  { %v2210_v42 = vmul.f32 %v2206_v45, %v3556_v10 }
0x1958   :  { %v2212_v55 = vadd.f32 1e-05, %v2210_v42 }
0x195a   :  { %3420 = vrsqrt.f32 %v2212_v55  ;;  %vm2220_vm3 = vweird.f32 %v2212_v55 }
0x195d   :  { %v2209_v60 = vpop.xlane.xlu1 %2208 }
0x195e   :  { %v2211_v61 = vmul.f32 %v2209_v60, %v3556_v10 }
0x1960   :  { %v3421_v4 = vpop.eup %3420  ;;  %v2213_v3 = vadd.f32 1e-05, %v2211_v61 }
0x1961   :  { %v2215_v8 = vmul.f32 %v3421_v4, %v2212_v55  ;;  %vm2221_vm2 = vweird.f32 %v3421_v4 }
0x1962   :  { %3422 = vrsqrt.f32 %v2213_v3  ;;  %vm2222_vm4 = vmor %vm2220_vm3, %vm2221_vm2  ;;  %vm2230_vm6 = vweird.f32 %v2213_v3 }
0x1963   :  { %v2216_v12 = vmul.f32 %v3421_v4, %v2215_v8 }
0x1965   :  { %v2217_v21 = vmul.f32 0.5, %v2216_v12 }
0x1967   :  { %v2218_v22 = vsub.f32 1.5, %v2217_v21 }
0x1968   :  { %v3423_v9 = vpop.eup %3422 }
0x1969   :  { %v2219_v29 = vmul.f32 %v3421_v4, %v2218_v22  ;;  %v2225_v50 = vmul.f32 %v3423_v9, %v2213_v3  ;;  %vm2231_vm5 = vweird.f32 %v3423_v9 }
0x196a   :  { %vm2232_vm7 = vmor %vm2230_vm6, %vm2231_vm5 }
0x196b   :  { %v2226_v26 = vmul.f32 %v3423_v9, %v2225_v50  ;;  %v2223_v54 = vsel %vm2222_vm4, %v3421_v4, %v2219_v29 }
0x196c   :  { %v2234_v16 = vmul.f32 %v2223_v54, %v2200_v43 }
0x196d   :  { %v2227_v23 = vmul.f32 0.5, %v2226_v26 }
0x196e   :  { %v2238_v20 = vmul.f32 %v3295_v27, %v2234_v16 }
0x196f   :  { %v2228_v14 = vsub.f32 1.5, %v2227_v23 }
0x1970   :  { %v2242_v25 = vadd.f32 %v3296_v19, %v2238_v20 }
0x1971   :  { %v2229_v18 = vmul.f32 %v3423_v9, %v2228_v14 }
0x1973   :  { %v2233_v46 = vsel %vm2232_vm7, %v3423_v9, %v2229_v18 }
0x1974   :  { %v2235_v1 = vmul.f32 %v2233_v46, %v2201_v49 }
0x1975   :  { %v2275_v17 = vpop.permute.xlu1 %2274 }
0x1976   :  { %v2239_v0 = vmul.f32 %v3295_v27, %v2235_v1  ;;  %2287 = vmatpush.bf16.msra.mxu2 %v2275_v17 }
0x1978   :  { %v2243_v31 = vadd.f32 %v3296_v19, %v2239_v0 }
0x1979   :  { %3191 = vmatmul.msk.bf16.vlgmr.msra.gmra.mxu2 %vm67_vm0, %v3796_v53 }
0x197a   :  { %v2244_v11 = vpack.c.bf16 %v2243_v31, %v2242_v25 }
0x197c   :  { %3190 = vmatmul.msk.bf16.vlgmr.msra.gmra.mxu1 %vm67_vm0, %v2244_v11 }
0x19f9   :  { %v2267_v52 = vpop.f32.mrf.mxu1 }
0x19fa   :  { %v2268_v33 = vadd.f32 %v3297_v28, %v2267_v52 }
0x19fc   :  { %v2296_v34 = vmul.f32 0.35355338, %v2268_v33  ;;  %v2289_v58 = vpop.f32.mrf.mxu2 }
0x19fd   :  { %v2290_v59 = vadd.f32 %v3298_v32, %v2289_v58 }
0x19fe   :  { %v2298_v13 = vpack.c.bf16 %v2296_v34, %v2296_v34 }
0x19ff   :  { %v2300_v15 = vpack.c.bf16 %v2290_v59, %v2290_v59 }
0x1a00   :  { %v2439_v39 = vunpack.c.l.b16 %v2298_v13 }
0x1a01   :  { %v2306_v53 = vsel %vm172_vm8, %v2300_v15, 0  ;;  %v2365_v40 = vunpack.c.l.b16 %v2300_v15  ;;  %v2269_v44 = vpop.f32.mrf.mxu1 }
0x1a02   :  { %v4241_v38 = vpack.c.b16 %v2439_v39, %v2439_v39  ;;  %2315 = vmatpush.bf16.xpose.msrb.mxu3 %v2306_v53  ;;  %v2270_v57 = vadd.f32 %v3297_v28, %v2269_v44 }
0x1a03   :  { %v4243_v6 = vpack.c.b16 %v2365_v40, %v2365_v40 }
0x1a04   :  { %2441 = vrot.lane.b32.xlu0 %v4241_v38, %s3493_s16  ;;  %v2291_v48 = vpop.f32.mrf.mxu2  ;;  %v2297_v24 = vmul.f32 0.35355338, %v2270_v57 }
0x1a05   :  { %v2292_v56 = vadd.f32 %v3298_v32, %v2291_v48  ;;  %2443 = vrot.lane.b32.xlu2 %v4243_v6, %s3493_s16 }
0x1a06   :  { %v2299_v63 = vpack.c.bf16 %v2297_v24, %v2297_v24 }
0x1a07   :  { %v2301_v43 = vpack.c.bf16 %v2292_v56, %v2292_v56 }
0x1a08   :  { %v2465_v7 = vunpack.c.l.b16 %v2299_v63 }
0x1a09   :  { %v2325_v47 = vsel %vm172_vm8, %v2301_v43, 0  ;;  %3192 = vmatmul.msk.bf16.vlgmr.msrb.gmra.mxu3 %vm172_vm8, %v2298_v13  ;;  %v2389_v2 = vunpack.c.l.b16 %v2301_v43  ;;  %v2413_v43 = vpack.c.b16 %v4208_v5, %v4208_v5 }
0x1a0a   :  { %2334 = vmatpush.bf16.xpose.msrb.mxu0 %v2325_v47  ;;  %v4258_v36 = vpack.c.b16 %v2465_v7, %v2465_v7 }
0x1a0b   :  { %v4254_v49 = vpack.c.b16 %v2389_v2, %v2389_v2 }
0x1a0d   :  { %2367 = vrot.lane.b32.xlu2 %v4243_v6, %s3492_s15 }
0x1a11   :  { %3193 = vmatmul.msk.bf16.vlgmr.msrb.gmra.mxu0 %vm172_vm8, %v2299_v63 }
0x1a15   :  { %2469 = vrot.lane.b32.xlu2 %v4254_v49, %s3493_s16 }
0x1a1d   :  { %2467 = vrot.lane.b32.xlu2 %v4258_v36, %s3493_s16 }
0x1a5f   :  { %v2444_v51 = vpop.permute.xlu2 %2443 }
0x1a60   :  { %v2449_v45 = vsel %vm172_vm8, %v2444_v51, 0 }
0x1a61   :  { %2458 = vmatpush.bf16.xpose.msra.mxu0 %v2449_v45 }
0x1a67   :  { %v2368_v42 = vpop.permute.xlu2 %2367 }
0x1a68   :  { %v2373_v55 = vsel %vm245_vm10, %v2368_v42, 0 }
0x1a69   :  { %2382 = vmatpush.bf16.msrb.mxu1 %v2373_v55 }
0x1a6f   :  { %v2470_v60 = vpop.permute.xlu2 %2469 }
0x1a70   :  { %v2475_v61 = vsel %vm172_vm8, %v2470_v60, 0 }
0x1a71   :  { %2484 = vmatpush.bf16.xpose.msra.mxu1 %v2475_v61 }
0x1a76   :  { %v2442_v4 = vpop.permute.xlu0 %2441 }
0x1a77   :  { %3197 = vmatmul.msk.bf16.vlgmr.msra.gmra.mxu0 %vm172_vm8, %v2442_v4  ;;  %v2468_v26 = vpop.permute.xlu2 %2467 }
0x1a8c   :  { %v2317_v3 = vpop.f32.mrf.mxu3 }
0x1a8d   :  { %v2340_v8 = vsel %vm172_vm8, %v2317_v3, -inf }
0x1a8e   :  { %v2336_v12 = vpop.f32.mrf.mxu0  ;;  %2341 = vmax.xlane.f32.xlu0 %v2340_v8 }
0x1a8f   :  { %v2343_v21 = vsel %vm172_vm8, %v2336_v12, -inf }
0x1a90   :  { %2344 = vmax.xlane.f32.xlu2 %v2343_v21 }
0x1a94   :  { %v2319_v22 = vpop.f32.mrf.mxu3 }
0x1a96   :  { %v2338_v9 = vpop.f32.mrf.mxu0 }
0x1aa2   :  { %2584 = vrot.lane.b32.xlu0 %v4243_v6, %s3495_s18 }
0x1aa8   :  { %2391 = vrot.lane.b32.xlu2 %v4254_v49, %s3492_s15 }
0x1af4   :  { %v2460_v29 = vpop.f32.mrf.mxu0 }
0x1af5   :  { %v2490_v50 = vsel %vm172_vm8, %v2460_v29, -inf }
0x1af6   :  { %2491 = vmax.xlane.f32.xlu0 %v2490_v50 }
0x1afc   :  { %v2462_v54 = vpop.f32.mrf.mxu0 }
0x1b01   :  { %v2342_v23 = vpop.xlane.xlu0 %2341 }
0x1b02   :  { %v2346_v14 = vsub.f32 %v2317_v3, %v2342_v23 }
0x1b03   :  { %v2345_v27 = vpop.xlane.xlu2 %2344 }
0x1b04   :  { %v2348_v16 = vmul.f32 1.442695, %v2346_v14  ;;  %v2347_v1 = vsub.f32 %v2336_v12, %v2345_v27 }
0x1b06   :  { %3424 = vpow2.f32 %v2348_v16  ;;  %v2350_v17 = vmul.f32 1.442695, %v2347_v1 }
0x1b08   :  { %3426 = vpow2.f32 %v2350_v17 }
0x1b0a   :  { %2514 = vrot.lane.b32.xlu0 %v4243_v6, %s3491_s14 }
0x1b0b   :  { %v2392_v18 = vpop.permute.xlu2 %2391 }
0x1b0c   :  { %v3425_v46 = vpop.eup %3424  ;;  %v2397_v19 = vsel %vm245_vm10, %v2392_v18, 0 }
0x1b0d   :  { %2406 = vmatpush.bf16.msrb.mxu2 %v2397_v19  ;;  %v2352_v20 = vsel %vm172_vm8, %v3425_v46, 0.0 }
0x1b0e   :  { %2353 = vadd.xlane.f32.xlu1 %v2352_v20  ;;  %v3427_v0 = vpop.eup %3426 }
0x1b0f   :  { %v2355_v25 = vsel %vm172_vm8, %v3427_v0, 0.0 }
0x1b12   :  { %2605 = vrot.lane.b32.xlu0 %v4258_v36, %s3495_s18 }
0x1b14   :  { %v2585_v31 = vpop.permute.xlu0 %2584 }
0x1b15   :  { %v2590_v53 = vsel %vm172_vm8, %v2585_v31, 0 }
0x1b27   :  { %2582 = vrot.lane.b32.xlu1 %v4241_v38, %s3495_s18 }
0x1b51   :  { %2356 = vadd.xlane.f32.xlu1 %v2355_v25 }
0x1b69   :  { %v2492_v11 = vpop.xlane.xlu0 %2491 }
0x1b6a   :  { %v2496_v28 = vsub.f32 %v2460_v29, %v2492_v11  ;;  %2607 = vrot.lane.b32.xlu1 %v4254_v49, %s3495_s18 }
0x1b6c   :  { %v2498_v52 = vmul.f32 1.442695, %v2496_v28 }
0x1b6e   :  { %3428 = vpow2.f32 %v2498_v52 }
0x1b74   :  { %v3429_v32 = vpop.eup %3428 }
0x1b75   :  { %v2502_v33 = vsel %vm172_vm8, %v3429_v32, 0.0 }
0x1b76   :  { %2503 = vadd.xlane.f32.xlu2 %v2502_v33 }
0x1b7c   :  { %v2515_v34 = vpop.permute.xlu0 %2514 }
0x1b7d   :  { %v2520_v58 = vsel %vm245_vm10, %v2515_v34, 0  ;;  %v2557_v34 = vpack.c.b16 %v4211_v62, %v4211_v62 }
0x1b7e   :  { %2529 = vmatpush.bf16.msra.mxu2 %v2520_v58 }
0x1b81   :  { %v2354_v59 = vpop.xlane.xlu1 %2353 }
0x1b82   :  { %3430 = vrcp.f32 %v2354_v59 }
0x1b84   :  { %v2606_v45 = vpop.permute.xlu0 %2605 }
0x1b88   :  { %v3431_v13 = vpop.eup %3430 }
0x1b89   :  { %v2360_v15 = vmul.f32 %v3431_v13, %v3425_v46 }
0x1b8b   :  { %v2362_v39 = vpack.c.bf16 %v2360_v15, %v2360_v15 }
0x1b8d   :  { %3194 = vmatmul.msk.bf16.vlgmr.msrb.gmra.mxu1 %vm172_vm8, %v2362_v39 }
0x1b8e   :  { %2599 = vmatpush.bf16.xpose.msrb.mxu1 %v2590_v53  ;;  %2414 = vrot.lane.b32.xlu2 %v2413_v43, %s3499_s21 }
0x1b99   :  { %v2583_v40 = vpop.permute.xlu1 %2582 }
0x1b9d   :  { %3198 = vmatmul.msk.bf16.vlgmr.msra.gmra.mxu1 %vm172_vm8, %v2468_v26 }
0x1bad   :  { %3202 = vmatmul.msk.bf16.vlgmr.msrb.gmra.mxu1 %vm172_vm8, %v2583_v40 }
0x1bc4   :  { %v2357_v44 = vpop.xlane.xlu1 %2356 }
0x1bc5   :  { %3432 = vrcp.f32 %v2357_v44 }
0x1bcb   :  { %v3433_v48 = vpop.eup %3432 }
0x1bcc   :  { %v2361_v56 = vmul.f32 %v3433_v48, %v3427_v0 }
0x1bce   :  { %v2363_v57 = vpack.c.bf16 %v2361_v56, %v2361_v56 }
0x1bd0   :  { %3195 = vmatmul.msk.bf16.vlgmr.msrb.gmra.mxu2 %vm172_vm8, %v2363_v57 }
0x1bdc   :  { %v2608_v47 = vpop.permute.xlu1 %2607 }
0x1bdd   :  { %v2613_v24 = vsel %vm172_vm8, %v2608_v47, 0 }
0x1bde   :  { %2622 = vmatpush.bf16.xpose.msrb.mxu2 %v2613_v24 }
0x1be9   :  { %v2504_v63 = vpop.xlane.xlu2 %2503 }
0x1bea   :  { %3434 = vrcp.f32 %v2504_v63 }
0x1bf0   :  { %v3435_v2 = vpop.eup %3434 }
0x1bf1   :  { %v2510_v7 = vmul.f32 %v3435_v2, %v3429_v32  ;;  %v2415_v8 = vpop.permute.xlu2 %2414 }
0x1bf2   :  { %v2420_v21 = vsel %vm245_vm10, %v2415_v8, 0 }
0x1bf3   :  { %v2512_v51 = vpack.c.bf16 %v2510_v7, %v2510_v7  ;;  %2429 = vmatpush.bf16.msra.mxu3 %v2420_v21 }
0x1bf5   :  { %3199 = vmatmul.msk.bf16.vlgmr.msra.gmra.mxu2 %vm172_vm8, %v2512_v51 }
0x1c05   :  { %3203 = vmatmul.msk.bf16.vlgmr.msrb.gmra.mxu2 %vm172_vm8, %v2606_v45 }
0x1c0a   :  { %v2384_v42 = vpop.f32.mrf.mxu1 }
0x1c12   :  { %v2386_v55 = vpop.f32.mrf.mxu1 }
0x1c1a   :  { %v2486_v60 = vpop.f32.mrf.mxu1 }
0x1c1b   :  { %v2493_v5 = vsel %vm172_vm8, %v2486_v60, -inf }
0x1c1c   :  { %2494 = vmax.xlane.f32.xlu0 %v2493_v5 }
0x1c22   :  { %v2488_v61 = vpop.f32.mrf.mxu1 }
0x1c2a   :  { %v2601_v4 = vpop.f32.mrf.mxu1 }
0x1c2b   :  { %v2628_v3 = vsel %vm172_vm8, %v2601_v4, -inf }
0x1c2c   :  { %2629 = vmax.xlane.f32.xlu1 %v2628_v3 }
0x1c30   :  { %2535 = vrot.lane.b32.xlu0 %v4254_v49, %s3491_s14 }
0x1c32   :  { %v2603_v12 = vpop.f32.mrf.mxu1 }
0x1c38   :  { %2722 = vrot.lane.b32.xlu0 %v4243_v6, %s3502_s24 }
0x1c40   :  { %2720 = vrot.lane.b32.xlu0 %v4241_v38, %s3502_s24 }
0x1c45   :  { %2652 = vrot.lane.b32.xlu1 %v4243_v6, %s3494_s17 }
0x1c53   :  { %v2408_v22 = vpop.f32.mrf.mxu2 }
0x1c54   :  { %v2412_v9 = vpack.c.bf16 %v2408_v22, %v2384_v42 }
0x1c56   :  { %3196 = vmatmul.msk.bf16.vlgmr.msra.gmra.mxu3 %vm172_vm8, %v2412_v9 }
0x1c5b   :  { %v2410_v29 = vpop.f32.mrf.mxu2 }
0x1c78   :  { %v4309_v50 = vpop.f32.mrf.mxu2 }
0x1c80   :  { %v2533_v26 = vpop.f32.mrf.mxu2 }
0x1c88   :  { %v2624_v54 = vpop.f32.mrf.mxu2 }
0x1c89   :  { %v2631_v23 = vsel %vm172_vm8, %v2624_v54, -inf }
0x1c8a   :  { %2632 = vmax.xlane.f32.xlu0 %v2631_v23 }
0x1c8f   :  { %v2495_v14 = vpop.xlane.xlu0 %2494 }
0x1c90   :  { %v2497_v27 = vsub.f32 %v2486_v60, %v2495_v14  ;;  %v2626_v16 = vpop.f32.mrf.mxu2 }
0x1c92   :  { %v2500_v18 = vmul.f32 1.442695, %v2497_v27 }
0x1c94   :  { %3436 = vpow2.f32 %v2500_v18 }
0x1c9a   :  { %v3437_v38 = vpop.eup %3436 }
0x1c9b   :  { %v2505_v46 = vsel %vm172_vm8, %v3437_v38, 0.0 }
0x1c9c   :  { %2506 = vadd.xlane.f32.xlu2 %v2505_v46  ;;  %v3299_v46 = vld [vmem:[%s4452_s5 + $0x15] ss:$0 sm:$0xff] }
0x1c9f   :  { %v2630_v19 = vpop.xlane.xlu1 %2629 }
0x1ca0   :  { %v2634_v20 = vsub.f32 %v2601_v4, %v2630_v19 }
0x1ca2   :  { %v2636_v1 = vmul.f32 1.442695, %v2634_v20  ;;  %v2536_v17 = vpop.permute.xlu0 %2535 }
0x1ca3   :  { %v2541_v0 = vsel %vm245_vm10, %v2536_v17, 0 }
0x1ca4   :  { %3438 = vpow2.f32 %v2636_v1  ;;  %2550 = vmatpush.bf16.msrb.mxu3 %v2541_v0 }
0x1caa   :  { %v3439_v25 = vpop.eup %3438  ;;  %v2723_v31 = vpop.permute.xlu0 %2722 }
0x1cab   :  { %v2728_v11 = vsel %vm172_vm8, %v2723_v31, 0  ;;  %v2640_v28 = vsel %vm172_vm8, %v3439_v25, 0.0 }
0x1cac   :  { %2641 = vadd.xlane.f32.xlu1 %v2640_v28  ;;  %2737 = vmatpush.bf16.xpose.msra.mxu2 %v2728_v11 }
0x1cb2   :  { %v2721_v52 = vpop.permute.xlu0 %2720 }
0x1cb3   :  { %3207 = vmatmul.msk.bf16.vlgmr.msra.gmra.mxu2 %vm172_vm8, %v2721_v52 }
0x1cb4   :  { %2745 = vrot.lane.b32.xlu2 %v4254_v49, %s3502_s24 }
0x1cb7   :  { %v2653_v32 = vpop.permute.xlu1 %2652 }
0x1cb8   :  { %v2658_v33 = vsel %vm245_vm10, %v2653_v32, 0 }
0x1cb9   :  { %2667 = vmatpush.bf16.msra.mxu3 %v2658_v33 }
0x1cbc   :  { %2673 = vrot.lane.b32.xlu2 %v4254_v49, %s3494_s17 }
0x1cc5   :  { %2743 = vrot.lane.b32.xlu1 %v4258_v36, %s3502_s24 }
0x1ccd   :  { %2558 = vrot.lane.b32.xlu1 %v2557_v34, %s3499_s21 }
0x1cd9   :  { %v2431_v60 = vpop.f32.mrf.mxu3 }
0x1cda   :  { %v2436_v19 = vadd.f32 %v3299_v46, %v2431_v60 }
0x1ce1   :  { %v4335_v5 = vpop.f32.mrf.mxu3 }
0x1cfd   :  { %v2633_v58 = vpop.xlane.xlu0 %2632 }
0x1cfe   :  { %v2635_v59 = vsub.f32 %v2624_v54, %v2633_v58 }
0x1d00   :  { %v2638_v13 = vmul.f32 1.442695, %v2635_v59 }
0x1d02   :  { %3440 = vpow2.f32 %v2638_v13 }
0x1d08   :  { %v3441_v15 = vpop.eup %3440 }
0x1d09   :  { %v2643_v39 = vsel %vm172_vm8, %v3441_v15, 0.0 }
0x1d0a   :  { %2644 = vadd.xlane.f32.xlu1 %v2643_v39 }
0x1d0f   :  { %v2507_v53 = vpop.xlane.xlu2 %2506 }
0x1d10   :  { %3442 = vrcp.f32 %v2507_v53 }
0x1d16   :  { %v3443_v40 = vpop.eup %3442 }
0x1d17   :  { %v2511_v44 = vmul.f32 %v3443_v40, %v3437_v38  ;;  %v2746_v48 = vpop.permute.xlu2 %2745  ;;  %v2695_v38 = vpack.c.b16 %v4200_v30, %v4200_v30  ;;  %v2833_v40 = vpack.c.b16 %v4203_v37, %v4203_v37 }
0x1d18   :  { %v2751_v36 = vsel %vm172_vm8, %v2746_v48, 0 }
0x1d19   :  { %v2513_v56 = vpack.c.bf16 %v2511_v44, %v2511_v44 }
0x1d1b   :  { %3200 = vmatmul.msk.bf16.vlgmr.msrb.gmra.mxu3 %vm172_vm8, %v2513_v56 }
0x1d1c   :  { %2760 = vmatpush.bf16.xpose.msrb.mxu3 %v2751_v36 }
0x1d1f   :  { %v2642_v62 = vpop.xlane.xlu1 %2641  ;;  %v2674_v7 = vpop.permute.xlu2 %2673 }
0x1d20   :  { %3444 = vrcp.f32 %v2642_v62  ;;  %v2679_v55 = vsel %vm245_vm10, %v2674_v7, 0 }
0x1d26   :  { %v3445_v57 = vpop.eup %3444 }
0x1d27   :  { %v2648_v43 = vmul.f32 %v3445_v57, %v3439_v25 }
0x1d29   :  { %v2650_v47 = vpack.c.bf16 %v2648_v43, %v2648_v43 }
0x1d2b   :  { %3204 = vmatmul.msk.bf16.vlgmr.msra.gmra.mxu3 %vm172_vm8, %v2650_v47 }
0x1d36   :  { %v2739_v24 = vpop.f32.mrf.mxu2 }
0x1d37   :  { %v2744_v63 = vpop.permute.xlu1 %2743  ;;  %v2766_v2 = vsel %vm172_vm8, %v2739_v24, -inf }
0x1d38   :  { %2767 = vmax.xlane.f32.xlu2 %v2766_v2 }
0x1d3b   :  { %3208 = vmatmul.msk.bf16.vlgmr.msrb.gmra.mxu3 %vm172_vm8, %v2744_v63 }
0x1d3e   :  { %v2741_v51 = vpop.f32.mrf.mxu2 }
0x1d3f   :  { %v2559_v45 = vpop.permute.xlu1 %2558 }
0x1d40   :  { %v2564_v42 = vsel %vm245_vm10, %v2559_v45, 0 }
0x1d41   :  { %2573 = vmatpush.bf16.msrb.mxu0 %v2564_v42 }
0x1d45   :  { %2688 = vmatpush.bf16.msra.mxu0 %v2679_v55  ;;  %v2437_v55 = vadd.f32 %v3299_v46, %v4335_v5 }
0x1d7d   :  { %v2645_v4 = vpop.xlane.xlu1 %2644 }
0x1d7e   :  { %3446 = vrcp.f32 %v2645_v4 }
0x1d84   :  { %v3447_v12 = vpop.eup %3446 }
0x1d85   :  { %v2649_v21 = vmul.f32 %v3447_v12, %v3441_v15 }
0x1d87   :  { %v2651_v54 = vpack.c.bf16 %v2649_v21, %v2649_v21 }
0x1d9e   :  { %v2552_v61 = vpop.f32.mrf.mxu3 }
0x1d9f   :  { %v2556_v3 = vpack.c.bf16 %v2552_v61, %v4309_v50 }
0x1da1   :  { %3201 = vmatmul.msk.bf16.vlgmr.msrb.gmra.mxu0 %vm172_vm8, %v2556_v3 }
0x1da6   :  { %v2554_v8 = vpop.f32.mrf.mxu3 }
0x1dab   :  { %v2768_v22 = vpop.xlane.xlu2 %2767 }
0x1dac   :  { %v2772_v9 = vsub.f32 %v2739_v24, %v2768_v22 }
0x1dae   :  { %v2774_v29 = vmul.f32 1.442695, %v2772_v9  ;;  %v2669_v26 = vpop.f32.mrf.mxu3 }
0x1db0   :  { %3448 = vpow2.f32 %v2774_v29 }
0x1db1   :  { %3205 = vmatmul.msk.bf16.vlgmr.msra.gmra.mxu0 %vm172_vm8, %v2651_v54 }
0x1db6   :  { %v3449_v23 = vpop.eup %3448  ;;  %v2671_v14 = vpop.f32.mrf.mxu3 }
0x1db7   :  { %v2778_v27 = vsel %vm172_vm8, %v3449_v23, 0.0 }
0x1db8   :  { %2779 = vadd.xlane.f32.xlu1 %v2778_v27 }
0x1dbe   :  { %v2762_v50 = vpop.f32.mrf.mxu3 }
0x1dbf   :  { %v2769_v16 = vsel %vm172_vm8, %v2762_v50, -inf }
0x1dc0   :  { %2770 = vmax.xlane.f32.xlu0 %v2769_v16  ;;  %v3250_v16 = vld [vmem:[%s4449_s2 + $0x58] sm:$0xf0] }
0x1dc6   :  { %v2764_v18 = vpop.f32.mrf.mxu3 }
0x1dd1   :  { %2790 = vrot.lane.b32.xlu1 %v4243_v6, %s3500_s22 }
0x1dd4   :  { %2696 = vrot.lane.b32.xlu0 %v2695_v38, %s3499_s21 }
0x1ddc   :  { %2811 = vrot.lane.b32.xlu0 %v4254_v49, %s3500_s22 }
0x1e1e   :  { %v2575_v20 = vpop.f32.mrf.mxu0 }
0x1e1f   :  { %v2580_v1 = vadd.f32 %v2575_v20, %v2436_v19  ;;  %v3214_v19 = vld [vmem:[%s4449_s2 + $0x38] sm:$0xf]  ;;  %v3249_v20 = vld [vmem:[%s4449_s2 + $0x40] sm:$0xf0] }
0x1e26   :  { %v2577_v17 = vpop.f32.mrf.mxu0 }
0x1e27   :  { %v2581_v61 = vadd.f32 %v2577_v17, %v2437_v55  ;;  %v3215_v17 = vor.u32 %v3249_v20, %v3214_v19 }
0x1e2b   :  { %v2780_v30 = vpop.xlane.xlu1 %2779 }
0x1e2e   :  { %v2690_v0 = vpop.f32.mrf.mxu0 }
0x1e2f   :  { %v2694_v15 = vpack.c.bf16 %v2690_v0, %v2669_v26 }
0x1e33   :  { %v2771_v25 = vpop.xlane.xlu0 %2770 }
0x1e34   :  { %v2773_v31 = vsub.f32 %v2762_v50, %v2771_v25  ;;  %v3218_v50 = vld [vmem:[%s4449_s2 + $0x50] sm:$0xf]  ;;  %s3506_s2 = smov 8  }
0x1e35   :  { %v3219_v18 = vor.u32 %v3250_v16, %v3218_v50 }
0x1e36   :  { %v2776_v11 = vmul.f32 1.442695, %v2773_v31  ;;  %v2692_v28 = vpop.f32.mrf.mxu0 }
0x1e37   :  { %2936 = vmatpush.bf16.msra.mxu3 %v3219_v18 }
0x1e38   :  { %3450 = vpow2.f32 %v2776_v11 }
0x1e39   :  { %3452 = vrcp.f32 %v2780_v30 }
0x1e3b   :  { %2937 = vmatpush.bf16.msra.mxu3 %v3215_v17 }
0x1e3e   :  { %v3451_v6 = vpop.eup %3450 }
0x1e3f   :  { %v3453_v52 = vpop.eup %3452  ;;  %v2781_v49 = vsel %vm172_vm8, %v3451_v6, 0.0 }
0x1e40   :  { %2782 = vadd.xlane.f32.xlu2 %v2781_v49  ;;  %v2786_v32 = vmul.f32 %v3453_v52, %v3449_v23 }
0x1e42   :  { %v2788_v58 = vpack.c.bf16 %v2786_v32, %v2786_v32 }
0x1e43   :  { %v2791_v33 = vpop.permute.xlu1 %2790 }
0x1e44   :  { %v2796_v34 = vsel %vm245_vm10, %v2791_v33, 0 }
0x1e45   :  { %2805 = vmatpush.bf16.msrb.mxu0 %v2796_v34 }
0x1e46   :  { %v2697_v59 = vpop.permute.xlu0 %2696 }
0x1e47   :  { %v2702_v13 = vsel %vm245_vm10, %v2697_v59, 0 }
0x1e48   :  { %2711 = vmatpush.bf16.msra.mxu1 %v2702_v13  ;;  %3209 = vmatmul.msk.bf16.vlgmr.msrb.gmra.mxu0 %vm172_vm8, %v2788_v58 }
0x1e4b   :  { %3206 = vmatmul.msk.bf16.vlgmr.msra.gmra.mxu1 %vm172_vm8, %v2694_v15  ;;  %v3300_v15 = vld [vmem:[%s4452_s5 + $0x16] ss:$0 sm:$0xff] }
0x1e4e   :  { %v2812_v39 = vpop.permute.xlu0 %2811 }
0x1e4f   :  { %v2817_v53 = vsel %vm245_vm10, %v2812_v39, 0 }
0x1e50   :  { %2826 = vmatpush.bf16.msrb.mxu1 %v2817_v53 }
0x1e58   :  { %2834 = vrot.lane.b32.xlu2 %v2833_v40, %s3499_s21  ;;  %s3504_s21 = smov [#allocation2]  }
0x1e59   :  { %s3086_s22 = sshll.u32 %s3504_s21, 4  ;;  %s3087_s22 = int_to_ptr.vmem [resolvable:$true] %s3086_s22 }
0x1eb3   :  { %v2783_v44 = vpop.xlane.xlu2 %2782 }
0x1eb4   :  { %3454 = vrcp.f32 %v2783_v44  ;;  %v3301_v44 = vld [vmem:[%s4452_s5 + $0x17] ss:$0 sm:$0xff] }
0x1eba   :  { %v3455_v48 = vpop.eup %3454 }
0x1ebb   :  { %v2787_v56 = vmul.f32 %v3455_v48, %v3451_v6  ;;  %v2835_v24 = vpop.permute.xlu2 %2834 }
0x1ebc   :  { %v2840_v63 = vsel %vm245_vm10, %v2835_v24, 0  ;;  %v3257_v24 = vld [vmem:[%s4450_s3 + $0x30] sm:$0xff] }
0x1ebd   :  { %v2789_v36 = vpack.c.bf16 %v2787_v56, %v2787_v56  ;;  %2849 = vmatpush.bf16.msrb.mxu2 %v2840_v63  ;;  %v3256_v63 = vld [vmem:[%s4450_s3 + $0x28] sm:$0xff] }
0x1ebf   :  { %3210 = vmatmul.msk.bf16.vlgmr.msrb.gmra.mxu1 %vm172_vm8, %v2789_v36 }
0x1ec5   :  { %v2807_v62 = vpop.f32.mrf.mxu0 }
0x1ec8   :  { %v2713_v57 = vpop.f32.mrf.mxu1 }
0x1ec9   :  { %v2718_v43 = vadd.f32 %v2713_v57, %v2580_v1 }
0x1ecd   :  { %v2809_v47 = vpop.f32.mrf.mxu0 }
0x1ece   :  { %v3258_v47 = vld [vmem:[%s4450_s3 + $0x38] sm:$0xff] }
0x1ecf   :  { %2978 = vmatpush.bf16.msra.mxu0 %v3258_v47 }
0x1ed0   :  { %v2715_v2 = vpop.f32.mrf.mxu1 }
0x1ed1   :  { %v2719_v3 = vadd.f32 %v2715_v2, %v2581_v61  ;;  %v3255_v2 = vld [vmem:[%s4450_s3 + $0x20] sm:$0xff] }
0x1ed3   :  { %2979 = vmatpush.bf16.msra.mxu0 %v3257_v24 }
0x1ed7   :  { %2980 = vmatpush.bf16.msra.mxu0 %v3256_v63 }
0x1edb   :  { %2981 = vmatpush.bf16.msra.mxu0 %v3255_v2 }
0x1f3c   :  { %v2828_v7 = vpop.f32.mrf.mxu1 }
0x1f3d   :  { %v2832_v37 = vpack.c.bf16 %v2828_v7, %v2807_v62 }
0x1f3f   :  { %3211 = vmatmul.msk.bf16.vlgmr.msrb.gmra.mxu2 %vm172_vm8, %v2832_v37  ;;  %v3302_v37 = vld [vmem:[%s4452_s5 + $0x18] ss:$0 sm:$0xff] }
0x1f44   :  { %v2830_v51 = vpop.f32.mrf.mxu1 }
0x1fc2   :  { %v2851_v45 = vpop.f32.mrf.mxu2 }
0x1fc3   :  { %v2856_v42 = vadd.f32 %v2851_v45, %v2718_v43 }
0x1fc5   :  { %v4366_v60 = vadd.f32 %v2856_v42, %v4190_v35 }
0x1fc7   :  { %v2860_v4 = vsel %vm67_vm0, %v4366_v60, 0.0 }
0x1fc8   :  { %2861 = vadd.xlane.f32.xlu0 %v2860_v4 }
0x1fca   :  { %v2853_v8 = vpop.f32.mrf.mxu2 }
0x1fcb   :  { %v2857_v12 = vadd.f32 %v2853_v8, %v2719_v3  ;;  %v3303_v3 = vld [vmem:[%s4452_s5 + $0x19] ss:$0 sm:$0xff] }
0x1fcd   :  { %v4371_v21 = vadd.f32 %v2857_v12, %v4195_v41 }
0x1fcf   :  { %v2863_v22 = vsel %vm67_vm0, %v4371_v21, 0.0 }
0x1fd0   :  { %2864 = vadd.xlane.f32.xlu1 %v2863_v22 }
0x203b   :  { %v2862_v9 = vpop.xlane.xlu0 %2861 }
0x203c   :  { %v2866_v5 = vmul.f32 %v2862_v9, %v3556_v10 }
0x203e   :  { %v2868_v35 = vsub.f32 %v4366_v60, %v2866_v5 }
0x2040   :  { %v2870_v29 = vmul.f32 %v2868_v35, %v2868_v35 }
0x2042   :  { %v2872_v26 = vsel %vm67_vm0, %v2870_v29, 0.0 }
0x2043   :  { %2873 = vadd.xlane.f32.xlu2 %v2872_v26  ;;  %v2865_v54 = vpop.xlane.xlu1 %2864 }
0x2044   :  { %v2867_v23 = vmul.f32 %v2865_v54, %v3556_v10 }
0x2046   :  { %v2869_v14 = vsub.f32 %v4371_v21, %v2867_v23 }
0x2048   :  { %v2871_v41 = vmul.f32 %v2869_v14, %v2869_v14 }
0x204a   :  { %v2875_v27 = vsel %vm67_vm0, %v2871_v41, 0.0 }
0x204b   :  { %2876 = vadd.xlane.f32.xlu0 %v2875_v27 }
0x20b6   :  { %v2874_v38 = vpop.xlane.xlu2 %2873 }
0x20b7   :  { %v2878_v46 = vmul.f32 %v2874_v38, %v3556_v10 }
0x20b9   :  { %v2880_v1 = vadd.f32 1e-05, %v2878_v46 }
0x20bb   :  { %3456 = vrsqrt.f32 %v2880_v1  ;;  %vm2888_vm10 = vweird.f32 %v2880_v1 }
0x20be   :  { %v2877_v0 = vpop.xlane.xlu0 %2876 }
0x20bf   :  { %v2879_v25 = vmul.f32 %v2877_v0, %v3556_v10 }
0x20c1   :  { %v3457_v31 = vpop.eup %3456  ;;  %v2881_v30 = vadd.f32 1e-05, %v2879_v25 }
0x20c2   :  { %v2883_v11 = vmul.f32 %v3457_v31, %v2880_v1  ;;  %vm2889_vm8 = vweird.f32 %v3457_v31  ;;  %v3259_v1 = vld [vmem:[%s4451_s4] sm:$0xff] }
0x20c3   :  { %3458 = vrsqrt.f32 %v2881_v30  ;;  %vm2890_vm11 = vmor %vm2888_vm10, %vm2889_vm8  ;;  %vm2898_vm13 = vweird.f32 %v2881_v30 }
0x20c4   :  { %v2884_v28 = vmul.f32 %v3457_v31, %v2883_v11 }
0x20c6   :  { %v2885_v6 = vmul.f32 0.5, %v2884_v28 }
0x20c8   :  { %v2886_v52 = vsub.f32 1.5, %v2885_v6 }
0x20c9   :  { %v3459_v49 = vpop.eup %3458 }
0x20ca   :  { %v2887_v32 = vmul.f32 %v3457_v31, %v2886_v52  ;;  %v2893_v33 = vmul.f32 %v3459_v49, %v2881_v30  ;;  %vm2899_vm12 = vweird.f32 %v3459_v49 }
0x20cb   :  { %vm2900_vm14 = vmor %vm2898_vm13, %vm2899_vm12 }
0x20cc   :  { %v2894_v34 = vmul.f32 %v3459_v49, %v2893_v33  ;;  %v2891_v58 = vsel %vm2890_vm11, %v3457_v31, %v2887_v32 }
0x20cd   :  { %v2902_v39 = vmul.f32 %v2891_v58, %v2868_v35 }
0x20ce   :  { %v2895_v59 = vmul.f32 0.5, %v2894_v34 }
0x20cf   :  { %v2906_v48 = vmul.f32 %v3300_v15, %v2902_v39 }
0x20d0   :  { %v2896_v13 = vsub.f32 1.5, %v2895_v59 }
0x20d1   :  { %v2910_v62 = vadd.f32 %v3301_v44, %v2906_v48 }
0x20d2   :  { %v2897_v53 = vmul.f32 %v3459_v49, %v2896_v13 }
0x20d4   :  { %v2901_v40 = vsel %vm2900_vm14, %v3459_v49, %v2897_v53  ;;  %v3305_v53 = vld [vmem:[%s4452_s5 + $0x1b] ss:$0 sm:$0xff] }
0x20d5   :  { %v2903_v56 = vmul.f32 %v2901_v40, %v2869_v14 }
0x20d7   :  { %v2907_v36 = vmul.f32 %v3300_v15, %v2903_v56 }
0x20d9   :  { %v2911_v57 = vadd.f32 %v3301_v44, %v2907_v36 }
0x20db   :  { %v2912_v43 = vpack.c.bf16 %v2911_v57, %v2910_v62 }
0x20dd   :  { %3220 = vmatmul.msk.bf16.vlgmr.msra.gmra.mxu3 %vm67_vm0, %v2912_v43 }
0x2160   :  { %v2939_v7 = vpop.f32.mrf.mxu3 }
0x2161   :  { %v2940_v51 = vadd.f32 %v3302_v37, %v2939_v7 }
0x2163   :  { %v2944_v55 = vmax.f32 %v2940_v51, 0.0 }
0x2168   :  { %v2941_v45 = vpop.f32.mrf.mxu3 }
0x2169   :  { %v2942_v42 = vadd.f32 %v3302_v37, %v2941_v45 }
0x216b   :  { %v2945_v61 = vmax.f32 %v2942_v42, 0.0 }
0x216d   :  { %v2946_v4 = vpack.c.bf16 %v2945_v61, %v2944_v55 }
0x216f   :  { %3237 = vmatmul.msk.bf16.vlgmr.msra.gmra.mxu0 %vm1514_vm9, %v2946_v4 }
0x21ec   :  { %v2983_v8 = vpop.f32.mrf.mxu0 }
0x21ed   :  { %v2988_v12 = vadd.f32 %v2983_v8, %v4366_v60 }
0x21ef   :  { %v2992_v22 = vadd.f32 %v3303_v3, %v2988_v12 }
0x21f1   :  { %v2994_v9 = vsel %vm67_vm0, %v2992_v22, 0.0 }
0x21f2   :  { %2995 = vadd.xlane.f32.xlu0 %v2994_v9 }
0x21f4   :  { %v2985_v5 = vpop.f32.mrf.mxu0 }
0x21f5   :  { %v2989_v35 = vadd.f32 %v2985_v5, %v4371_v21  ;;  %v3260_v21 = vld [vmem:[%s4451_s4 + $0x8] sm:$0xff] }
0x21f6   :  { %3072 = vmatpush.bf16.msra.mxu1 %v3260_v21 }
0x21f7   :  { %v2993_v29 = vadd.f32 %v3303_v3, %v2989_v35 }
0x21f9   :  { %v2997_v26 = vsel %vm67_vm0, %v2993_v29, 0.0 }
0x21fa   :  { %2998 = vadd.xlane.f32.xlu1 %v2997_v26  ;;  %3073 = vmatpush.bf16.msra.mxu1 %v3259_v1 }
0x2265   :  { %v2996_v54 = vpop.xlane.xlu0 %2995 }
0x2266   :  { %v3000_v23 = vmul.f32 %v2996_v54, %v3556_v10 }
0x2268   :  { %v3002_v14 = vsub.f32 %v2992_v22, %v3000_v23 }
0x226a   :  { %v3004_v41 = vmul.f32 %v3002_v14, %v3002_v14 }
0x226c   :  { %v3006_v27 = vsel %vm67_vm0, %v3004_v41, 0.0 }
0x226d   :  { %3007 = vadd.xlane.f32.xlu0 %v3006_v27  ;;  %v2999_v60 = vpop.xlane.xlu1 %2998 }
0x226e   :  { %v3001_v50 = vmul.f32 %v2999_v60, %v3556_v10 }
0x2270   :  { %v3003_v16 = vsub.f32 %v2993_v29, %v3001_v50 }
0x2272   :  { %v3005_v18 = vmul.f32 %v3003_v16, %v3003_v16 }
0x2274   :  { %v3009_v38 = vsel %vm67_vm0, %v3005_v18, 0.0 }
0x2275   :  { %3010 = vadd.xlane.f32.xlu2 %v3009_v38 }
0x22e0   :  { %v3008_v46 = vpop.xlane.xlu0 %3007 }
0x22e1   :  { %v3012_v19 = vmul.f32 %v3008_v46, %v3556_v10 }
0x22e3   :  { %v3014_v20 = vadd.f32 1e-05, %v3012_v19 }
0x22e5   :  { %3460 = vrsqrt.f32 %v3014_v20  ;;  %vm3022_vm15 = vweird.f32 %v3014_v20 }
0x22e8   :  { %v3011_v17 = vpop.xlane.xlu2 %3010 }
0x22e9   :  { %v3013_v0 = vmul.f32 %v3011_v17, %v3556_v10  ;;  %v3304_v10 = vld [vmem:[%s4452_s5 + $0x1a] ss:$0 sm:$0xff]  ;;  %s3505_s5 = smov 128  }
0x22eb   :  { %v3461_v25 = vpop.eup %3460  ;;  %v3015_v31 = vadd.f32 1e-05, %v3013_v0 }
0x22ec   :  { %v3017_v30 = vmul.f32 %v3461_v25, %v3014_v20  ;;  %vm3023_vm9 = vweird.f32 %v3461_v25 }
0x22ed   :  { %3462 = vrsqrt.f32 %v3015_v31  ;;  %vm3024_vm1 = vmor %vm3022_vm15, %vm3023_vm9  ;;  %vm3032_vm3 = vweird.f32 %v3015_v31 }
0x22ee   :  { %v3018_v11 = vmul.f32 %v3461_v25, %v3017_v30 }
0x22f0   :  { %v3019_v28 = vmul.f32 0.5, %v3018_v11 }
0x22f2   :  { %v3020_v6 = vsub.f32 1.5, %v3019_v28 }
0x22f3   :  { %v3463_v52 = vpop.eup %3462 }
0x22f4   :  { %v3021_v49 = vmul.f32 %v3461_v25, %v3020_v6  ;;  %v3027_v32 = vmul.f32 %v3463_v52, %v3015_v31  ;;  %vm3033_vm2 = vweird.f32 %v3463_v52 }
0x22f5   :  { %vm3034_vm4 = vmor %vm3032_vm3, %vm3033_vm2 }
0x22f6   :  { %v3028_v33 = vmul.f32 %v3463_v52, %v3027_v32  ;;  %v3025_v34 = vsel %vm3024_vm1, %v3461_v25, %v3021_v49 }
0x22f7   :  { %v3036_v13 = vmul.f32 %v3025_v34, %v3002_v14 }
0x22f8   :  { %v3029_v58 = vmul.f32 0.5, %v3028_v33 }
0x22f9   :  { %v3040_v40 = vmul.f32 %v3304_v10, %v3036_v13 }
0x22fa   :  { %v3030_v59 = vsub.f32 1.5, %v3029_v58 }
0x22fb   :  { %v3044_v56 = vadd.f32 %v3305_v53, %v3040_v40 }
0x22fc   :  { %v3031_v15 = vmul.f32 %v3463_v52, %v3030_v59 }
0x22fe   :  { %v3035_v39 = vsel %vm3034_vm4, %v3463_v52, %v3031_v15 }
0x22ff   :  { %v3037_v44 = vmul.f32 %v3035_v39, %v3003_v16 }
0x2301   :  { %v3041_v48 = vmul.f32 %v3304_v10, %v3037_v44 }
0x2303   :  { %v3045_v36 = vadd.f32 %v3305_v53, %v3041_v48 }
0x2305   :  { %v3050_v62 = vpack.c.bf16 %v3045_v36, %v3044_v56 }
0x2307   :  { %3246 = vmatmul.msk.bf16.vlgmr.msra.gmra.mxu1 %vm67_vm0, %v3050_v62 }
0x2384   :  { %v3075_v57 = vpop.f32.mrf.mxu1 }
0x2385   :  { %3080 = vst [vmem:[#allocation2] sm:$0xff] %v3075_v57 }
0x238c   :  { %v3077_v43 = vpop.f32.mrf.mxu1 }
0x238d   :  { %3081 = vst [vmem:[#allocation2 + $0x8] sm:$0xff] %v3077_v43 }
0x238e   :  { %3094 = dma.vmem_to_hbm [thread:$0]  %s3087_s22, 256, %s3089_s30, [#allocation3], %s3505_s5, %s3505_s5, %s3506_s2  }
0x238f   :  { %3488 = dma.done.wait [#allocation3], 256  }
0x2390   :  { %3489 = vsyncadd [#allocation3], 4294967040 }
0x2391   :  { %3099 = vsyncpa [#allocation3], 1 }

</bundles_post_ra>
